<compile_context>
chip_gen: v5e
topology: v5e:2x2
jax: 0.10.0
libtpu: 0.0.40
codegen_flags: <defaults>
</compile_context>

<pallas_src>
import jax
import jax.numpy as jnp
from jax.experimental import pallas as pl
from jax.experimental.pallas import tpu as pltpu


def _round_up(x, m):
    return (x + m - 1) // m * m


def _full_spec(shape):
    nd = len(shape)
    return pl.BlockSpec(shape, lambda i, _nd=nd: (0,) * _nd)


# ----------------------------------------------------------------------------
# Fused kernel: all GRU layers + dense + log_softmax in one invocation.
# ----------------------------------------------------------------------------
def _make_fused_gru_kernel(S, B_pad, E_pad, H_pad, C_pad, L, T_chunk):
    H3 = 3 * H_pad

    def kernel(*refs):
        x_ref = refs[0]                                   # (S, B_pad, E_pad) bf16
        layer_refs = [refs[1 + 4 * l: 1 + 4 * (l + 1)] for l in range(L)]
        h0_ref = refs[1 + 4 * L]                          # (L, B_pad, H_pad) f32
        wd_ref = refs[2 + 4 * L]                          # (H_pad, C_pad) bf16
        bd_ref = refs[3 + 4 * L]                          # (1, C_pad) f32
        out_ref = refs[4 + 4 * L]                         # (S, B_pad, C_pad) f32
        hn_ref = refs[5 + 4 * L]                          # (L, B_pad, H_pad) f32
        act = refs[6 + 4 * L]                             # (S, B_pad, H_pad) bf16
        gi_s = refs[7 + 4 * L]                            # (T_chunk, B_pad, 3H) f32

        for l in range(L):
            wih_t_ref, whh_t_ref, bcomb_ref, bhn_ref = layer_refs[l]
            wih_t = wih_t_ref[...]                        # bf16 (in_pad, 3H)
            whh_t = whh_t_ref[...]                        # bf16 (H_pad, 3H)
            bcomb = bcomb_ref[...]                        # f32  (1, 3H)
            # Hoisted out of the time loop (JAX does not CSE broadcast_in_dim).
            bhn_b = jnp.broadcast_to(bhn_ref[...], (B_pad, H_pad))

            in_ref = x_ref if l == 0 else act
            in_dim = E_pad if l == 0 else H_pad

            h = h0_ref[l]                                 # f32 (B_pad, H_pad)

            for c0 in range(0, S, T_chunk):
                c_len = min(T_chunk, S - c0)

                # (1) Hoisted input projection for the whole chunk (bf16 MXU,
                #     f32 accumulation).  bcomb = [b_ir+b_hr, b_iz+b_hz, b_in].
                x_chunk = in_ref[pl.ds(c0, c_len)]
                gi = jnp.dot(x_chunk.reshape(c_len * B_pad, in_dim), wih_t,
                             preferred_element_type=jnp.float32) + bcomb
                gi_s[pl.ds(0, c_len)] = gi.reshape(c_len, B_pad, H3)

                # (2) Serial recurrence: one (B,H)x(H,3H) matmul per step.
                def step(t, h_carry, _whh_t=whh_t, _bhn=bhn_b, _c0=c0):
                    gi_t = gi_s[t]                        # (B_pad, 3H) f32
                    gh = jnp.dot(h_carry.astype(jnp.bfloat16), _whh_t,
                                 preferred_element_type=jnp.float32)
                    r = jax.nn.sigmoid(gi_t[:, :H_pad] + gh[:, :H_pad])
                    z = jax.nn.sigmoid(gi_t[:, H_pad:2 * H_pad]
                                       + gh[:, H_pad:2 * H_pad])
                    n = jnp.tanh(gi_t[:, 2 * H_pad:]
                                 + r * (gh[:, 2 * H_pad:] + _bhn))
                    h_new = n + z * (h_carry - n)         # == (1-z)*n + z*h
                    act[_c0 + t] = h_new.astype(jnp.bfloat16)
                    return h_new

                h = jax.lax.fori_loop(0, c_len, step, h, unroll=min(8, c_len))

            hn_ref[l] = h

        # (3) Dense + log_softmax over all timesteps at once (lane-dense output;
        #     padded classes carry -1e30 bias so exp() -> 0 in the LSE).
        y2d = act[...].reshape(S * B_pad, H_pad)
        logits = jnp.dot(y2d, wd_ref[...],
                         preferred_element_type=jnp.float32) + bd_ref[...]
        m = jnp.max(logits, axis=-1, keepdims=True)
        shifted = logits - m
        lse = jnp.log(jnp.sum(jnp.exp(shifted), axis=-1, keepdims=True))
        out_ref[...] = (shifted - lse).reshape(S, B_pad, C_pad)

    return kernel


# ----------------------------------------------------------------------------
# Forward pass (mirrors GruNN.forward, inference semantics).
# ----------------------------------------------------------------------------
def gru_nn_forward(params, input_data, h_0=None):
    assert input_data.ndim == 2
    S, B = input_data.shape
    L = len(params["gru"])
    H = params["gru"][0]["w_hh"].shape[1]
    E = params["embedding"].shape[1]
    C = params["dense_w"].shape[0]

    B_pad = _round_up(B, 8)
    H_pad = _round_up(H, 128)
    E_pad = _round_up(E, 128)
    C_pad = _round_up(C, 128)
    H3 = 3 * H_pad
    T_chunk = min(S, 128)   # bounds the hoisted-gi scratch slab

    # Embedding lookup (glue gather) + tile-aligned zero padding; cast the MXU
    # operand to bf16 once here.
    x = jnp.take(params["embedding"], input_data, axis=0).astype(jnp.float32)
    x = jnp.pad(x, ((0, 0), (0, B_pad - B), (0, E_pad - E))).astype(jnp.bfloat16)

    if h_0 is None:
        h_0 = jnp.zeros((L, B, H), jnp.float32)
    h0_p = jnp.pad(h_0.astype(jnp.float32),
                   ((0, 0), (0, B_pad - B), (0, H_pad - H)))

    def pad_gate_weight_t(w, rows_pad):
        # w: (3H, in_dim) torch layout -> transposed (rows_pad, 3*H_pad), each
        # gate in its own 128-aligned lane block, zero padding, bf16 operand.
        in_dim = w.shape[1]
        wg = jnp.transpose(w.reshape(3, H, in_dim), (2, 0, 1))     # (in, 3, H)
        wg = jnp.pad(wg, ((0, rows_pad - in_dim), (0, 0), (0, H_pad - H)))
        return wg.reshape(rows_pad, H3).astype(jnp.bfloat16)

    def pad_gate_bias(b):
        bg = jnp.pad(b.reshape(3, H), ((0, 0), (0, H_pad - H)))
        return bg.reshape(1, H3).astype(jnp.float32)

    inputs = [x]
    for l in range(L):
        p = params["gru"][l]
        b_ih, b_hh = p["b_ih"], p["b_hh"]
        # Pre-fold biases: r,z gates get (b_ih + b_hh) in the hoisted projection;
        # the n gate keeps b_hn separate because of the r * (W_hn h + b_hn) term.
        b_comb = jnp.concatenate([b_ih[:2 * H] + b_hh[:2 * H], b_ih[2 * H:]])
        b_hn = b_hh[2 * H:]
        rows_pad = E_pad if l == 0 else H_pad
        inputs += [
            pad_gate_weight_t(p["w_ih"], rows_pad),
            pad_gate_weight_t(p["w_hh"], H_pad),
            pad_gate_bias(b_comb),
            jnp.pad(b_hn.reshape(1, H),
                    ((0, 0), (0, H_pad - H))).astype(jnp.float32),
        ]
    inputs.append(h0_p)

    wd_t = jnp.pad(jnp.transpose(params["dense_w"]),
                   ((0, H_pad - H), (0, C_pad - C))).astype(jnp.bfloat16)
    bd = jnp.concatenate([params["dense_b"],
                          jnp.full((C_pad - C,), -1e30, jnp.float32)]
                         ).reshape(1, C_pad)
    inputs += [wd_t, bd]

    kernel = _make_fused_gru_kernel(S, B_pad, E_pad, H_pad, C_pad, L, T_chunk)

    # Explicit VMEM budget: inputs/outputs (x2 for pipeline buffering) +
    # resident scratch slabs, with headroom; capped at the v7x physical 64 MiB.
    def _nbytes(a):
        return int(a.size) * a.dtype.itemsize
    io_bytes = sum(_nbytes(a) for a in inputs)
    io_bytes += S * B_pad * C_pad * 4 + L * B_pad * H_pad * 4
    scratch_bytes = S * B_pad * H_pad * 2 + T_chunk * B_pad * H3 * 4
    vmem_limit = int(min(64 * 1024 * 1024,
                         max(2 * io_bytes + scratch_bytes + (2 << 20), 16 << 20)))

    logp_p, hn_p = pl.pallas_call(
        kernel,
        out_shape=(jax.ShapeDtypeStruct((S, B_pad, C_pad), jnp.float32),
                   jax.ShapeDtypeStruct((L, B_pad, H_pad), jnp.float32)),
        grid_spec=pltpu.PrefetchScalarGridSpec(
            num_scalar_prefetch=0,
            grid=(1,),
            in_specs=[_full_spec(a.shape) for a in inputs],
            out_specs=(_full_spec((S, B_pad, C_pad)),
                       _full_spec((L, B_pad, H_pad))),
            scratch_shapes=[pltpu.VMEM((S, B_pad, H_pad), jnp.bfloat16),
                            pltpu.VMEM((T_chunk, B_pad, H3), jnp.float32)],
        ),
        compiler_params=pltpu.CompilerParams(
            dimension_semantics=("arbitrary",),
            vmem_limit_bytes=vmem_limit),
    )(*inputs)

    output = logp_p[:, :B, :C]        # strip batch / class padding
    h_n = hn_p[:, :B, :H]             # strip batch / hidden padding
    return output, h_n


# ----------------------------------------------------------------------------
# Parameter construction (deterministic, PyTorch-style uniform init shapes).
# ----------------------------------------------------------------------------
def init_params(key, num_class, hid_size, hid_layers, embedding_size):
    keys = jax.random.split(key, 4 + 4 * hid_layers)
    k = iter(keys)
    bound = 1.0 / jnp.sqrt(hid_size)

    params = {
        "embedding": jax.random.normal(next(k), (num_class, embedding_size),
                                       jnp.float32),
        "gru": [],
        "dense_w": jax.random.uniform(next(k), (num_class, hid_size),
                                      jnp.float32, -bound, bound),
        "dense_b": jax.random.uniform(next(k), (num_class,),
                                      jnp.float32, -bound, bound),
    }
    for layer in range(hid_layers):
        in_size = embedding_size if layer == 0 else hid_size
        params["gru"].append({
            "w_ih": jax.random.uniform(next(k), (3 * hid_size, in_size),
                                       jnp.float32, -bound, bound),
            "w_hh": jax.random.uniform(next(k), (3 * hid_size, hid_size),
                                       jnp.float32, -bound, bound),
            "b_ih": jax.random.uniform(next(k), (3 * hid_size,),
                                       jnp.float32, -bound, bound),
            "b_hh": jax.random.uniform(next(k), (3 * hid_size,),
                                       jnp.float32, -bound, bound),
        })
    return params


if __name__ == "__main__":
    num_class = 32
    embedding_size = 16
    hid_size = 32
    hid_layers = 2
    seq_len = 8
    batch = 4

    key = jax.random.PRNGKey(0)
    pkey, dkey = jax.random.split(key)
    params = init_params(pkey, num_class, hid_size, hid_layers, embedding_size)

    input_data = jax.random.randint(dkey, (seq_len, batch), 0, num_class,
                                    dtype=jnp.int32)

    forward = jax.jit(gru_nn_forward)
    output, h_n = forward(params, input_data)
    jax.block_until_ready(output)
    jax.block_until_ready(h_n)

    assert output.shape == (seq_len, batch, num_class)
    assert h_n.shape == (hid_layers, batch, hid_size)
    # log_softmax sanity: each row sums to ~1 in probability space.
    assert jnp.allclose(jnp.sum(jnp.exp(output), axis=-1), 1.0, atol=1e-3)

    print("KERNEL_OK")
</pallas_src>

<mosaic_0001>
module attributes {stable_mosaic.version = 11 : i64} {
  func.func @kernel(%arg0: i32, %arg1: memref<8x8x128xbf16, #tpu.memory_space<vmem>>, %arg2: memref<128x384xbf16, #tpu.memory_space<vmem>>, %arg3: memref<128x384xbf16, #tpu.memory_space<vmem>>, %arg4: memref<1x384xf32, #tpu.memory_space<vmem>>, %arg5: memref<1x128xf32, #tpu.memory_space<vmem>>, %arg6: memref<128x384xbf16, #tpu.memory_space<vmem>>, %arg7: memref<128x384xbf16, #tpu.memory_space<vmem>>, %arg8: memref<1x384xf32, #tpu.memory_space<vmem>>, %arg9: memref<1x128xf32, #tpu.memory_space<vmem>>, %arg10: memref<2x8x128xf32, #tpu.memory_space<vmem>>, %arg11: memref<128x128xbf16, #tpu.memory_space<vmem>>, %arg12: memref<1x128xf32, #tpu.memory_space<vmem>>, %arg13: memref<8x8x128xf32, #tpu.memory_space<vmem>>, %arg14: memref<2x8x128xf32, #tpu.memory_space<vmem>>, %arg15: memref<8x8x128xbf16, #tpu.memory_space<vmem>>, %arg16: memref<8x8x384xf32, #tpu.memory_space<vmem>>) attributes {dimension_semantics = [#tpu.dimension_semantics<arbitrary>], iteration_bounds = array<i64: 1>, scalar_prefetch = 0 : i64, scratch_operands = 2 : i64, tpu.core_type = #tpu.core_type<tc>, window_params = [{pipeline_mode = #tpu.pipeline_mode<synchronous>, transform_indices = @transform_0, window_bounds = array<i64: 8, 8, 128>}, {pipeline_mode = #tpu.pipeline_mode<synchronous>, transform_indices = @transform_1, window_bounds = array<i64: 128, 384>}, {pipeline_mode = #tpu.pipeline_mode<synchronous>, transform_indices = @transform_2, window_bounds = array<i64: 128, 384>}, {pipeline_mode = #tpu.pipeline_mode<synchronous>, transform_indices = @transform_3, window_bounds = array<i64: 1, 384>}, {pipeline_mode = #tpu.pipeline_mode<synchronous>, transform_indices = @transform_4, window_bounds = array<i64: 1, 128>}, {pipeline_mode = #tpu.pipeline_mode<synchronous>, transform_indices = @transform_5, window_bounds = array<i64: 128, 384>}, {pipeline_mode = #tpu.pipeline_mode<synchronous>, transform_indices = @transform_6, window_bounds = array<i64: 128, 384>}, {pipeline_mode = #tpu.pipeline_mode<synchronous>, transform_indices = @transform_7, window_bounds = array<i64: 1, 384>}, {pipeline_mode = #tpu.pipeline_mode<synchronous>, transform_indices = @transform_8, window_bounds = array<i64: 1, 128>}, {pipeline_mode = #tpu.pipeline_mode<synchronous>, transform_indices = @transform_9, window_bounds = array<i64: 2, 8, 128>}, {pipeline_mode = #tpu.pipeline_mode<synchronous>, transform_indices = @transform_10, window_bounds = array<i64: 128, 128>}, {pipeline_mode = #tpu.pipeline_mode<synchronous>, transform_indices = @transform_11, window_bounds = array<i64: 1, 128>}, {pipeline_mode = #tpu.pipeline_mode<synchronous>, transform_indices = @transform_12, window_bounds = array<i64: 8, 8, 128>}, {pipeline_mode = #tpu.pipeline_mode<synchronous>, transform_indices = @transform_13, window_bounds = array<i64: 2, 8, 128>}]} {
    %c0 = arith.constant 0 : index
    %c0_0 = arith.constant 0 : index
    %0 = vector.load %arg2[%c0, %c0_0] : memref<128x384xbf16, #tpu.memory_space<vmem>>, vector<128x384xbf16>
    %c0_1 = arith.constant 0 : index
    %c0_2 = arith.constant 0 : index
    %1 = vector.load %arg3[%c0_1, %c0_2] : memref<128x384xbf16, #tpu.memory_space<vmem>>, vector<128x384xbf16>
    %c0_3 = arith.constant 0 : index
    %c0_4 = arith.constant 0 : index
    %2 = vector.load %arg4[%c0_3, %c0_4] : memref<1x384xf32, #tpu.memory_space<vmem>>, vector<1x384xf32>
    %c0_5 = arith.constant 0 : index
    %c0_6 = arith.constant 0 : index
    %3 = vector.load %arg5[%c0_5, %c0_6] : memref<1x128xf32, #tpu.memory_space<vmem>>, vector<1x128xf32>
    %4 = vector.shape_cast %3 : vector<1x128xf32> to vector<1x128xf32>
    %5 = vector.broadcast %4 : vector<1x128xf32> to vector<8x128xf32>
    %c0_7 = arith.constant 0 : index
    %c0_8 = arith.constant 0 : index
    %c0_9 = arith.constant 0 : index
    %6 = vector.load %arg10[%c0_7, %c0_8, %c0_9] : memref<2x8x128xf32, #tpu.memory_space<vmem>>, vector<1x8x128xf32>
    %7 = vector.shape_cast %6 : vector<1x8x128xf32> to vector<8x128xf32>
    %c0_10 = arith.constant 0 : index
    %c0_11 = arith.constant 0 : index
    %c0_12 = arith.constant 0 : index
    %8 = vector.load %arg1[%c0_10, %c0_11, %c0_12] : memref<8x8x128xbf16, #tpu.memory_space<vmem>>, vector<8x8x128xbf16>
    %9 = vector.shape_cast %8 : vector<8x8x128xbf16> to vector<64x128xbf16>
    %cst = arith.constant dense<0.000000e+00> : vector<64x384xf32>
    %10 = tpu.matmul %9, %0, %cst {dimension_numbers = #tpu.dot_dimension_numbers<[1], [0], [0], [1], [0, 0, 1, 1], [], []>} : vector<64x128xbf16>, vector<128x384xbf16>, vector<64x384xf32> -> vector<64x384xf32>
    %11 = vector.broadcast %2 : vector<1x384xf32> to vector<64x384xf32>
    %12 = arith.addf %10, %11 : vector<64x384xf32>
    %13 = vector.shape_cast %12 : vector<64x384xf32> to vector<8x8x384xf32>
    %c0_13 = arith.constant 0 : index
    %c0_14 = arith.constant 0 : index
    %c0_15 = arith.constant 0 : index
    %14 = vector.load %arg16[%c0_13, %c0_14, %c0_15] : memref<8x8x384xf32, #tpu.memory_space<vmem>>, vector<8x8x384xf32>
    tpu.vector_store %arg16[%c0_13, %c0_14, %c0_15], %13 {strides = array<i32>} : memref<8x8x384xf32, #tpu.memory_space<vmem>>, vector<8x8x384xf32>,
    %c0_i32 = arith.constant 0 : i32
    %15 = arith.index_cast %c0_i32 : i32 to index
    %c0_16 = arith.constant 0 : index
    %c0_17 = arith.constant 0 : index
    %16 = vector.load %arg16[%15, %c0_16, %c0_17] : memref<8x8x384xf32, #tpu.memory_space<vmem>>, vector<1x8x384xf32>
    %17 = vector.shape_cast %16 : vector<1x8x384xf32> to vector<8x384xf32>
    %18 = arith.truncf %7 : vector<8x128xf32> to vector<8x128xbf16>
    %cst_18 = arith.constant dense<0.000000e+00> : vector<8x384xf32>
    %19 = tpu.matmul %18, %1, %cst_18 {dimension_numbers = #tpu.dot_dimension_numbers<[1], [0], [0], [1], [0, 0, 1, 1], [], []>} : vector<8x128xbf16>, vector<128x384xbf16>, vector<8x384xf32> -> vector<8x384xf32>
    %20 = vector.extract_strided_slice %17 {offsets = [0, 0], sizes = [8, 128], strides = [1, 1]} : vector<8x384xf32> to vector<8x128xf32>
    %21 = vector.extract_strided_slice %19 {offsets = [0, 0], sizes = [8, 128], strides = [1, 1]} : vector<8x384xf32> to vector<8x128xf32>
    %22 = arith.addf %20, %21 : vector<8x128xf32>
    %23 = arith.negf %22 : vector<8x128xf32>
    %24 = math.exp %23 : vector<8x128xf32>
    %cst_19 = arith.constant 1.000000e+00 : f32
    %25 = vector.broadcast %cst_19 : f32 to vector<8x128xf32>
    %26 = arith.addf %25, %24 : vector<8x128xf32>
    %27 = arith.divf %25, %26 : vector<8x128xf32>
    %28 = vector.extract_strided_slice %17 {offsets = [0, 128], sizes = [8, 128], strides = [1, 1]} : vector<8x384xf32> to vector<8x128xf32>
    %29 = vector.extract_strided_slice %19 {offsets = [0, 128], sizes = [8, 128], strides = [1, 1]} : vector<8x384xf32> to vector<8x128xf32>
    %30 = arith.addf %28, %29 : vector<8x128xf32>
    %31 = arith.negf %30 : vector<8x128xf32>
    %32 = math.exp %31 : vector<8x128xf32>
    %cst_20 = arith.constant 1.000000e+00 : f32
    %33 = vector.broadcast %cst_20 : f32 to vector<8x128xf32>
    %34 = arith.addf %33, %32 : vector<8x128xf32>
    %35 = arith.divf %33, %34 : vector<8x128xf32>
    %36 = vector.extract_strided_slice %17 {offsets = [0, 256], sizes = [8, 128], strides = [1, 1]} : vector<8x384xf32> to vector<8x128xf32>
    %37 = vector.extract_strided_slice %19 {offsets = [0, 256], sizes = [8, 128], strides = [1, 1]} : vector<8x384xf32> to vector<8x128xf32>
    %38 = arith.addf %37, %5 : vector<8x128xf32>
    %39 = arith.mulf %27, %38 : vector<8x128xf32>
    %40 = arith.addf %36, %39 : vector<8x128xf32>
    %41 = math.tanh %40 : vector<8x128xf32>
    %42 = arith.subf %7, %41 : vector<8x128xf32>
    %43 = arith.mulf %35, %42 : vector<8x128xf32>
    %44 = arith.addf %41, %43 : vector<8x128xf32>
    %45 = arith.truncf %44 : vector<8x128xf32> to vector<8x128xbf16>
    %c0_i32_21 = arith.constant 0 : i32
    %46 = arith.addi %c0_i32_21, %c0_i32 : i32
    %47 = arith.index_cast %46 : i32 to index
    %c0_22 = arith.constant 0 : index
    %c0_23 = arith.constant 0 : index
    %48 = vector.load %arg15[%47, %c0_22, %c0_23] : memref<8x8x128xbf16, #tpu.memory_space<vmem>>, vector<1x8x128xbf16>
    %49 = vector.shape_cast %48 : vector<1x8x128xbf16> to vector<8x128xbf16>
    %50 = vector.shape_cast %45 : vector<8x128xbf16> to vector<1x8x128xbf16>
    tpu.vector_store %arg15[%47, %c0_22, %c0_23], %50 {strides = array<i32>} : memref<8x8x128xbf16, #tpu.memory_space<vmem>>, vector<1x8x128xbf16>,
    %c1_i32 = arith.constant 1 : i32
    %51 = arith.index_cast %c1_i32 : i32 to index
    %c0_24 = arith.constant 0 : index
    %c0_25 = arith.constant 0 : index
    %52 = vector.load %arg16[%51, %c0_24, %c0_25] : memref<8x8x384xf32, #tpu.memory_space<vmem>>, vector<1x8x384xf32>
    %53 = vector.shape_cast %52 : vector<1x8x384xf32> to vector<8x384xf32>
    %54 = arith.truncf %44 : vector<8x128xf32> to vector<8x128xbf16>
    %cst_26 = arith.constant dense<0.000000e+00> : vector<8x384xf32>
    %55 = tpu.matmul %54, %1, %cst_26 {dimension_numbers = #tpu.dot_dimension_numbers<[1], [0], [0], [1], [0, 0, 1, 1], [], []>} : vector<8x128xbf16>, vector<128x384xbf16>, vector<8x384xf32> -> vector<8x384xf32>
    %56 = vector.extract_strided_slice %53 {offsets = [0, 0], sizes = [8, 128], strides = [1, 1]} : vector<8x384xf32> to vector<8x128xf32>
    %57 = vector.extract_strided_slice %55 {offsets = [0, 0], sizes = [8, 128], strides = [1, 1]} : vector<8x384xf32> to vector<8x128xf32>
    %58 = arith.addf %56, %57 : vector<8x128xf32>
    %59 = arith.negf %58 : vector<8x128xf32>
    %60 = math.exp %59 : vector<8x128xf32>
    %cst_27 = arith.constant 1.000000e+00 : f32
    %61 = vector.broadcast %cst_27 : f32 to vector<8x128xf32>
    %62 = arith.addf %61, %60 : vector<8x128xf32>
    %63 = arith.divf %61, %62 : vector<8x128xf32>
    %64 = vector.extract_strided_slice %53 {offsets = [0, 128], sizes = [8, 128], strides = [1, 1]} : vector<8x384xf32> to vector<8x128xf32>
    %65 = vector.extract_strided_slice %55 {offsets = [0, 128], sizes = [8, 128], strides = [1, 1]} : vector<8x384xf32> to vector<8x128xf32>
    %66 = arith.addf %64, %65 : vector<8x128xf32>
    %67 = arith.negf %66 : vector<8x128xf32>
    %68 = math.exp %67 : vector<8x128xf32>
    %cst_28 = arith.constant 1.000000e+00 : f32
    %69 = vector.broadcast %cst_28 : f32 to vector<8x128xf32>
    %70 = arith.addf %69, %68 : vector<8x128xf32>
    %71 = arith.divf %69, %70 : vector<8x128xf32>
    %72 = vector.extract_strided_slice %53 {offsets = [0, 256], sizes = [8, 128], strides = [1, 1]} : vector<8x384xf32> to vector<8x128xf32>
    %73 = vector.extract_strided_slice %55 {offsets = [0, 256], sizes = [8, 128], strides = [1, 1]} : vector<8x384xf32> to vector<8x128xf32>
    %74 = arith.addf %73, %5 : vector<8x128xf32>
    %75 = arith.mulf %63, %74 : vector<8x128xf32>
    %76 = arith.addf %72, %75 : vector<8x128xf32>
    %77 = math.tanh %76 : vector<8x128xf32>
    %78 = arith.subf %44, %77 : vector<8x128xf32>
    %79 = arith.mulf %71, %78 : vector<8x128xf32>
    %80 = arith.addf %77, %79 : vector<8x128xf32>
    %81 = arith.truncf %80 : vector<8x128xf32> to vector<8x128xbf16>
    %c0_i32_29 = arith.constant 0 : i32
    %82 = arith.addi %c0_i32_29, %c1_i32 : i32
    %83 = arith.index_cast %82 : i32 to index
    %c0_30 = arith.constant 0 : index
    %c0_31 = arith.constant 0 : index
    %84 = vector.load %arg15[%83, %c0_30, %c0_31] : memref<8x8x128xbf16, #tpu.memory_space<vmem>>, vector<1x8x128xbf16>
    %85 = vector.shape_cast %84 : vector<1x8x128xbf16> to vector<8x128xbf16>
    %86 = vector.shape_cast %81 : vector<8x128xbf16> to vector<1x8x128xbf16>
    tpu.vector_store %arg15[%83, %c0_30, %c0_31], %86 {strides = array<i32>} : memref<8x8x128xbf16, #tpu.memory_space<vmem>>, vector<1x8x128xbf16>,
    %c2_i32 = arith.constant 2 : i32
    %87 = arith.index_cast %c2_i32 : i32 to index
    %c0_32 = arith.constant 0 : index
    %c0_33 = arith.constant 0 : index
    %88 = vector.load %arg16[%87, %c0_32, %c0_33] : memref<8x8x384xf32, #tpu.memory_space<vmem>>, vector<1x8x384xf32>
    %89 = vector.shape_cast %88 : vector<1x8x384xf32> to vector<8x384xf32>
    %90 = arith.truncf %80 : vector<8x128xf32> to vector<8x128xbf16>
    %cst_34 = arith.constant dense<0.000000e+00> : vector<8x384xf32>
    %91 = tpu.matmul %90, %1, %cst_34 {dimension_numbers = #tpu.dot_dimension_numbers<[1], [0], [0], [1], [0, 0, 1, 1], [], []>} : vector<8x128xbf16>, vector<128x384xbf16>, vector<8x384xf32> -> vector<8x384xf32>
    %92 = vector.extract_strided_slice %89 {offsets = [0, 0], sizes = [8, 128], strides = [1, 1]} : vector<8x384xf32> to vector<8x128xf32>
    %93 = vector.extract_strided_slice %91 {offsets = [0, 0], sizes = [8, 128], strides = [1, 1]} : vector<8x384xf32> to vector<8x128xf32>
    %94 = arith.addf %92, %93 : vector<8x128xf32>
    %95 = arith.negf %94 : vector<8x128xf32>
    %96 = math.exp %95 : vector<8x128xf32>
    %cst_35 = arith.constant 1.000000e+00 : f32
    %97 = vector.broadcast %cst_35 : f32 to vector<8x128xf32>
    %98 = arith.addf %97, %96 : vector<8x128xf32>
    %99 = arith.divf %97, %98 : vector<8x128xf32>
    %100 = vector.extract_strided_slice %89 {offsets = [0, 128], sizes = [8, 128], strides = [1, 1]} : vector<8x384xf32> to vector<8x128xf32>
    %101 = vector.extract_strided_slice %91 {offsets = [0, 128], sizes = [8, 128], strides = [1, 1]} : vector<8x384xf32> to vector<8x128xf32>
    %102 = arith.addf %100, %101 : vector<8x128xf32>
    %103 = arith.negf %102 : vector<8x128xf32>
    %104 = math.exp %103 : vector<8x128xf32>
    %cst_36 = arith.constant 1.000000e+00 : f32
    %105 = vector.broadcast %cst_36 : f32 to vector<8x128xf32>
    %106 = arith.addf %105, %104 : vector<8x128xf32>
    %107 = arith.divf %105, %106 : vector<8x128xf32>
    %108 = vector.extract_strided_slice %89 {offsets = [0, 256], sizes = [8, 128], strides = [1, 1]} : vector<8x384xf32> to vector<8x128xf32>
    %109 = vector.extract_strided_slice %91 {offsets = [0, 256], sizes = [8, 128], strides = [1, 1]} : vector<8x384xf32> to vector<8x128xf32>
    %110 = arith.addf %109, %5 : vector<8x128xf32>
    %111 = arith.mulf %99, %110 : vector<8x128xf32>
    %112 = arith.addf %108, %111 : vector<8x128xf32>
    %113 = math.tanh %112 : vector<8x128xf32>
    %114 = arith.subf %80, %113 : vector<8x128xf32>
    %115 = arith.mulf %107, %114 : vector<8x128xf32>
    %116 = arith.addf %113, %115 : vector<8x128xf32>
    %117 = arith.truncf %116 : vector<8x128xf32> to vector<8x128xbf16>
    %c0_i32_37 = arith.constant 0 : i32
    %118 = arith.addi %c0_i32_37, %c2_i32 : i32
    %119 = arith.index_cast %118 : i32 to index
    %c0_38 = arith.constant 0 : index
    %c0_39 = arith.constant 0 : index
    %120 = vector.load %arg15[%119, %c0_38, %c0_39] : memref<8x8x128xbf16, #tpu.memory_space<vmem>>, vector<1x8x128xbf16>
    %121 = vector.shape_cast %120 : vector<1x8x128xbf16> to vector<8x128xbf16>
    %122 = vector.shape_cast %117 : vector<8x128xbf16> to vector<1x8x128xbf16>
    tpu.vector_store %arg15[%119, %c0_38, %c0_39], %122 {strides = array<i32>} : memref<8x8x128xbf16, #tpu.memory_space<vmem>>, vector<1x8x128xbf16>,
    %c3_i32 = arith.constant 3 : i32
    %123 = arith.index_cast %c3_i32 : i32 to index
    %c0_40 = arith.constant 0 : index
    %c0_41 = arith.constant 0 : index
    %124 = vector.load %arg16[%123, %c0_40, %c0_41] : memref<8x8x384xf32, #tpu.memory_space<vmem>>, vector<1x8x384xf32>
    %125 = vector.shape_cast %124 : vector<1x8x384xf32> to vector<8x384xf32>
    %126 = arith.truncf %116 : vector<8x128xf32> to vector<8x128xbf16>
    %cst_42 = arith.constant dense<0.000000e+00> : vector<8x384xf32>
    %127 = tpu.matmul %126, %1, %cst_42 {dimension_numbers = #tpu.dot_dimension_numbers<[1], [0], [0], [1], [0, 0, 1, 1], [], []>} : vector<8x128xbf16>, vector<128x384xbf16>, vector<8x384xf32> -> vector<8x384xf32>
    %128 = vector.extract_strided_slice %125 {offsets = [0, 0], sizes = [8, 128], strides = [1, 1]} : vector<8x384xf32> to vector<8x128xf32>
    %129 = vector.extract_strided_slice %127 {offsets = [0, 0], sizes = [8, 128], strides = [1, 1]} : vector<8x384xf32> to vector<8x128xf32>
    %130 = arith.addf %128, %129 : vector<8x128xf32>
    %131 = arith.negf %130 : vector<8x128xf32>
    %132 = math.exp %131 : vector<8x128xf32>
    %cst_43 = arith.constant 1.000000e+00 : f32
    %133 = vector.broadcast %cst_43 : f32 to vector<8x128xf32>
    %134 = arith.addf %133, %132 : vector<8x128xf32>
    %135 = arith.divf %133, %134 : vector<8x128xf32>
    %136 = vector.extract_strided_slice %125 {offsets = [0, 128], sizes = [8, 128], strides = [1, 1]} : vector<8x384xf32> to vector<8x128xf32>
    %137 = vector.extract_strided_slice %127 {offsets = [0, 128], sizes = [8, 128], strides = [1, 1]} : vector<8x384xf32> to vector<8x128xf32>
    %138 = arith.addf %136, %137 : vector<8x128xf32>
    %139 = arith.negf %138 : vector<8x128xf32>
    %140 = math.exp %139 : vector<8x128xf32>
    %cst_44 = arith.constant 1.000000e+00 : f32
    %141 = vector.broadcast %cst_44 : f32 to vector<8x128xf32>
    %142 = arith.addf %141, %140 : vector<8x128xf32>
    %143 = arith.divf %141, %142 : vector<8x128xf32>
    %144 = vector.extract_strided_slice %125 {offsets = [0, 256], sizes = [8, 128], strides = [1, 1]} : vector<8x384xf32> to vector<8x128xf32>
    %145 = vector.extract_strided_slice %127 {offsets = [0, 256], sizes = [8, 128], strides = [1, 1]} : vector<8x384xf32> to vector<8x128xf32>
    %146 = arith.addf %145, %5 : vector<8x128xf32>
    %147 = arith.mulf %135, %146 : vector<8x128xf32>
    %148 = arith.addf %144, %147 : vector<8x128xf32>
    %149 = math.tanh %148 : vector<8x128xf32>
    %150 = arith.subf %116, %149 : vector<8x128xf32>
    %151 = arith.mulf %143, %150 : vector<8x128xf32>
    %152 = arith.addf %149, %151 : vector<8x128xf32>
    %153 = arith.truncf %152 : vector<8x128xf32> to vector<8x128xbf16>
    %c0_i32_45 = arith.constant 0 : i32
    %154 = arith.addi %c0_i32_45, %c3_i32 : i32
    %155 = arith.index_cast %154 : i32 to index
    %c0_46 = arith.constant 0 : index
    %c0_47 = arith.constant 0 : index
    %156 = vector.load %arg15[%155, %c0_46, %c0_47] : memref<8x8x128xbf16, #tpu.memory_space<vmem>>, vector<1x8x128xbf16>
    %157 = vector.shape_cast %156 : vector<1x8x128xbf16> to vector<8x128xbf16>
    %158 = vector.shape_cast %153 : vector<8x128xbf16> to vector<1x8x128xbf16>
    tpu.vector_store %arg15[%155, %c0_46, %c0_47], %158 {strides = array<i32>} : memref<8x8x128xbf16, #tpu.memory_space<vmem>>, vector<1x8x128xbf16>,
    %c4_i32 = arith.constant 4 : i32
    %159 = arith.index_cast %c4_i32 : i32 to index
    %c0_48 = arith.constant 0 : index
    %c0_49 = arith.constant 0 : index
    %160 = vector.load %arg16[%159, %c0_48, %c0_49] : memref<8x8x384xf32, #tpu.memory_space<vmem>>, vector<1x8x384xf32>
    %161 = vector.shape_cast %160 : vector<1x8x384xf32> to vector<8x384xf32>
    %162 = arith.truncf %152 : vector<8x128xf32> to vector<8x128xbf16>
    %cst_50 = arith.constant dense<0.000000e+00> : vector<8x384xf32>
    %163 = tpu.matmul %162, %1, %cst_50 {dimension_numbers = #tpu.dot_dimension_numbers<[1], [0], [0], [1], [0, 0, 1, 1], [], []>} : vector<8x128xbf16>, vector<128x384xbf16>, vector<8x384xf32> -> vector<8x384xf32>
    %164 = vector.extract_strided_slice %161 {offsets = [0, 0], sizes = [8, 128], strides = [1, 1]} : vector<8x384xf32> to vector<8x128xf32>
    %165 = vector.extract_strided_slice %163 {offsets = [0, 0], sizes = [8, 128], strides = [1, 1]} : vector<8x384xf32> to vector<8x128xf32>
    %166 = arith.addf %164, %165 : vector<8x128xf32>
    %167 = arith.negf %166 : vector<8x128xf32>
    %168 = math.exp %167 : vector<8x128xf32>
    %cst_51 = arith.constant 1.000000e+00 : f32
    %169 = vector.broadcast %cst_51 : f32 to vector<8x128xf32>
    %170 = arith.addf %169, %168 : vector<8x128xf32>
    %171 = arith.divf %169, %170 : vector<8x128xf32>
    %172 = vector.extract_strided_slice %161 {offsets = [0, 128], sizes = [8, 128], strides = [1, 1]} : vector<8x384xf32> to vector<8x128xf32>
    %173 = vector.extract_strided_slice %163 {offsets = [0, 128], sizes = [8, 128], strides = [1, 1]} : vector<8x384xf32> to vector<8x128xf32>
    %174 = arith.addf %172, %173 : vector<8x128xf32>
    %175 = arith.negf %174 : vector<8x128xf32>
    %176 = math.exp %175 : vector<8x128xf32>
    %cst_52 = arith.constant 1.000000e+00 : f32
    %177 = vector.broadcast %cst_52 : f32 to vector<8x128xf32>
    %178 = arith.addf %177, %176 : vector<8x128xf32>
    %179 = arith.divf %177, %178 : vector<8x128xf32>
    %180 = vector.extract_strided_slice %161 {offsets = [0, 256], sizes = [8, 128], strides = [1, 1]} : vector<8x384xf32> to vector<8x128xf32>
    %181 = vector.extract_strided_slice %163 {offsets = [0, 256], sizes = [8, 128], strides = [1, 1]} : vector<8x384xf32> to vector<8x128xf32>
    %182 = arith.addf %181, %5 : vector<8x128xf32>
    %183 = arith.mulf %171, %182 : vector<8x128xf32>
    %184 = arith.addf %180, %183 : vector<8x128xf32>
    %185 = math.tanh %184 : vector<8x128xf32>
    %186 = arith.subf %152, %185 : vector<8x128xf32>
    %187 = arith.mulf %179, %186 : vector<8x128xf32>
    %188 = arith.addf %185, %187 : vector<8x128xf32>
    %189 = arith.truncf %188 : vector<8x128xf32> to vector<8x128xbf16>
    %c0_i32_53 = arith.constant 0 : i32
    %190 = arith.addi %c0_i32_53, %c4_i32 : i32
    %191 = arith.index_cast %190 : i32 to index
    %c0_54 = arith.constant 0 : index
    %c0_55 = arith.constant 0 : index
    %192 = vector.load %arg15[%191, %c0_54, %c0_55] : memref<8x8x128xbf16, #tpu.memory_space<vmem>>, vector<1x8x128xbf16>
    %193 = vector.shape_cast %192 : vector<1x8x128xbf16> to vector<8x128xbf16>
    %194 = vector.shape_cast %189 : vector<8x128xbf16> to vector<1x8x128xbf16>
    tpu.vector_store %arg15[%191, %c0_54, %c0_55], %194 {strides = array<i32>} : memref<8x8x128xbf16, #tpu.memory_space<vmem>>, vector<1x8x128xbf16>,
    %c5_i32 = arith.constant 5 : i32
    %195 = arith.index_cast %c5_i32 : i32 to index
    %c0_56 = arith.constant 0 : index
    %c0_57 = arith.constant 0 : index
    %196 = vector.load %arg16[%195, %c0_56, %c0_57] : memref<8x8x384xf32, #tpu.memory_space<vmem>>, vector<1x8x384xf32>
    %197 = vector.shape_cast %196 : vector<1x8x384xf32> to vector<8x384xf32>
    %198 = arith.truncf %188 : vector<8x128xf32> to vector<8x128xbf16>
    %cst_58 = arith.constant dense<0.000000e+00> : vector<8x384xf32>
    %199 = tpu.matmul %198, %1, %cst_58 {dimension_numbers = #tpu.dot_dimension_numbers<[1], [0], [0], [1], [0, 0, 1, 1], [], []>} : vector<8x128xbf16>, vector<128x384xbf16>, vector<8x384xf32> -> vector<8x384xf32>
    %200 = vector.extract_strided_slice %197 {offsets = [0, 0], sizes = [8, 128], strides = [1, 1]} : vector<8x384xf32> to vector<8x128xf32>
    %201 = vector.extract_strided_slice %199 {offsets = [0, 0], sizes = [8, 128], strides = [1, 1]} : vector<8x384xf32> to vector<8x128xf32>
    %202 = arith.addf %200, %201 : vector<8x128xf32>
    %203 = arith.negf %202 : vector<8x128xf32>
    %204 = math.exp %203 : vector<8x128xf32>
    %cst_59 = arith.constant 1.000000e+00 : f32
    %205 = vector.broadcast %cst_59 : f32 to vector<8x128xf32>
    %206 = arith.addf %205, %204 : vector<8x128xf32>
    %207 = arith.divf %205, %206 : vector<8x128xf32>
    %208 = vector.extract_strided_slice %197 {offsets = [0, 128], sizes = [8, 128], strides = [1, 1]} : vector<8x384xf32> to vector<8x128xf32>
    %209 = vector.extract_strided_slice %199 {offsets = [0, 128], sizes = [8, 128], strides = [1, 1]} : vector<8x384xf32> to vector<8x128xf32>
    %210 = arith.addf %208, %209 : vector<8x128xf32>
    %211 = arith.negf %210 : vector<8x128xf32>
    %212 = math.exp %211 : vector<8x128xf32>
    %cst_60 = arith.constant 1.000000e+00 : f32
    %213 = vector.broadcast %cst_60 : f32 to vector<8x128xf32>
    %214 = arith.addf %213, %212 : vector<8x128xf32>
    %215 = arith.divf %213, %214 : vector<8x128xf32>
    %216 = vector.extract_strided_slice %197 {offsets = [0, 256], sizes = [8, 128], strides = [1, 1]} : vector<8x384xf32> to vector<8x128xf32>
    %217 = vector.extract_strided_slice %199 {offsets = [0, 256], sizes = [8, 128], strides = [1, 1]} : vector<8x384xf32> to vector<8x128xf32>
    %218 = arith.addf %217, %5 : vector<8x128xf32>
    %219 = arith.mulf %207, %218 : vector<8x128xf32>
    %220 = arith.addf %216, %219 : vector<8x128xf32>
    %221 = math.tanh %220 : vector<8x128xf32>
    %222 = arith.subf %188, %221 : vector<8x128xf32>
    %223 = arith.mulf %215, %222 : vector<8x128xf32>
    %224 = arith.addf %221, %223 : vector<8x128xf32>
    %225 = arith.truncf %224 : vector<8x128xf32> to vector<8x128xbf16>
    %c0_i32_61 = arith.constant 0 : i32
    %226 = arith.addi %c0_i32_61, %c5_i32 : i32
    %227 = arith.index_cast %226 : i32 to index
    %c0_62 = arith.constant 0 : index
    %c0_63 = arith.constant 0 : index
    %228 = vector.load %arg15[%227, %c0_62, %c0_63] : memref<8x8x128xbf16, #tpu.memory_space<vmem>>, vector<1x8x128xbf16>
    %229 = vector.shape_cast %228 : vector<1x8x128xbf16> to vector<8x128xbf16>
    %230 = vector.shape_cast %225 : vector<8x128xbf16> to vector<1x8x128xbf16>
    tpu.vector_store %arg15[%227, %c0_62, %c0_63], %230 {strides = array<i32>} : memref<8x8x128xbf16, #tpu.memory_space<vmem>>, vector<1x8x128xbf16>,
    %c6_i32 = arith.constant 6 : i32
    %231 = arith.index_cast %c6_i32 : i32 to index
    %c0_64 = arith.constant 0 : index
    %c0_65 = arith.constant 0 : index
    %232 = vector.load %arg16[%231, %c0_64, %c0_65] : memref<8x8x384xf32, #tpu.memory_space<vmem>>, vector<1x8x384xf32>
    %233 = vector.shape_cast %232 : vector<1x8x384xf32> to vector<8x384xf32>
    %234 = arith.truncf %224 : vector<8x128xf32> to vector<8x128xbf16>
    %cst_66 = arith.constant dense<0.000000e+00> : vector<8x384xf32>
    %235 = tpu.matmul %234, %1, %cst_66 {dimension_numbers = #tpu.dot_dimension_numbers<[1], [0], [0], [1], [0, 0, 1, 1], [], []>} : vector<8x128xbf16>, vector<128x384xbf16>, vector<8x384xf32> -> vector<8x384xf32>
    %236 = vector.extract_strided_slice %233 {offsets = [0, 0], sizes = [8, 128], strides = [1, 1]} : vector<8x384xf32> to vector<8x128xf32>
    %237 = vector.extract_strided_slice %235 {offsets = [0, 0], sizes = [8, 128], strides = [1, 1]} : vector<8x384xf32> to vector<8x128xf32>
    %238 = arith.addf %236, %237 : vector<8x128xf32>
    %239 = arith.negf %238 : vector<8x128xf32>
    %240 = math.exp %239 : vector<8x128xf32>
    %cst_67 = arith.constant 1.000000e+00 : f32
    %241 = vector.broadcast %cst_67 : f32 to vector<8x128xf32>
    %242 = arith.addf %241, %240 : vector<8x128xf32>
    %243 = arith.divf %241, %242 : vector<8x128xf32>
    %244 = vector.extract_strided_slice %233 {offsets = [0, 128], sizes = [8, 128], strides = [1, 1]} : vector<8x384xf32> to vector<8x128xf32>
    %245 = vector.extract_strided_slice %235 {offsets = [0, 128], sizes = [8, 128], strides = [1, 1]} : vector<8x384xf32> to vector<8x128xf32>
    %246 = arith.addf %244, %245 : vector<8x128xf32>
    %247 = arith.negf %246 : vector<8x128xf32>
    %248 = math.exp %247 : vector<8x128xf32>
    %cst_68 = arith.constant 1.000000e+00 : f32
    %249 = vector.broadcast %cst_68 : f32 to vector<8x128xf32>
    %250 = arith.addf %249, %248 : vector<8x128xf32>
    %251 = arith.divf %249, %250 : vector<8x128xf32>
    %252 = vector.extract_strided_slice %233 {offsets = [0, 256], sizes = [8, 128], strides = [1, 1]} : vector<8x384xf32> to vector<8x128xf32>
    %253 = vector.extract_strided_slice %235 {offsets = [0, 256], sizes = [8, 128], strides = [1, 1]} : vector<8x384xf32> to vector<8x128xf32>
    %254 = arith.addf %253, %5 : vector<8x128xf32>
    %255 = arith.mulf %243, %254 : vector<8x128xf32>
    %256 = arith.addf %252, %255 : vector<8x128xf32>
    %257 = math.tanh %256 : vector<8x128xf32>
    %258 = arith.subf %224, %257 : vector<8x128xf32>
    %259 = arith.mulf %251, %258 : vector<8x128xf32>
    %260 = arith.addf %257, %259 : vector<8x128xf32>
    %261 = arith.truncf %260 : vector<8x128xf32> to vector<8x128xbf16>
    %c0_i32_69 = arith.constant 0 : i32
    %262 = arith.addi %c0_i32_69, %c6_i32 : i32
    %263 = arith.index_cast %262 : i32 to index
    %c0_70 = arith.constant 0 : index
    %c0_71 = arith.constant 0 : index
    %264 = vector.load %arg15[%263, %c0_70, %c0_71] : memref<8x8x128xbf16, #tpu.memory_space<vmem>>, vector<1x8x128xbf16>
    %265 = vector.shape_cast %264 : vector<1x8x128xbf16> to vector<8x128xbf16>
    %266 = vector.shape_cast %261 : vector<8x128xbf16> to vector<1x8x128xbf16>
    tpu.vector_store %arg15[%263, %c0_70, %c0_71], %266 {strides = array<i32>} : memref<8x8x128xbf16, #tpu.memory_space<vmem>>, vector<1x8x128xbf16>,
    %c7_i32 = arith.constant 7 : i32
    %267 = arith.index_cast %c7_i32 : i32 to index
    %c0_72 = arith.constant 0 : index
    %c0_73 = arith.constant 0 : index
    %268 = vector.load %arg16[%267, %c0_72, %c0_73] : memref<8x8x384xf32, #tpu.memory_space<vmem>>, vector<1x8x384xf32>
    %269 = vector.shape_cast %268 : vector<1x8x384xf32> to vector<8x384xf32>
    %270 = arith.truncf %260 : vector<8x128xf32> to vector<8x128xbf16>
    %cst_74 = arith.constant dense<0.000000e+00> : vector<8x384xf32>
    %271 = tpu.matmul %270, %1, %cst_74 {dimension_numbers = #tpu.dot_dimension_numbers<[1], [0], [0], [1], [0, 0, 1, 1], [], []>} : vector<8x128xbf16>, vector<128x384xbf16>, vector<8x384xf32> -> vector<8x384xf32>
    %272 = vector.extract_strided_slice %269 {offsets = [0, 0], sizes = [8, 128], strides = [1, 1]} : vector<8x384xf32> to vector<8x128xf32>
    %273 = vector.extract_strided_slice %271 {offsets = [0, 0], sizes = [8, 128], strides = [1, 1]} : vector<8x384xf32> to vector<8x128xf32>
    %274 = arith.addf %272, %273 : vector<8x128xf32>
    %275 = arith.negf %274 : vector<8x128xf32>
    %276 = math.exp %275 : vector<8x128xf32>
    %cst_75 = arith.constant 1.000000e+00 : f32
    %277 = vector.broadcast %cst_75 : f32 to vector<8x128xf32>
    %278 = arith.addf %277, %276 : vector<8x128xf32>
    %279 = arith.divf %277, %278 : vector<8x128xf32>
    %280 = vector.extract_strided_slice %269 {offsets = [0, 128], sizes = [8, 128], strides = [1, 1]} : vector<8x384xf32> to vector<8x128xf32>
    %281 = vector.extract_strided_slice %271 {offsets = [0, 128], sizes = [8, 128], strides = [1, 1]} : vector<8x384xf32> to vector<8x128xf32>
    %282 = arith.addf %280, %281 : vector<8x128xf32>
    %283 = arith.negf %282 : vector<8x128xf32>
    %284 = math.exp %283 : vector<8x128xf32>
    %cst_76 = arith.constant 1.000000e+00 : f32
    %285 = vector.broadcast %cst_76 : f32 to vector<8x128xf32>
    %286 = arith.addf %285, %284 : vector<8x128xf32>
    %287 = arith.divf %285, %286 : vector<8x128xf32>
    %288 = vector.extract_strided_slice %269 {offsets = [0, 256], sizes = [8, 128], strides = [1, 1]} : vector<8x384xf32> to vector<8x128xf32>
    %289 = vector.extract_strided_slice %271 {offsets = [0, 256], sizes = [8, 128], strides = [1, 1]} : vector<8x384xf32> to vector<8x128xf32>
    %290 = arith.addf %289, %5 : vector<8x128xf32>
    %291 = arith.mulf %279, %290 : vector<8x128xf32>
    %292 = arith.addf %288, %291 : vector<8x128xf32>
    %293 = math.tanh %292 : vector<8x128xf32>
    %294 = arith.subf %260, %293 : vector<8x128xf32>
    %295 = arith.mulf %287, %294 : vector<8x128xf32>
    %296 = arith.addf %293, %295 : vector<8x128xf32>
    %297 = arith.truncf %296 : vector<8x128xf32> to vector<8x128xbf16>
    %c0_i32_77 = arith.constant 0 : i32
    %298 = arith.addi %c0_i32_77, %c7_i32 : i32
    %299 = arith.index_cast %298 : i32 to index
    %c0_78 = arith.constant 0 : index
    %c0_79 = arith.constant 0 : index
    %300 = vector.load %arg15[%299, %c0_78, %c0_79] : memref<8x8x128xbf16, #tpu.memory_space<vmem>>, vector<1x8x128xbf16>
    %301 = vector.shape_cast %300 : vector<1x8x128xbf16> to vector<8x128xbf16>
    %302 = vector.shape_cast %297 : vector<8x128xbf16> to vector<1x8x128xbf16>
    tpu.vector_store %arg15[%299, %c0_78, %c0_79], %302 {strides = array<i32>} : memref<8x8x128xbf16, #tpu.memory_space<vmem>>, vector<1x8x128xbf16>,
    %c8_i32 = arith.constant 8 : i32
    %c0_80 = arith.constant 0 : index
    %c0_81 = arith.constant 0 : index
    %c0_82 = arith.constant 0 : index
    %303 = vector.load %arg14[%c0_80, %c0_81, %c0_82] : memref<2x8x128xf32, #tpu.memory_space<vmem>>, vector<1x8x128xf32>
    %304 = vector.shape_cast %303 : vector<1x8x128xf32> to vector<8x128xf32>
    %305 = vector.shape_cast %296 : vector<8x128xf32> to vector<1x8x128xf32>
    tpu.vector_store %arg14[%c0_80, %c0_81, %c0_82], %305 {strides = array<i32>} : memref<2x8x128xf32, #tpu.memory_space<vmem>>, vector<1x8x128xf32>,
    %c0_83 = arith.constant 0 : index
    %c0_84 = arith.constant 0 : index
    %306 = vector.load %arg6[%c0_83, %c0_84] : memref<128x384xbf16, #tpu.memory_space<vmem>>, vector<128x384xbf16>
    %c0_85 = arith.constant 0 : index
    %c0_86 = arith.constant 0 : index
    %307 = vector.load %arg7[%c0_85, %c0_86] : memref<128x384xbf16, #tpu.memory_space<vmem>>, vector<128x384xbf16>
    %c0_87 = arith.constant 0 : index
    %c0_88 = arith.constant 0 : index
    %308 = vector.load %arg8[%c0_87, %c0_88] : memref<1x384xf32, #tpu.memory_space<vmem>>, vector<1x384xf32>
    %c0_89 = arith.constant 0 : index
    %c0_90 = arith.constant 0 : index
    %309 = vector.load %arg9[%c0_89, %c0_90] : memref<1x128xf32, #tpu.memory_space<vmem>>, vector<1x128xf32>
    %310 = vector.shape_cast %309 : vector<1x128xf32> to vector<1x128xf32>
    %311 = vector.broadcast %310 : vector<1x128xf32> to vector<8x128xf32>
    %c1 = arith.constant 1 : index
    %c0_91 = arith.constant 0 : index
    %c0_92 = arith.constant 0 : index
    %312 = vector.load %arg10[%c1, %c0_91, %c0_92] : memref<2x8x128xf32, #tpu.memory_space<vmem>>, vector<1x8x128xf32>
    %313 = vector.shape_cast %312 : vector<1x8x128xf32> to vector<8x128xf32>
    %c0_93 = arith.constant 0 : index
    %c0_94 = arith.constant 0 : index
    %c0_95 = arith.constant 0 : index
    %314 = vector.load %arg15[%c0_93, %c0_94, %c0_95] : memref<8x8x128xbf16, #tpu.memory_space<vmem>>, vector<8x8x128xbf16>
    %315 = vector.shape_cast %314 : vector<8x8x128xbf16> to vector<64x128xbf16>
    %cst_96 = arith.constant dense<0.000000e+00> : vector<64x384xf32>
    %316 = tpu.matmul %315, %306, %cst_96 {dimension_numbers = #tpu.dot_dimension_numbers<[1], [0], [0], [1], [0, 0, 1, 1], [], []>} : vector<64x128xbf16>, vector<128x384xbf16>, vector<64x384xf32> -> vector<64x384xf32>
    %317 = vector.broadcast %308 : vector<1x384xf32> to vector<64x384xf32>
    %318 = arith.addf %316, %317 : vector<64x384xf32>
    %319 = vector.shape_cast %318 : vector<64x384xf32> to vector<8x8x384xf32>
    %c0_97 = arith.constant 0 : index
    %c0_98 = arith.constant 0 : index
    %c0_99 = arith.constant 0 : index
    %320 = vector.load %arg16[%c0_97, %c0_98, %c0_99] : memref<8x8x384xf32, #tpu.memory_space<vmem>>, vector<8x8x384xf32>
    tpu.vector_store %arg16[%c0_97, %c0_98, %c0_99], %319 {strides = array<i32>} : memref<8x8x384xf32, #tpu.memory_space<vmem>>, vector<8x8x384xf32>,
    %c0_i32_100 = arith.constant 0 : i32
    %321 = arith.index_cast %c0_i32_100 : i32 to index
    %c0_101 = arith.constant 0 : index
    %c0_102 = arith.constant 0 : index
    %322 = vector.load %arg16[%321, %c0_101, %c0_102] : memref<8x8x384xf32, #tpu.memory_space<vmem>>, vector<1x8x384xf32>
    %323 = vector.shape_cast %322 : vector<1x8x384xf32> to vector<8x384xf32>
    %324 = arith.truncf %313 : vector<8x128xf32> to vector<8x128xbf16>
    %cst_103 = arith.constant dense<0.000000e+00> : vector<8x384xf32>
    %325 = tpu.matmul %324, %307, %cst_103 {dimension_numbers = #tpu.dot_dimension_numbers<[1], [0], [0], [1], [0, 0, 1, 1], [], []>} : vector<8x128xbf16>, vector<128x384xbf16>, vector<8x384xf32> -> vector<8x384xf32>
    %326 = vector.extract_strided_slice %323 {offsets = [0, 0], sizes = [8, 128], strides = [1, 1]} : vector<8x384xf32> to vector<8x128xf32>
    %327 = vector.extract_strided_slice %325 {offsets = [0, 0], sizes = [8, 128], strides = [1, 1]} : vector<8x384xf32> to vector<8x128xf32>
    %328 = arith.addf %326, %327 : vector<8x128xf32>
    %329 = arith.negf %328 : vector<8x128xf32>
    %330 = math.exp %329 : vector<8x128xf32>
    %cst_104 = arith.constant 1.000000e+00 : f32
    %331 = vector.broadcast %cst_104 : f32 to vector<8x128xf32>
    %332 = arith.addf %331, %330 : vector<8x128xf32>
    %333 = arith.divf %331, %332 : vector<8x128xf32>
    %334 = vector.extract_strided_slice %323 {offsets = [0, 128], sizes = [8, 128], strides = [1, 1]} : vector<8x384xf32> to vector<8x128xf32>
    %335 = vector.extract_strided_slice %325 {offsets = [0, 128], sizes = [8, 128], strides = [1, 1]} : vector<8x384xf32> to vector<8x128xf32>
    %336 = arith.addf %334, %335 : vector<8x128xf32>
    %337 = arith.negf %336 : vector<8x128xf32>
    %338 = math.exp %337 : vector<8x128xf32>
    %cst_105 = arith.constant 1.000000e+00 : f32
    %339 = vector.broadcast %cst_105 : f32 to vector<8x128xf32>
    %340 = arith.addf %339, %338 : vector<8x128xf32>
    %341 = arith.divf %339, %340 : vector<8x128xf32>
    %342 = vector.extract_strided_slice %323 {offsets = [0, 256], sizes = [8, 128], strides = [1, 1]} : vector<8x384xf32> to vector<8x128xf32>
    %343 = vector.extract_strided_slice %325 {offsets = [0, 256], sizes = [8, 128], strides = [1, 1]} : vector<8x384xf32> to vector<8x128xf32>
    %344 = arith.addf %343, %311 : vector<8x128xf32>
    %345 = arith.mulf %333, %344 : vector<8x128xf32>
    %346 = arith.addf %342, %345 : vector<8x128xf32>
    %347 = math.tanh %346 : vector<8x128xf32>
    %348 = arith.subf %313, %347 : vector<8x128xf32>
    %349 = arith.mulf %341, %348 : vector<8x128xf32>
    %350 = arith.addf %347, %349 : vector<8x128xf32>
    %351 = arith.truncf %350 : vector<8x128xf32> to vector<8x128xbf16>
    %c0_i32_106 = arith.constant 0 : i32
    %352 = arith.addi %c0_i32_106, %c0_i32_100 : i32
    %353 = arith.index_cast %352 : i32 to index
    %c0_107 = arith.constant 0 : index
    %c0_108 = arith.constant 0 : index
    %354 = vector.load %arg15[%353, %c0_107, %c0_108] : memref<8x8x128xbf16, #tpu.memory_space<vmem>>, vector<1x8x128xbf16>
    %355 = vector.shape_cast %354 : vector<1x8x128xbf16> to vector<8x128xbf16>
    %356 = vector.shape_cast %351 : vector<8x128xbf16> to vector<1x8x128xbf16>
    tpu.vector_store %arg15[%353, %c0_107, %c0_108], %356 {strides = array<i32>} : memref<8x8x128xbf16, #tpu.memory_space<vmem>>, vector<1x8x128xbf16>,
    %c1_i32_109 = arith.constant 1 : i32
    %357 = arith.index_cast %c1_i32_109 : i32 to index
    %c0_110 = arith.constant 0 : index
    %c0_111 = arith.constant 0 : index
    %358 = vector.load %arg16[%357, %c0_110, %c0_111] : memref<8x8x384xf32, #tpu.memory_space<vmem>>, vector<1x8x384xf32>
    %359 = vector.shape_cast %358 : vector<1x8x384xf32> to vector<8x384xf32>
    %360 = arith.truncf %350 : vector<8x128xf32> to vector<8x128xbf16>
    %cst_112 = arith.constant dense<0.000000e+00> : vector<8x384xf32>
    %361 = tpu.matmul %360, %307, %cst_112 {dimension_numbers = #tpu.dot_dimension_numbers<[1], [0], [0], [1], [0, 0, 1, 1], [], []>} : vector<8x128xbf16>, vector<128x384xbf16>, vector<8x384xf32> -> vector<8x384xf32>
    %362 = vector.extract_strided_slice %359 {offsets = [0, 0], sizes = [8, 128], strides = [1, 1]} : vector<8x384xf32> to vector<8x128xf32>
    %363 = vector.extract_strided_slice %361 {offsets = [0, 0], sizes = [8, 128], strides = [1, 1]} : vector<8x384xf32> to vector<8x128xf32>
    %364 = arith.addf %362, %363 : vector<8x128xf32>
    %365 = arith.negf %364 : vector<8x128xf32>
    %366 = math.exp %365 : vector<8x128xf32>
    %cst_113 = arith.constant 1.000000e+00 : f32
    %367 = vector.broadcast %cst_113 : f32 to vector<8x128xf32>
    %368 = arith.addf %367, %366 : vector<8x128xf32>
    %369 = arith.divf %367, %368 : vector<8x128xf32>
    %370 = vector.extract_strided_slice %359 {offsets = [0, 128], sizes = [8, 128], strides = [1, 1]} : vector<8x384xf32> to vector<8x128xf32>
    %371 = vector.extract_strided_slice %361 {offsets = [0, 128], sizes = [8, 128], strides = [1, 1]} : vector<8x384xf32> to vector<8x128xf32>
    %372 = arith.addf %370, %371 : vector<8x128xf32>
    %373 = arith.negf %372 : vector<8x128xf32>
    %374 = math.exp %373 : vector<8x128xf32>
    %cst_114 = arith.constant 1.000000e+00 : f32
    %375 = vector.broadcast %cst_114 : f32 to vector<8x128xf32>
    %376 = arith.addf %375, %374 : vector<8x128xf32>
    %377 = arith.divf %375, %376 : vector<8x128xf32>
    %378 = vector.extract_strided_slice %359 {offsets = [0, 256], sizes = [8, 128], strides = [1, 1]} : vector<8x384xf32> to vector<8x128xf32>
    %379 = vector.extract_strided_slice %361 {offsets = [0, 256], sizes = [8, 128], strides = [1, 1]} : vector<8x384xf32> to vector<8x128xf32>
    %380 = arith.addf %379, %311 : vector<8x128xf32>
    %381 = arith.mulf %369, %380 : vector<8x128xf32>
    %382 = arith.addf %378, %381 : vector<8x128xf32>
    %383 = math.tanh %382 : vector<8x128xf32>
    %384 = arith.subf %350, %383 : vector<8x128xf32>
    %385 = arith.mulf %377, %384 : vector<8x128xf32>
    %386 = arith.addf %383, %385 : vector<8x128xf32>
    %387 = arith.truncf %386 : vector<8x128xf32> to vector<8x128xbf16>
    %c0_i32_115 = arith.constant 0 : i32
    %388 = arith.addi %c0_i32_115, %c1_i32_109 : i32
    %389 = arith.index_cast %388 : i32 to index
    %c0_116 = arith.constant 0 : index
    %c0_117 = arith.constant 0 : index
    %390 = vector.load %arg15[%389, %c0_116, %c0_117] : memref<8x8x128xbf16, #tpu.memory_space<vmem>>, vector<1x8x128xbf16>
    %391 = vector.shape_cast %390 : vector<1x8x128xbf16> to vector<8x128xbf16>
    %392 = vector.shape_cast %387 : vector<8x128xbf16> to vector<1x8x128xbf16>
    tpu.vector_store %arg15[%389, %c0_116, %c0_117], %392 {strides = array<i32>} : memref<8x8x128xbf16, #tpu.memory_space<vmem>>, vector<1x8x128xbf16>,
    %c2_i32_118 = arith.constant 2 : i32
    %393 = arith.index_cast %c2_i32_118 : i32 to index
    %c0_119 = arith.constant 0 : index
    %c0_120 = arith.constant 0 : index
    %394 = vector.load %arg16[%393, %c0_119, %c0_120] : memref<8x8x384xf32, #tpu.memory_space<vmem>>, vector<1x8x384xf32>
    %395 = vector.shape_cast %394 : vector<1x8x384xf32> to vector<8x384xf32>
    %396 = arith.truncf %386 : vector<8x128xf32> to vector<8x128xbf16>
    %cst_121 = arith.constant dense<0.000000e+00> : vector<8x384xf32>
    %397 = tpu.matmul %396, %307, %cst_121 {dimension_numbers = #tpu.dot_dimension_numbers<[1], [0], [0], [1], [0, 0, 1, 1], [], []>} : vector<8x128xbf16>, vector<128x384xbf16>, vector<8x384xf32> -> vector<8x384xf32>
    %398 = vector.extract_strided_slice %395 {offsets = [0, 0], sizes = [8, 128], strides = [1, 1]} : vector<8x384xf32> to vector<8x128xf32>
    %399 = vector.extract_strided_slice %397 {offsets = [0, 0], sizes = [8, 128], strides = [1, 1]} : vector<8x384xf32> to vector<8x128xf32>
    %400 = arith.addf %398, %399 : vector<8x128xf32>
    %401 = arith.negf %400 : vector<8x128xf32>
    %402 = math.exp %401 : vector<8x128xf32>
    %cst_122 = arith.constant 1.000000e+00 : f32
    %403 = vector.broadcast %cst_122 : f32 to vector<8x128xf32>
    %404 = arith.addf %403, %402 : vector<8x128xf32>
    %405 = arith.divf %403, %404 : vector<8x128xf32>
    %406 = vector.extract_strided_slice %395 {offsets = [0, 128], sizes = [8, 128], strides = [1, 1]} : vector<8x384xf32> to vector<8x128xf32>
    %407 = vector.extract_strided_slice %397 {offsets = [0, 128], sizes = [8, 128], strides = [1, 1]} : vector<8x384xf32> to vector<8x128xf32>
    %408 = arith.addf %406, %407 : vector<8x128xf32>
    %409 = arith.negf %408 : vector<8x128xf32>
    %410 = math.exp %409 : vector<8x128xf32>
    %cst_123 = arith.constant 1.000000e+00 : f32
    %411 = vector.broadcast %cst_123 : f32 to vector<8x128xf32>
    %412 = arith.addf %411, %410 : vector<8x128xf32>
    %413 = arith.divf %411, %412 : vector<8x128xf32>
    %414 = vector.extract_strided_slice %395 {offsets = [0, 256], sizes = [8, 128], strides = [1, 1]} : vector<8x384xf32> to vector<8x128xf32>
    %415 = vector.extract_strided_slice %397 {offsets = [0, 256], sizes = [8, 128], strides = [1, 1]} : vector<8x384xf32> to vector<8x128xf32>
    %416 = arith.addf %415, %311 : vector<8x128xf32>
    %417 = arith.mulf %405, %416 : vector<8x128xf32>
    %418 = arith.addf %414, %417 : vector<8x128xf32>
    %419 = math.tanh %418 : vector<8x128xf32>
    %420 = arith.subf %386, %419 : vector<8x128xf32>
    %421 = arith.mulf %413, %420 : vector<8x128xf32>
    %422 = arith.addf %419, %421 : vector<8x128xf32>
    %423 = arith.truncf %422 : vector<8x128xf32> to vector<8x128xbf16>
    %c0_i32_124 = arith.constant 0 : i32
    %424 = arith.addi %c0_i32_124, %c2_i32_118 : i32
    %425 = arith.index_cast %424 : i32 to index
    %c0_125 = arith.constant 0 : index
    %c0_126 = arith.constant 0 : index
    %426 = vector.load %arg15[%425, %c0_125, %c0_126] : memref<8x8x128xbf16, #tpu.memory_space<vmem>>, vector<1x8x128xbf16>
    %427 = vector.shape_cast %426 : vector<1x8x128xbf16> to vector<8x128xbf16>
    %428 = vector.shape_cast %423 : vector<8x128xbf16> to vector<1x8x128xbf16>
    tpu.vector_store %arg15[%425, %c0_125, %c0_126], %428 {strides = array<i32>} : memref<8x8x128xbf16, #tpu.memory_space<vmem>>, vector<1x8x128xbf16>,
    %c3_i32_127 = arith.constant 3 : i32
    %429 = arith.index_cast %c3_i32_127 : i32 to index
    %c0_128 = arith.constant 0 : index
    %c0_129 = arith.constant 0 : index
    %430 = vector.load %arg16[%429, %c0_128, %c0_129] : memref<8x8x384xf32, #tpu.memory_space<vmem>>, vector<1x8x384xf32>
    %431 = vector.shape_cast %430 : vector<1x8x384xf32> to vector<8x384xf32>
    %432 = arith.truncf %422 : vector<8x128xf32> to vector<8x128xbf16>
    %cst_130 = arith.constant dense<0.000000e+00> : vector<8x384xf32>
    %433 = tpu.matmul %432, %307, %cst_130 {dimension_numbers = #tpu.dot_dimension_numbers<[1], [0], [0], [1], [0, 0, 1, 1], [], []>} : vector<8x128xbf16>, vector<128x384xbf16>, vector<8x384xf32> -> vector<8x384xf32>
    %434 = vector.extract_strided_slice %431 {offsets = [0, 0], sizes = [8, 128], strides = [1, 1]} : vector<8x384xf32> to vector<8x128xf32>
    %435 = vector.extract_strided_slice %433 {offsets = [0, 0], sizes = [8, 128], strides = [1, 1]} : vector<8x384xf32> to vector<8x128xf32>
    %436 = arith.addf %434, %435 : vector<8x128xf32>
    %437 = arith.negf %436 : vector<8x128xf32>
    %438 = math.exp %437 : vector<8x128xf32>
    %cst_131 = arith.constant 1.000000e+00 : f32
    %439 = vector.broadcast %cst_131 : f32 to vector<8x128xf32>
    %440 = arith.addf %439, %438 : vector<8x128xf32>
    %441 = arith.divf %439, %440 : vector<8x128xf32>
    %442 = vector.extract_strided_slice %431 {offsets = [0, 128], sizes = [8, 128], strides = [1, 1]} : vector<8x384xf32> to vector<8x128xf32>
    %443 = vector.extract_strided_slice %433 {offsets = [0, 128], sizes = [8, 128], strides = [1, 1]} : vector<8x384xf32> to vector<8x128xf32>
    %444 = arith.addf %442, %443 : vector<8x128xf32>
    %445 = arith.negf %444 : vector<8x128xf32>
    %446 = math.exp %445 : vector<8x128xf32>
    %cst_132 = arith.constant 1.000000e+00 : f32
    %447 = vector.broadcast %cst_132 : f32 to vector<8x128xf32>
    %448 = arith.addf %447, %446 : vector<8x128xf32>
    %449 = arith.divf %447, %448 : vector<8x128xf32>
    %450 = vector.extract_strided_slice %431 {offsets = [0, 256], sizes = [8, 128], strides = [1, 1]} : vector<8x384xf32> to vector<8x128xf32>
    %451 = vector.extract_strided_slice %433 {offsets = [0, 256], sizes = [8, 128], strides = [1, 1]} : vector<8x384xf32> to vector<8x128xf32>
    %452 = arith.addf %451, %311 : vector<8x128xf32>
    %453 = arith.mulf %441, %452 : vector<8x128xf32>
    %454 = arith.addf %450, %453 : vector<8x128xf32>
    %455 = math.tanh %454 : vector<8x128xf32>
    %456 = arith.subf %422, %455 : vector<8x128xf32>
    %457 = arith.mulf %449, %456 : vector<8x128xf32>
    %458 = arith.addf %455, %457 : vector<8x128xf32>
    %459 = arith.truncf %458 : vector<8x128xf32> to vector<8x128xbf16>
    %c0_i32_133 = arith.constant 0 : i32
    %460 = arith.addi %c0_i32_133, %c3_i32_127 : i32
    %461 = arith.index_cast %460 : i32 to index
    %c0_134 = arith.constant 0 : index
    %c0_135 = arith.constant 0 : index
    %462 = vector.load %arg15[%461, %c0_134, %c0_135] : memref<8x8x128xbf16, #tpu.memory_space<vmem>>, vector<1x8x128xbf16>
    %463 = vector.shape_cast %462 : vector<1x8x128xbf16> to vector<8x128xbf16>
    %464 = vector.shape_cast %459 : vector<8x128xbf16> to vector<1x8x128xbf16>
    tpu.vector_store %arg15[%461, %c0_134, %c0_135], %464 {strides = array<i32>} : memref<8x8x128xbf16, #tpu.memory_space<vmem>>, vector<1x8x128xbf16>,
    %c4_i32_136 = arith.constant 4 : i32
    %465 = arith.index_cast %c4_i32_136 : i32 to index
    %c0_137 = arith.constant 0 : index
    %c0_138 = arith.constant 0 : index
    %466 = vector.load %arg16[%465, %c0_137, %c0_138] : memref<8x8x384xf32, #tpu.memory_space<vmem>>, vector<1x8x384xf32>
    %467 = vector.shape_cast %466 : vector<1x8x384xf32> to vector<8x384xf32>
    %468 = arith.truncf %458 : vector<8x128xf32> to vector<8x128xbf16>
    %cst_139 = arith.constant dense<0.000000e+00> : vector<8x384xf32>
    %469 = tpu.matmul %468, %307, %cst_139 {dimension_numbers = #tpu.dot_dimension_numbers<[1], [0], [0], [1], [0, 0, 1, 1], [], []>} : vector<8x128xbf16>, vector<128x384xbf16>, vector<8x384xf32> -> vector<8x384xf32>
    %470 = vector.extract_strided_slice %467 {offsets = [0, 0], sizes = [8, 128], strides = [1, 1]} : vector<8x384xf32> to vector<8x128xf32>
    %471 = vector.extract_strided_slice %469 {offsets = [0, 0], sizes = [8, 128], strides = [1, 1]} : vector<8x384xf32> to vector<8x128xf32>
    %472 = arith.addf %470, %471 : vector<8x128xf32>
    %473 = arith.negf %472 : vector<8x128xf32>
    %474 = math.exp %473 : vector<8x128xf32>
    %cst_140 = arith.constant 1.000000e+00 : f32
    %475 = vector.broadcast %cst_140 : f32 to vector<8x128xf32>
    %476 = arith.addf %475, %474 : vector<8x128xf32>
    %477 = arith.divf %475, %476 : vector<8x128xf32>
    %478 = vector.extract_strided_slice %467 {offsets = [0, 128], sizes = [8, 128], strides = [1, 1]} : vector<8x384xf32> to vector<8x128xf32>
    %479 = vector.extract_strided_slice %469 {offsets = [0, 128], sizes = [8, 128], strides = [1, 1]} : vector<8x384xf32> to vector<8x128xf32>
    %480 = arith.addf %478, %479 : vector<8x128xf32>
    %481 = arith.negf %480 : vector<8x128xf32>
    %482 = math.exp %481 : vector<8x128xf32>
    %cst_141 = arith.constant 1.000000e+00 : f32
    %483 = vector.broadcast %cst_141 : f32 to vector<8x128xf32>
    %484 = arith.addf %483, %482 : vector<8x128xf32>
    %485 = arith.divf %483, %484 : vector<8x128xf32>
    %486 = vector.extract_strided_slice %467 {offsets = [0, 256], sizes = [8, 128], strides = [1, 1]} : vector<8x384xf32> to vector<8x128xf32>
    %487 = vector.extract_strided_slice %469 {offsets = [0, 256], sizes = [8, 128], strides = [1, 1]} : vector<8x384xf32> to vector<8x128xf32>
    %488 = arith.addf %487, %311 : vector<8x128xf32>
    %489 = arith.mulf %477, %488 : vector<8x128xf32>
    %490 = arith.addf %486, %489 : vector<8x128xf32>
    %491 = math.tanh %490 : vector<8x128xf32>
    %492 = arith.subf %458, %491 : vector<8x128xf32>
    %493 = arith.mulf %485, %492 : vector<8x128xf32>
    %494 = arith.addf %491, %493 : vector<8x128xf32>
    %495 = arith.truncf %494 : vector<8x128xf32> to vector<8x128xbf16>
    %c0_i32_142 = arith.constant 0 : i32
    %496 = arith.addi %c0_i32_142, %c4_i32_136 : i32
    %497 = arith.index_cast %496 : i32 to index
    %c0_143 = arith.constant 0 : index
    %c0_144 = arith.constant 0 : index
    %498 = vector.load %arg15[%497, %c0_143, %c0_144] : memref<8x8x128xbf16, #tpu.memory_space<vmem>>, vector<1x8x128xbf16>
    %499 = vector.shape_cast %498 : vector<1x8x128xbf16> to vector<8x128xbf16>
    %500 = vector.shape_cast %495 : vector<8x128xbf16> to vector<1x8x128xbf16>
    tpu.vector_store %arg15[%497, %c0_143, %c0_144], %500 {strides = array<i32>} : memref<8x8x128xbf16, #tpu.memory_space<vmem>>, vector<1x8x128xbf16>,
    %c5_i32_145 = arith.constant 5 : i32
    %501 = arith.index_cast %c5_i32_145 : i32 to index
    %c0_146 = arith.constant 0 : index
    %c0_147 = arith.constant 0 : index
    %502 = vector.load %arg16[%501, %c0_146, %c0_147] : memref<8x8x384xf32, #tpu.memory_space<vmem>>, vector<1x8x384xf32>
    %503 = vector.shape_cast %502 : vector<1x8x384xf32> to vector<8x384xf32>
    %504 = arith.truncf %494 : vector<8x128xf32> to vector<8x128xbf16>
    %cst_148 = arith.constant dense<0.000000e+00> : vector<8x384xf32>
    %505 = tpu.matmul %504, %307, %cst_148 {dimension_numbers = #tpu.dot_dimension_numbers<[1], [0], [0], [1], [0, 0, 1, 1], [], []>} : vector<8x128xbf16>, vector<128x384xbf16>, vector<8x384xf32> -> vector<8x384xf32>
    %506 = vector.extract_strided_slice %503 {offsets = [0, 0], sizes = [8, 128], strides = [1, 1]} : vector<8x384xf32> to vector<8x128xf32>
    %507 = vector.extract_strided_slice %505 {offsets = [0, 0], sizes = [8, 128], strides = [1, 1]} : vector<8x384xf32> to vector<8x128xf32>
    %508 = arith.addf %506, %507 : vector<8x128xf32>
    %509 = arith.negf %508 : vector<8x128xf32>
    %510 = math.exp %509 : vector<8x128xf32>
    %cst_149 = arith.constant 1.000000e+00 : f32
    %511 = vector.broadcast %cst_149 : f32 to vector<8x128xf32>
    %512 = arith.addf %511, %510 : vector<8x128xf32>
    %513 = arith.divf %511, %512 : vector<8x128xf32>
    %514 = vector.extract_strided_slice %503 {offsets = [0, 128], sizes = [8, 128], strides = [1, 1]} : vector<8x384xf32> to vector<8x128xf32>
    %515 = vector.extract_strided_slice %505 {offsets = [0, 128], sizes = [8, 128], strides = [1, 1]} : vector<8x384xf32> to vector<8x128xf32>
    %516 = arith.addf %514, %515 : vector<8x128xf32>
    %517 = arith.negf %516 : vector<8x128xf32>
    %518 = math.exp %517 : vector<8x128xf32>
    %cst_150 = arith.constant 1.000000e+00 : f32
    %519 = vector.broadcast %cst_150 : f32 to vector<8x128xf32>
    %520 = arith.addf %519, %518 : vector<8x128xf32>
    %521 = arith.divf %519, %520 : vector<8x128xf32>
    %522 = vector.extract_strided_slice %503 {offsets = [0, 256], sizes = [8, 128], strides = [1, 1]} : vector<8x384xf32> to vector<8x128xf32>
    %523 = vector.extract_strided_slice %505 {offsets = [0, 256], sizes = [8, 128], strides = [1, 1]} : vector<8x384xf32> to vector<8x128xf32>
    %524 = arith.addf %523, %311 : vector<8x128xf32>
    %525 = arith.mulf %513, %524 : vector<8x128xf32>
    %526 = arith.addf %522, %525 : vector<8x128xf32>
    %527 = math.tanh %526 : vector<8x128xf32>
    %528 = arith.subf %494, %527 : vector<8x128xf32>
    %529 = arith.mulf %521, %528 : vector<8x128xf32>
    %530 = arith.addf %527, %529 : vector<8x128xf32>
    %531 = arith.truncf %530 : vector<8x128xf32> to vector<8x128xbf16>
    %c0_i32_151 = arith.constant 0 : i32
    %532 = arith.addi %c0_i32_151, %c5_i32_145 : i32
    %533 = arith.index_cast %532 : i32 to index
    %c0_152 = arith.constant 0 : index
    %c0_153 = arith.constant 0 : index
    %534 = vector.load %arg15[%533, %c0_152, %c0_153] : memref<8x8x128xbf16, #tpu.memory_space<vmem>>, vector<1x8x128xbf16>
    %535 = vector.shape_cast %534 : vector<1x8x128xbf16> to vector<8x128xbf16>
    %536 = vector.shape_cast %531 : vector<8x128xbf16> to vector<1x8x128xbf16>
    tpu.vector_store %arg15[%533, %c0_152, %c0_153], %536 {strides = array<i32>} : memref<8x8x128xbf16, #tpu.memory_space<vmem>>, vector<1x8x128xbf16>,
    %c6_i32_154 = arith.constant 6 : i32
    %537 = arith.index_cast %c6_i32_154 : i32 to index
    %c0_155 = arith.constant 0 : index
    %c0_156 = arith.constant 0 : index
    %538 = vector.load %arg16[%537, %c0_155, %c0_156] : memref<8x8x384xf32, #tpu.memory_space<vmem>>, vector<1x8x384xf32>
    %539 = vector.shape_cast %538 : vector<1x8x384xf32> to vector<8x384xf32>
    %540 = arith.truncf %530 : vector<8x128xf32> to vector<8x128xbf16>
    %cst_157 = arith.constant dense<0.000000e+00> : vector<8x384xf32>
    %541 = tpu.matmul %540, %307, %cst_157 {dimension_numbers = #tpu.dot_dimension_numbers<[1], [0], [0], [1], [0, 0, 1, 1], [], []>} : vector<8x128xbf16>, vector<128x384xbf16>, vector<8x384xf32> -> vector<8x384xf32>
    %542 = vector.extract_strided_slice %539 {offsets = [0, 0], sizes = [8, 128], strides = [1, 1]} : vector<8x384xf32> to vector<8x128xf32>
    %543 = vector.extract_strided_slice %541 {offsets = [0, 0], sizes = [8, 128], strides = [1, 1]} : vector<8x384xf32> to vector<8x128xf32>
    %544 = arith.addf %542, %543 : vector<8x128xf32>
    %545 = arith.negf %544 : vector<8x128xf32>
    %546 = math.exp %545 : vector<8x128xf32>
    %cst_158 = arith.constant 1.000000e+00 : f32
    %547 = vector.broadcast %cst_158 : f32 to vector<8x128xf32>
    %548 = arith.addf %547, %546 : vector<8x128xf32>
    %549 = arith.divf %547, %548 : vector<8x128xf32>
    %550 = vector.extract_strided_slice %539 {offsets = [0, 128], sizes = [8, 128], strides = [1, 1]} : vector<8x384xf32> to vector<8x128xf32>
    %551 = vector.extract_strided_slice %541 {offsets = [0, 128], sizes = [8, 128], strides = [1, 1]} : vector<8x384xf32> to vector<8x128xf32>
    %552 = arith.addf %550, %551 : vector<8x128xf32>
    %553 = arith.negf %552 : vector<8x128xf32>
    %554 = math.exp %553 : vector<8x128xf32>
    %cst_159 = arith.constant 1.000000e+00 : f32
    %555 = vector.broadcast %cst_159 : f32 to vector<8x128xf32>
    %556 = arith.addf %555, %554 : vector<8x128xf32>
    %557 = arith.divf %555, %556 : vector<8x128xf32>
    %558 = vector.extract_strided_slice %539 {offsets = [0, 256], sizes = [8, 128], strides = [1, 1]} : vector<8x384xf32> to vector<8x128xf32>
    %559 = vector.extract_strided_slice %541 {offsets = [0, 256], sizes = [8, 128], strides = [1, 1]} : vector<8x384xf32> to vector<8x128xf32>
    %560 = arith.addf %559, %311 : vector<8x128xf32>
    %561 = arith.mulf %549, %560 : vector<8x128xf32>
    %562 = arith.addf %558, %561 : vector<8x128xf32>
    %563 = math.tanh %562 : vector<8x128xf32>
    %564 = arith.subf %530, %563 : vector<8x128xf32>
    %565 = arith.mulf %557, %564 : vector<8x128xf32>
    %566 = arith.addf %563, %565 : vector<8x128xf32>
    %567 = arith.truncf %566 : vector<8x128xf32> to vector<8x128xbf16>
    %c0_i32_160 = arith.constant 0 : i32
    %568 = arith.addi %c0_i32_160, %c6_i32_154 : i32
    %569 = arith.index_cast %568 : i32 to index
    %c0_161 = arith.constant 0 : index
    %c0_162 = arith.constant 0 : index
    %570 = vector.load %arg15[%569, %c0_161, %c0_162] : memref<8x8x128xbf16, #tpu.memory_space<vmem>>, vector<1x8x128xbf16>
    %571 = vector.shape_cast %570 : vector<1x8x128xbf16> to vector<8x128xbf16>
    %572 = vector.shape_cast %567 : vector<8x128xbf16> to vector<1x8x128xbf16>
    tpu.vector_store %arg15[%569, %c0_161, %c0_162], %572 {strides = array<i32>} : memref<8x8x128xbf16, #tpu.memory_space<vmem>>, vector<1x8x128xbf16>,
    %c7_i32_163 = arith.constant 7 : i32
    %573 = arith.index_cast %c7_i32_163 : i32 to index
    %c0_164 = arith.constant 0 : index
    %c0_165 = arith.constant 0 : index
    %574 = vector.load %arg16[%573, %c0_164, %c0_165] : memref<8x8x384xf32, #tpu.memory_space<vmem>>, vector<1x8x384xf32>
    %575 = vector.shape_cast %574 : vector<1x8x384xf32> to vector<8x384xf32>
    %576 = arith.truncf %566 : vector<8x128xf32> to vector<8x128xbf16>
    %cst_166 = arith.constant dense<0.000000e+00> : vector<8x384xf32>
    %577 = tpu.matmul %576, %307, %cst_166 {dimension_numbers = #tpu.dot_dimension_numbers<[1], [0], [0], [1], [0, 0, 1, 1], [], []>} : vector<8x128xbf16>, vector<128x384xbf16>, vector<8x384xf32> -> vector<8x384xf32>
    %578 = vector.extract_strided_slice %575 {offsets = [0, 0], sizes = [8, 128], strides = [1, 1]} : vector<8x384xf32> to vector<8x128xf32>
    %579 = vector.extract_strided_slice %577 {offsets = [0, 0], sizes = [8, 128], strides = [1, 1]} : vector<8x384xf32> to vector<8x128xf32>
    %580 = arith.addf %578, %579 : vector<8x128xf32>
    %581 = arith.negf %580 : vector<8x128xf32>
    %582 = math.exp %581 : vector<8x128xf32>
    %cst_167 = arith.constant 1.000000e+00 : f32
    %583 = vector.broadcast %cst_167 : f32 to vector<8x128xf32>
    %584 = arith.addf %583, %582 : vector<8x128xf32>
    %585 = arith.divf %583, %584 : vector<8x128xf32>
    %586 = vector.extract_strided_slice %575 {offsets = [0, 128], sizes = [8, 128], strides = [1, 1]} : vector<8x384xf32> to vector<8x128xf32>
    %587 = vector.extract_strided_slice %577 {offsets = [0, 128], sizes = [8, 128], strides = [1, 1]} : vector<8x384xf32> to vector<8x128xf32>
    %588 = arith.addf %586, %587 : vector<8x128xf32>
    %589 = arith.negf %588 : vector<8x128xf32>
    %590 = math.exp %589 : vector<8x128xf32>
    %cst_168 = arith.constant 1.000000e+00 : f32
    %591 = vector.broadcast %cst_168 : f32 to vector<8x128xf32>
    %592 = arith.addf %591, %590 : vector<8x128xf32>
    %593 = arith.divf %591, %592 : vector<8x128xf32>
    %594 = vector.extract_strided_slice %575 {offsets = [0, 256], sizes = [8, 128], strides = [1, 1]} : vector<8x384xf32> to vector<8x128xf32>
    %595 = vector.extract_strided_slice %577 {offsets = [0, 256], sizes = [8, 128], strides = [1, 1]} : vector<8x384xf32> to vector<8x128xf32>
    %596 = arith.addf %595, %311 : vector<8x128xf32>
    %597 = arith.mulf %585, %596 : vector<8x128xf32>
    %598 = arith.addf %594, %597 : vector<8x128xf32>
    %599 = math.tanh %598 : vector<8x128xf32>
    %600 = arith.subf %566, %599 : vector<8x128xf32>
    %601 = arith.mulf %593, %600 : vector<8x128xf32>
    %602 = arith.addf %599, %601 : vector<8x128xf32>
    %603 = arith.truncf %602 : vector<8x128xf32> to vector<8x128xbf16>
    %c0_i32_169 = arith.constant 0 : i32
    %604 = arith.addi %c0_i32_169, %c7_i32_163 : i32
    %605 = arith.index_cast %604 : i32 to index
    %c0_170 = arith.constant 0 : index
    %c0_171 = arith.constant 0 : index
    %606 = vector.load %arg15[%605, %c0_170, %c0_171] : memref<8x8x128xbf16, #tpu.memory_space<vmem>>, vector<1x8x128xbf16>
    %607 = vector.shape_cast %606 : vector<1x8x128xbf16> to vector<8x128xbf16>
    %608 = vector.shape_cast %603 : vector<8x128xbf16> to vector<1x8x128xbf16>
    tpu.vector_store %arg15[%605, %c0_170, %c0_171], %608 {strides = array<i32>} : memref<8x8x128xbf16, #tpu.memory_space<vmem>>, vector<1x8x128xbf16>,
    %c8_i32_172 = arith.constant 8 : i32
    %c1_173 = arith.constant 1 : index
    %c0_174 = arith.constant 0 : index
    %c0_175 = arith.constant 0 : index
    %609 = vector.load %arg14[%c1_173, %c0_174, %c0_175] : memref<2x8x128xf32, #tpu.memory_space<vmem>>, vector<1x8x128xf32>
    %610 = vector.shape_cast %609 : vector<1x8x128xf32> to vector<8x128xf32>
    %611 = vector.shape_cast %602 : vector<8x128xf32> to vector<1x8x128xf32>
    tpu.vector_store %arg14[%c1_173, %c0_174, %c0_175], %611 {strides = array<i32>} : memref<2x8x128xf32, #tpu.memory_space<vmem>>, vector<1x8x128xf32>,
    %c0_176 = arith.constant 0 : index
    %c0_177 = arith.constant 0 : index
    %c0_178 = arith.constant 0 : index
    %612 = vector.load %arg15[%c0_176, %c0_177, %c0_178] : memref<8x8x128xbf16, #tpu.memory_space<vmem>>, vector<8x8x128xbf16>
    %613 = vector.shape_cast %612 : vector<8x8x128xbf16> to vector<64x128xbf16>
    %c0_179 = arith.constant 0 : index
    %c0_180 = arith.constant 0 : index
    %614 = vector.load %arg11[%c0_179, %c0_180] : memref<128x128xbf16, #tpu.memory_space<vmem>>, vector<128x128xbf16>
    %cst_181 = arith.constant dense<0.000000e+00> : vector<64x128xf32>
    %615 = tpu.matmul %613, %614, %cst_181 {dimension_numbers = #tpu.dot_dimension_numbers<[1], [0], [0], [1], [0, 0, 1, 1], [], []>} : vector<64x128xbf16>, vector<128x128xbf16>, vector<64x128xf32> -> vector<64x128xf32>
    %c0_182 = arith.constant 0 : index
    %c0_183 = arith.constant 0 : index
    %616 = vector.load %arg12[%c0_182, %c0_183] : memref<1x128xf32, #tpu.memory_space<vmem>>, vector<1x128xf32>
    %617 = vector.broadcast %616 : vector<1x128xf32> to vector<64x128xf32>
    %618 = arith.addf %615, %617 : vector<64x128xf32>
    %cst_184 = arith.constant dense<0xFF800000> : vector<64xf32>
    %619 = vector.multi_reduction <maximumf>, %618, %cst_184 [1] : vector<64x128xf32> to vector<64xf32>
    %620 = vector.shape_cast %619 : vector<64xf32> to vector<64x1xf32>
    %621 = vector.broadcast %620 : vector<64x1xf32> to vector<64x128xf32>
    %622 = arith.subf %618, %621 : vector<64x128xf32>
    %623 = math.exp %622 : vector<64x128xf32>
    %cst_185 = arith.constant dense<0.000000e+00> : vector<64xf32>
    %624 = vector.multi_reduction <add>, %623, %cst_185 [1] : vector<64x128xf32> to vector<64xf32>
    %625 = vector.shape_cast %624 : vector<64xf32> to vector<64x1xf32>
    %626 = math.log %625 : vector<64x1xf32>
    %627 = vector.broadcast %626 : vector<64x1xf32> to vector<64x128xf32>
    %628 = arith.subf %622, %627 : vector<64x128xf32>
    %629 = vector.shape_cast %628 : vector<64x128xf32> to vector<8x8x128xf32>
    %c0_186 = arith.constant 0 : index
    %c0_187 = arith.constant 0 : index
    %c0_188 = arith.constant 0 : index
    %630 = vector.load %arg13[%c0_186, %c0_187, %c0_188] : memref<8x8x128xf32, #tpu.memory_space<vmem>>, vector<8x8x128xf32>
    tpu.vector_store %arg13[%c0_186, %c0_187, %c0_188], %629 {strides = array<i32>} : memref<8x8x128xf32, #tpu.memory_space<vmem>>, vector<8x8x128xf32>,
    return
  }
  func.func @transform_0(%arg0: i32) -> (i32, i32, i32) {
    %c0_i32 = arith.constant 0 : i32
    %c0_i32_0 = arith.constant 0 : i32
    %c0_i32_1 = arith.constant 0 : i32
    %c0_i32_2 = arith.constant 0 : i32
    return %c0_i32, %c0_i32_0, %c0_i32_1 : i32, i32, i32
  }
  func.func @transform_1(%arg0: i32) -> (i32, i32) {
    %c0_i32 = arith.constant 0 : i32
    %c0_i32_0 = arith.constant 0 : i32
    %c0_i32_1 = arith.constant 0 : i32
    return %c0_i32, %c0_i32_0 : i32, i32
  }
  func.func @transform_2(%arg0: i32) -> (i32, i32) {
    %c0_i32 = arith.constant 0 : i32
    %c0_i32_0 = arith.constant 0 : i32
    %c0_i32_1 = arith.constant 0 : i32
    return %c0_i32, %c0_i32_0 : i32, i32
  }
  func.func @transform_3(%arg0: i32) -> (i32, i32) {
    %c0_i32 = arith.constant 0 : i32
    %c0_i32_0 = arith.constant 0 : i32
    %c0_i32_1 = arith.constant 0 : i32
    return %c0_i32, %c0_i32_0 : i32, i32
  }
  func.func @transform_4(%arg0: i32) -> (i32, i32) {
    %c0_i32 = arith.constant 0 : i32
    %c0_i32_0 = arith.constant 0 : i32
    %c0_i32_1 = arith.constant 0 : i32
    return %c0_i32, %c0_i32_0 : i32, i32
  }
  func.func @transform_5(%arg0: i32) -> (i32, i32) {
    %c0_i32 = arith.constant 0 : i32
    %c0_i32_0 = arith.constant 0 : i32
    %c0_i32_1 = arith.constant 0 : i32
    return %c0_i32, %c0_i32_0 : i32, i32
  }
  func.func @transform_6(%arg0: i32) -> (i32, i32) {
    %c0_i32 = arith.constant 0 : i32
    %c0_i32_0 = arith.constant 0 : i32
    %c0_i32_1 = arith.constant 0 : i32
    return %c0_i32, %c0_i32_0 : i32, i32
  }
  func.func @transform_7(%arg0: i32) -> (i32, i32) {
    %c0_i32 = arith.constant 0 : i32
    %c0_i32_0 = arith.constant 0 : i32
    %c0_i32_1 = arith.constant 0 : i32
    return %c0_i32, %c0_i32_0 : i32, i32
  }
  func.func @transform_8(%arg0: i32) -> (i32, i32) {
    %c0_i32 = arith.constant 0 : i32
    %c0_i32_0 = arith.constant 0 : i32
    %c0_i32_1 = arith.constant 0 : i32
    return %c0_i32, %c0_i32_0 : i32, i32
  }
  func.func @transform_9(%arg0: i32) -> (i32, i32, i32) {
    %c0_i32 = arith.constant 0 : i32
    %c0_i32_0 = arith.constant 0 : i32
    %c0_i32_1 = arith.constant 0 : i32
    %c0_i32_2 = arith.constant 0 : i32
    return %c0_i32, %c0_i32_0, %c0_i32_1 : i32, i32, i32
  }
  func.func @transform_10(%arg0: i32) -> (i32, i32) {
    %c0_i32 = arith.constant 0 : i32
    %c0_i32_0 = arith.constant 0 : i32
    %c0_i32_1 = arith.constant 0 : i32
    return %c0_i32, %c0_i32_0 : i32, i32
  }
  func.func @transform_11(%arg0: i32) -> (i32, i32) {
    %c0_i32 = arith.constant 0 : i32
    %c0_i32_0 = arith.constant 0 : i32
    %c0_i32_1 = arith.constant 0 : i32
    return %c0_i32, %c0_i32_0 : i32, i32
  }
  func.func @transform_12(%arg0: i32) -> (i32, i32, i32) {
    %c0_i32 = arith.constant 0 : i32
    %c0_i32_0 = arith.constant 0 : i32
    %c0_i32_1 = arith.constant 0 : i32
    %c0_i32_2 = arith.constant 0 : i32
    return %c0_i32, %c0_i32_0, %c0_i32_1 : i32, i32, i32
  }
  func.func @transform_13(%arg0: i32) -> (i32, i32, i32) {
    %c0_i32 = arith.constant 0 : i32
    %c0_i32_0 = arith.constant 0 : i32
    %c0_i32_1 = arith.constant 0 : i32
    %c0_i32_2 = arith.constant 0 : i32
    return %c0_i32, %c0_i32_0, %c0_i32_1 : i32, i32, i32
  }
}

</mosaic_0001>

<bundles_post_ra>
// kernel: gru_nn_forward.1
= control target key start
LH: loop header
LB: loop body
LE: loop exit
PB: predicated region body
PF: predicated region fallthrough
CT: control target
= control target key end

     0   :  { %s5137_s1 = inlined_call_operand.vmem [shape: bf16[128,384], index: 1, kind: input, shape index: {}]   ;;  %s5138_s2 = inlined_call_operand.vmem [shape: bf16[128,384], index: 2, kind: input, shape index: {}]   ;;  %s5139_s0 = inlined_call_operand.vmem [shape: bf16[8,8,128], index: 0, kind: input, shape index: {}]   ;;  %s5140_s9 = inlined_call_operand.vmem [shape: f32[2,8,128], index: 9, kind: input, shape index: {}]   ;;  %s5141_s4 = inlined_call_operand.vmem [shape: f32[1,128], index: 4, kind: input, shape index: {}]   ;;  %s5142_s3 = inlined_call_operand.vmem [shape: f32[1,384], index: 3, kind: input, shape index: {}]   ;;  %s5143_s5 = inlined_call_operand.vmem [shape: bf16[128,384], index: 5, kind: input, shape index: {}]   ;;  %s5144_s6 = inlined_call_operand.vmem [shape: bf16[128,384], index: 6, kind: input, shape index: {}]   ;;  %s5145_s13 = inlined_call_operand.vmem [shape: f32[2,8,128], index: 13, kind: output, shape index: {1}]   ;;  %s5146_s8 = inlined_call_operand.vmem [shape: f32[1,128], index: 8, kind: input, shape index: {}]   ;;  %s5147_s7 = inlined_call_operand.vmem [shape: f32[1,384], index: 7, kind: input, shape index: {}]   ;;  %s5148_s10 = inlined_call_operand.vmem [shape: bf16[128,128], index: 10, kind: input, shape index: {}]   ;;  %s5149_s11 = inlined_call_operand.vmem [shape: f32[1,128], index: 11, kind: input, shape index: {}]   ;;  %s5150_s12 = inlined_call_operand.vmem [shape: f32[8,8,128], index: 12, kind: output, shape index: {0}]  }
   0x1   :  { %v2798_v0 = vld [vmem:[%s5137_s1 + $0xa8] sm:$0xf]  ;;  %v3216_v1 = vld [vmem:[%s5137_s1 + $0xb0] sm:$0xf0]  ;;  %v2786_v5 = vld [vmem:[%s5137_s1 + $0x90] sm:$0xf] }
   0x2   :  { %v2894_v2 = vld [vmem:[%s5138_s2 + $0xa8] sm:$0xf]  ;;  %v2799_v3 = vor.u32 %v3216_v1, %v2798_v0  ;;  %v3240_v4 = vld [vmem:[%s5138_s2 + $0xb0] sm:$0xf0]  ;;  %v3213_v6 = vld [vmem:[%s5137_s1 + $0x98] sm:$0xf0] }
   0x3   :  { %v3603_v7 = vor.u32 %v3240_v4, %v2894_v2  ;;  %v2882_v8 = vld [vmem:[%s5138_s2 + $0x90] sm:$0xf]  ;;  %v3237_v9 = vld [vmem:[%s5138_s2 + $0x98] sm:$0xf0]  ;;  %v2787_v10 = vor.u32 %v3213_v6, %v2786_v5  ;;  %v2774_v12 = vld [vmem:[%s5137_s1 + $0x78] sm:$0xf] }
   0x4   :  { %280 = vmatpush.bf16.msra.mxu1 %v2799_v3  ;;  %3310 = vmatpush.bf16.msra.mxu2 %v2799_v3  ;;  %v3612_v11 = vor.u32 %v3237_v9, %v2882_v8  ;;  %v3210_v13 = vld [vmem:[%s5137_s1 + $0x80] sm:$0xf0]  ;;  %v2870_v14 = vld [vmem:[%s5138_s2 + $0x78] sm:$0xf]  ;;  %v2762_v18 = vld [vmem:[%s5137_s1 + $0x60] sm:$0xf] }
   0x5   :  { %523 = vmatpush.bf16.msra.mxu3 %v3603_v7  ;;  %v3234_v15 = vld [vmem:[%s5138_s2 + $0x80] sm:$0xf0]  ;;  %v2775_v16 = vor.u32 %v3210_v13, %v2774_v12  ;;  %v3207_v19 = vld [vmem:[%s5137_s1 + $0x68] sm:$0xf0]  ;;  %v2858_v20 = vld [vmem:[%s5138_s2 + $0x60] sm:$0xf] }
   0x6   :  { %v3627_v17 = vor.u32 %v3234_v15, %v2870_v14  ;;  %v3231_v21 = vld [vmem:[%s5138_s2 + $0x68] sm:$0xf0]  ;;  %v2763_v22 = vor.u32 %v3207_v19, %v2762_v18  ;;  %v2750_v24 = vld [vmem:[%s5137_s1 + $0x48] sm:$0xf]  ;;  %v3204_v25 = vld [vmem:[%s5137_s1 + $0x50] sm:$0xf0] }
   0x7   :  { %v3642_v23 = vor.u32 %v3231_v21, %v2858_v20  ;;  %v2846_v26 = vld [vmem:[%s5138_s2 + $0x48] sm:$0xf]  ;;  %v3228_v27 = vld [vmem:[%s5138_s2 + $0x50] sm:$0xf0]  ;;  %v2902_v28 = vld [vmem:[%s5138_s2 + $0xb0] sm:$0xf]  ;;  %v2751_v29 = vor.u32 %v3204_v25, %v2750_v24 }
   0x8   :  { %281 = vmatpush.bf16.msra.mxu1 %v2787_v10  ;;  %3311 = vmatpush.bf16.msra.mxu2 %v2787_v10  ;;  %v3241_v30 = vld [vmem:[%s5138_s2 + $0xb8] sm:$0xf0]  ;;  %v3663_v31 = vor.u32 %v3228_v27, %v2846_v26  ;;  %v2738_v32 = vld [vmem:[%s5137_s1 + $0x30] sm:$0xf]  ;;  %v2890_v37 = vld [vmem:[%s5138_s2 + $0x98] sm:$0xf] }
   0x9   :  { %524 = vmatpush.bf16.msra.mxu3 %v3612_v11  ;;  %v3201_v33 = vld [vmem:[%s5137_s1 + $0x38] sm:$0xf0]  ;;  %v2834_v34 = vld [vmem:[%s5138_s2 + $0x30] sm:$0xf]  ;;  %v3674_v35 = vor.u32 %v3241_v30, %v2902_v28  ;;  %v3238_v38 = vld [vmem:[%s5138_s2 + $0xa0] sm:$0xf0] }
   0xa   :  { %v3225_v36 = vld [vmem:[%s5138_s2 + $0x38] sm:$0xf0]  ;;  %v3686_v39 = vor.u32 %v3238_v38, %v2890_v37  ;;  %v2739_v40 = vor.u32 %v3201_v33, %v2738_v32  ;;  %v2726_v41 = vld [vmem:[%s5137_s1 + $0x18] sm:$0xf]  ;;  %v3198_v43 = vld [vmem:[%s5137_s1 + $0x20] sm:$0xf0] }
   0xb   :  { %549 = vmatpush.bf16.msra.mxu0 %v3674_v35  ;;  %v3692_v42 = vor.u32 %v3225_v36, %v2834_v34  ;;  %v2878_v44 = vld [vmem:[%s5138_s2 + $0x80] sm:$0xf]  ;;  %v3235_v45 = vld [vmem:[%s5138_s2 + $0x88] sm:$0xf0]  ;;  %v2822_v46 = vld [vmem:[%s5138_s2 + $0x18] sm:$0xf]  ;;  %v2727_v49 = vor.u32 %v3198_v43, %v2726_v41 }
   0xc   :  { %282 = vmatpush.bf16.msra.mxu1 %v2775_v16  ;;  %3312 = vmatpush.bf16.msra.mxu2 %v2775_v16  ;;  %v3222_v47 = vld [vmem:[%s5138_s2 + $0x20] sm:$0xf0]  ;;  %v3710_v48 = vor.u32 %v3235_v45, %v2878_v44  ;;  %v2714_v50 = vld [vmem:[%s5137_s1] sm:$0xf]  ;;  %v2866_v51 = vld [vmem:[%s5138_s2 + $0x68] sm:$0xf] }
   0xd   :  { %525 = vmatpush.bf16.msra.mxu3 %v3627_v17  ;;  %v3232_v52 = vld [vmem:[%s5138_s2 + $0x70] sm:$0xf0]  ;;  %v3722_v53 = vor.u32 %v3222_v47, %v2822_v46  ;;  %v3195_v54 = vld [vmem:[%s5137_s1 + $0x8] sm:$0xf0]  ;;  %v2810_v55 = vld [vmem:[%s5138_s2] sm:$0xf] }
   0xe   :  { %v3219_v56 = vld [vmem:[%s5138_s2 + $0x8] sm:$0xf0]  ;;  %v2800_v59 = vld [vmem:[%s5137_s1 + $0xb4] sm:$0xf0]  ;;  %v2806_v61 = vld [vmem:[%s5137_s1 + $0xb0] sm:$0xf]  ;;  %v3752_v63 = vor.u32 %v3232_v52, %v2866_v51  ;;  %v2715_v0 = vor.u32 %v3195_v54, %v2714_v50 }
   0xf   :  { %550 = vmatpush.bf16.msra.mxu0 %v3686_v39  ;;  %v3239_v57 = vld [vmem:[%s5138_s2 + $0xac] sm:$0xf]  ;;  %v2896_v60 = vld [vmem:[%s5138_s2 + $0xb4] sm:$0xf0]  ;;  %v3217_v62 = vld [vmem:[%s5137_s1 + $0xb8] sm:$0xf0]  ;;  %v3755_v1 = vor.u32 %v3219_v56, %v2810_v55 }
  0x10   :  { %283 = vmatpush.bf16.msra.mxu1 %v2763_v22  ;;  %3313 = vmatpush.bf16.msra.mxu2 %v2763_v22  ;;  %v3215_v58 = vld [vmem:[%s5137_s1 + $0xac] sm:$0xf]  ;;  %v3760_v2 = vld [vmem:[%s5139_s0] sm:$0xff]  ;;  %v3765_v3 = vld [vmem:[%s5139_s0 + $0x10] sm:$0xff]  ;;  %v3778_v9 = vor.u32 %v3239_v57, %v2896_v60  ;;  %v2807_v10 = vor.u32 %v3217_v62, %v2806_v61 }
  0x11   :  { %526 = vmatpush.bf16.msra.mxu3 %v3642_v23  ;;  %v3770_v4 = vld [vmem:[%s5140_s9] sm:$0xff]  ;;  %v2803_v5 = vor.u32 %v3215_v58, %v2800_v59  ;;  %v2854_v6 = vld [vmem:[%s5138_s2 + $0x50] sm:$0xf]  ;;  %v3229_v8 = vld [vmem:[%s5138_s2 + $0x58] sm:$0xf0] }
  0x12   :  { %v3236_v12 = vld [vmem:[%s5138_s2 + $0x94] sm:$0xf]  ;;  %v2788_v14 = vld [vmem:[%s5137_s1 + $0x9c] sm:$0xf0]  ;;  %v2794_v16 = vld [vmem:[%s5137_s1 + $0x98] sm:$0xf]  ;;  %v3801_v19 = vpack.c.bf16 %v3770_v4, %v3770_v4  ;;  %v3803_v20 = vor.u32 %v3229_v8, %v2854_v6 }
  0x13   :  { %551 = vmatpush.bf16.msra.mxu0 %v3710_v48  ;;  %v3212_v13 = vld [vmem:[%s5137_s1 + $0x94] sm:$0xf]  ;;  %v2884_v15 = vld [vmem:[%s5138_s2 + $0x9c] sm:$0xf0]  ;;  %v3214_v18 = vld [vmem:[%s5137_s1 + $0xa0] sm:$0xf0] }
  0x14   :  { %284 = vmatpush.bf16.msra.mxu1 %v2751_v29  ;;  %3314 = vmatpush.bf16.msra.mxu2 %v2751_v29  ;;  %v2791_v21 = vor.u32 %v3212_v13, %v2788_v14  ;;  %v2842_v22 = vld [vmem:[%s5138_s2 + $0x38] sm:$0xf]  ;;  %v3226_v24 = vld [vmem:[%s5138_s2 + $0x40] sm:$0xf0]  ;;  %v3813_v25 = vor.u32 %v3236_v12, %v2884_v15  ;;  %v2795_v26 = vor.u32 %v3214_v18, %v2794_v16  ;;  %v3233_v27 = vld [vmem:[%s5138_s2 + $0x7c] sm:$0xf] }
  0x15   :  { %527 = vmatpush.bf16.msra.mxu3 %v3663_v31  ;;  %v3209_v28 = vld [vmem:[%s5137_s1 + $0x7c] sm:$0xf]  ;;  %v2776_v29 = vld [vmem:[%s5137_s1 + $0x84] sm:$0xf0]  ;;  %v2782_v32 = vld [vmem:[%s5137_s1 + $0x80] sm:$0xf]  ;;  %v3837_v34 = vor.u32 %v3226_v24, %v2842_v22 }
  0x16   :  { %v2872_v30 = vld [vmem:[%s5138_s2 + $0x84] sm:$0xf0]  ;;  %v3211_v33 = vld [vmem:[%s5137_s1 + $0x88] sm:$0xf0]  ;;  %v2779_v36 = vor.u32 %v3209_v28, %v2776_v29  ;;  %v2830_v37 = vld [vmem:[%s5138_s2 + $0x20] sm:$0xf] }
  0x17   :  { %552 = vmatpush.bf16.msra.mxu0 %v3752_v63  ;;  %v3223_v38 = vld [vmem:[%s5138_s2 + $0x28] sm:$0xf0]  ;;  %v2783_v41 = vor.u32 %v3211_v33, %v2782_v32  ;;  %v3230_v43 = vld [vmem:[%s5138_s2 + $0x64] sm:$0xf]  ;;  %v2764_v45 = vld [vmem:[%s5137_s1 + $0x6c] sm:$0xf0] }
  0x18   :  { %285 = vmatpush.bf16.msra.mxu1 %v2739_v40  ;;  %3315 = vmatpush.bf16.msra.mxu2 %v2739_v40  ;;  %v3846_v40 = vor.u32 %v3233_v27, %v2872_v30  ;;  %v3206_v44 = vld [vmem:[%s5137_s1 + $0x64] sm:$0xf]  ;;  %v2860_v46 = vld [vmem:[%s5138_s2 + $0x6c] sm:$0xf0]  ;;  %v2770_v47 = vld [vmem:[%s5137_s1 + $0x68] sm:$0xf]  ;;  %v3867_v50 = vor.u32 %v3223_v38, %v2830_v37 }
  0x19   :  { %528 = vmatpush.bf16.msra.mxu3 %v3692_v42  ;;  %v2767_v51 = vor.u32 %v3206_v44, %v2764_v45  ;;  %v2818_v52 = vld [vmem:[%s5138_s2 + $0x8] sm:$0xf]  ;;  %v3220_v54 = vld [vmem:[%s5138_s2 + $0x10] sm:$0xf0]  ;;  %v3876_v55 = vor.u32 %v3230_v43, %v2860_v46  ;;  %v3227_v57 = vld [vmem:[%s5138_s2 + $0x4c] sm:$0xf] }
  0x1a   :  { %v3203_v58 = vld [vmem:[%s5137_s1 + $0x4c] sm:$0xf]  ;;  %v2752_v59 = vld [vmem:[%s5137_s1 + $0x54] sm:$0xf0]  ;;  %v2758_v61 = vld [vmem:[%s5137_s1 + $0x50] sm:$0xf] }
  0x1b   :  { %553 = vmatpush.bf16.msra.mxu0 %v3803_v20  ;;  %v2848_v60 = vld [vmem:[%s5138_s2 + $0x54] sm:$0xf0]  ;;  %v3205_v62 = vld [vmem:[%s5137_s1 + $0x58] sm:$0xf0]  ;;  %v2755_v8 = vor.u32 %v3203_v58, %v2752_v59  ;;  %v3224_v13 = vld [vmem:[%s5138_s2 + $0x34] sm:$0xf] }
  0x1c   :  { %286 = vmatpush.bf16.msra.mxu1 %v2727_v49  ;;  %3316 = vmatpush.bf16.msra.mxu2 %v2727_v49  ;;  %v3208_v49 = vld [vmem:[%s5137_s1 + $0x70] sm:$0xf0]  ;;  %v3907_v6 = vld [vmem:[%s5139_s0 + $0x18] sm:$0xff]  ;;  %v2759_v12 = vor.u32 %v3205_v62, %v2758_v61  ;;  %v2740_v15 = vld [vmem:[%s5137_s1 + $0x3c] sm:$0xf0] }
  0x1d   :  { %529 = vmatpush.bf16.msra.mxu3 %v3722_v53  ;;  %v2771_v56 = vor.u32 %v3208_v49, %v2770_v47  ;;  %v3200_v14 = vld [vmem:[%s5137_s1 + $0x34] sm:$0xf]  ;;  %v2836_v16 = vld [vmem:[%s5138_s2 + $0x3c] sm:$0xf0]  ;;  %v2746_v18 = vld [vmem:[%s5137_s1 + $0x38] sm:$0xf] }
  0x1e   :  { %v2743_v22 = vor.u32 %v3200_v14, %v2740_v15  ;;  %v3933_v24 = vor.u32 %v3224_v13, %v2836_v16  ;;  %v3221_v27 = vld [vmem:[%s5138_s2 + $0x1c] sm:$0xf]  ;;  %v2728_v29 = vld [vmem:[%s5137_s1 + $0x24] sm:$0xf0]  ;;  %v2734_v32 = vld [vmem:[%s5137_s1 + $0x20] sm:$0xf] }
  0x1f   :  { %554 = vmatpush.bf16.msra.mxu0 %v3837_v34  ;;  %v3197_v28 = vld [vmem:[%s5137_s1 + $0x1c] sm:$0xf]  ;;  %v2824_v30 = vld [vmem:[%s5138_s2 + $0x24] sm:$0xf0]  ;;  %v3199_v33 = vld [vmem:[%s5137_s1 + $0x28] sm:$0xf0] }
  0x20   :  { %287 = vmatpush.bf16.msra.mxu1 %v2715_v0  ;;  %3317 = vmatpush.bf16.msra.mxu2 %v2715_v0  ;;  %v3897_v0 = vor.u32 %v3220_v54, %v2818_v52  ;;  %v3958_v37 = vor.u32 %v3221_v27, %v2824_v30  ;;  %v2735_v38 = vor.u32 %v3199_v33, %v2734_v32  ;;  %v3194_v43 = vld [vmem:[%s5137_s1 + $0x4] sm:$0xf]  ;;  %v2716_v44 = vld [vmem:[%s5137_s1 + $0xc] sm:$0xf0]  ;;  %v2722_v46 = vld [vmem:[%s5137_s1 + $0x8] sm:$0xf] }
  0x21   :  { %530 = vmatpush.bf16.msra.mxu3 %v3755_v1  ;;  %v2812_v45 = vld [vmem:[%s5138_s2 + $0xc] sm:$0xf0]  ;;  %v3196_v47 = vld [vmem:[%s5137_s1 + $0x10] sm:$0xf0]  ;;  %v2719_v49 = vor.u32 %v3194_v43, %v2716_v44 }
  0x22   :  { %v2723_v52 = vor.u32 %v3196_v47, %v2722_v46  ;;  %v4084_v47 = vld [vmem:[%s5141_s4] ss:$0 sm:$0xff] }
  0x23   :  { %288 = vmatmul.bf16.vlgmr.msra.gmra.mxu1 %v3760_v2  ;;  %298 = vmatmul.bf16.vlgmr.msra.gmra.mxu2 %v3765_v3 }
  0x24   :  { %309 = vmatpush.bf16.msrb.mxu1 %v2803_v5  ;;  %338 = vmatpush.bf16.msrb.mxu2 %v2807_v10  ;;  %v3902_v5 = vld [vmem:[%s5139_s0 + $0x8] sm:$0xff]  ;;  %v3910_v10 = vor.u32 %v3227_v57, %v2848_v60 }
  0x25   :  { %536 = vmatpush.bf16.msrb.mxu3 %v3778_v9  ;;  %555 = vmatpush.bf16.msra.mxu0 %v3867_v50 }
  0x26   :  { %531 = vmatmul.bf16.vlgmr.msra.gmra.mxu3 %v3801_v19 }
  0x28   :  { %310 = vmatpush.bf16.msrb.mxu1 %v2791_v21  ;;  %339 = vmatpush.bf16.msrb.mxu2 %v2795_v26  ;;  %v3202_v21 = vld [vmem:[%s5137_s1 + $0x40] sm:$0xf0] }
  0x29   :  { %537 = vmatpush.bf16.msrb.mxu3 %v3813_v25  ;;  %556 = vmatpush.bf16.msra.mxu0 %v3897_v0  ;;  %v2747_v26 = vor.u32 %v3202_v21, %v2746_v18 }
  0x2c   :  { %311 = vmatpush.bf16.msrb.mxu1 %v2779_v36  ;;  %340 = vmatpush.bf16.msrb.mxu2 %v2783_v41  ;;  %v2731_v36 = vor.u32 %v3197_v28, %v2728_v29  ;;  %v3218_v41 = vld [vmem:[%s5138_s2 + $0x4] sm:$0xf] }
  0x2d   :  { %538 = vmatpush.bf16.msrb.mxu3 %v3846_v40  ;;  %708 = vmatpush.bf16.msrb.mxu0 %v3603_v7 }
  0x2e   :  { %557 = vmatmul.bf16.vlgmr.msra.gmra.mxu0 %v3801_v19 }
  0x30   :  { %312 = vmatpush.bf16.msrb.mxu1 %v2767_v51  ;;  %341 = vmatpush.bf16.msrb.mxu2 %v2771_v56  ;;  %v3980_v51 = vor.u32 %v3218_v41, %v2812_v45 }
  0x31   :  { %539 = vmatpush.bf16.msrb.mxu3 %v3876_v55  ;;  %709 = vmatpush.bf16.msrb.mxu0 %v3612_v11 }
  0x33   :  { %293 = vmatmul.bf16.gmra.mxu1 %v3902_v5  ;;  %303 = vmatmul.bf16.gmra.mxu2 %v3907_v6 }
  0x34   :  { %313 = vmatpush.bf16.msrb.mxu1 %v2755_v8  ;;  %342 = vmatpush.bf16.msrb.mxu2 %v2759_v12 }
  0x35   :  { %540 = vmatpush.bf16.msrb.mxu3 %v3910_v10  ;;  %710 = vmatpush.bf16.msrb.mxu0 %v3627_v17 }
  0x38   :  { %314 = vmatpush.bf16.msrb.mxu1 %v2743_v22  ;;  %343 = vmatpush.bf16.msrb.mxu2 %v2747_v26 }
  0x39   :  { %541 = vmatpush.bf16.msrb.mxu3 %v3933_v24  ;;  %711 = vmatpush.bf16.msrb.mxu0 %v3642_v23 }
  0x3c   :  { %315 = vmatpush.bf16.msrb.mxu1 %v2731_v36  ;;  %344 = vmatpush.bf16.msrb.mxu2 %v2735_v38 }
  0x3d   :  { %542 = vmatpush.bf16.msrb.mxu3 %v3958_v37  ;;  %712 = vmatpush.bf16.msrb.mxu0 %v3663_v31 }
  0x40   :  { %316 = vmatpush.bf16.msrb.mxu1 %v2719_v49  ;;  %345 = vmatpush.bf16.msrb.mxu2 %v2723_v52 }
  0x41   :  { %543 = vmatpush.bf16.msrb.mxu3 %v3980_v51  ;;  %713 = vmatpush.bf16.msrb.mxu0 %v3692_v42 }
  0x43   :  { %317 = vmatmul.bf16.vlgmr.msrb.gmra.mxu1 %v3760_v2  ;;  %346 = vmatmul.bf16.vlgmr.msrb.gmra.mxu2 %v3760_v2  ;;  %v107_v2 = vld [vmem:[%s5142_s3] sm:$0x7] }
  0x44   :  { %615 = vmatpush.bf16.msra.mxu1 %v3603_v7  ;;  %628 = vmatpush.bf16.msra.mxu2 %v3778_v9  ;;  %v4074_v27 = vperm.slane %v107_v2, 1 }
  0x45   :  { %641 = vmatpush.bf16.msra.mxu3 %v3674_v35  ;;  %714 = vmatpush.bf16.msrb.mxu0 %v3722_v53 }
  0x46   :  { %544 = vmatmul.bf16.vlgmr.msrb.gmra.mxu3 %v3801_v19  ;;  %v4056_v19 = vperm.slane %v107_v2, 0 }
  0x48   :  { %616 = vmatpush.bf16.msra.mxu1 %v3612_v11  ;;  %629 = vmatpush.bf16.msra.mxu2 %v3813_v25 }
  0x49   :  { %642 = vmatpush.bf16.msra.mxu3 %v3686_v39  ;;  %715 = vmatpush.bf16.msrb.mxu0 %v3755_v1 }
  0x4c   :  { %617 = vmatpush.bf16.msra.mxu1 %v3627_v17  ;;  %630 = vmatpush.bf16.msra.mxu2 %v3846_v40 }
  0x4d   :  { %643 = vmatpush.bf16.msra.mxu3 %v3710_v48  ;;  %814 = vmatpush.bf16.msra.mxu0 %v3778_v9 }
  0x50   :  { %618 = vmatpush.bf16.msra.mxu1 %v3642_v23  ;;  %631 = vmatpush.bf16.msra.mxu2 %v3876_v55 }
  0x51   :  { %644 = vmatpush.bf16.msra.mxu3 %v3752_v63  ;;  %815 = vmatpush.bf16.msra.mxu0 %v3813_v25 }
  0x53   :  { %322 = vmatmul.bf16.gmra.mxu1 %v3902_v5  ;;  %351 = vmatmul.bf16.gmra.mxu2 %v3902_v5 }
  0x54   :  { %619 = vmatpush.bf16.msra.mxu1 %v3663_v31  ;;  %632 = vmatpush.bf16.msra.mxu2 %v3910_v10 }
  0x55   :  { %645 = vmatpush.bf16.msra.mxu3 %v3803_v20  ;;  %816 = vmatpush.bf16.msra.mxu0 %v3846_v40 }
  0x58   :  { %620 = vmatpush.bf16.msra.mxu1 %v3692_v42  ;;  %633 = vmatpush.bf16.msra.mxu2 %v3933_v24 }
  0x59   :  { %646 = vmatpush.bf16.msra.mxu3 %v3837_v34  ;;  %817 = vmatpush.bf16.msra.mxu0 %v3876_v55 }
  0x5c   :  { %621 = vmatpush.bf16.msra.mxu1 %v3722_v53  ;;  %634 = vmatpush.bf16.msra.mxu2 %v3958_v37 }
  0x5d   :  { %647 = vmatpush.bf16.msra.mxu3 %v3867_v50  ;;  %818 = vmatpush.bf16.msra.mxu0 %v3910_v10 }
  0x60   :  { %622 = vmatpush.bf16.msra.mxu1 %v3755_v1  ;;  %635 = vmatpush.bf16.msra.mxu2 %v3980_v51 }
  0x61   :  { %648 = vmatpush.bf16.msra.mxu3 %v3897_v0  ;;  %819 = vmatpush.bf16.msra.mxu0 %v3933_v24 }
  0x63   :  { %327 = vmatmul.bf16.gmra.mxu1 %v3765_v3  ;;  %356 = vmatmul.bf16.gmra.mxu2 %v3765_v3 }
  0x64   :  { %721 = vmatpush.bf16.msrb.mxu1 %v3778_v9  ;;  %734 = vmatpush.bf16.msrb.mxu2 %v3674_v35 }
  0x65   :  { %801 = vmatpush.bf16.msrb.mxu3 %v3603_v7  ;;  %820 = vmatpush.bf16.msra.mxu0 %v3958_v37 }
  0x68   :  { %722 = vmatpush.bf16.msrb.mxu1 %v3813_v25  ;;  %735 = vmatpush.bf16.msrb.mxu2 %v3686_v39 }
  0x69   :  { %802 = vmatpush.bf16.msrb.mxu3 %v3612_v11  ;;  %821 = vmatpush.bf16.msra.mxu0 %v3980_v51 }
  0x6c   :  { %723 = vmatpush.bf16.msrb.mxu1 %v3846_v40  ;;  %736 = vmatpush.bf16.msrb.mxu2 %v3710_v48 }
  0x6d   :  { %803 = vmatpush.bf16.msrb.mxu3 %v3627_v17 }
  0x70   :  { %724 = vmatpush.bf16.msrb.mxu1 %v3876_v55  ;;  %737 = vmatpush.bf16.msrb.mxu2 %v3752_v63 }
  0x71   :  { %804 = vmatpush.bf16.msrb.mxu3 %v3642_v23 }
  0x73   :  { %332 = vmatmul.bf16.gmra.mxu1 %v3907_v6  ;;  %361 = vmatmul.bf16.gmra.mxu2 %v3907_v6 }
  0x74   :  { %725 = vmatpush.bf16.msrb.mxu1 %v3910_v10  ;;  %738 = vmatpush.bf16.msrb.mxu2 %v3803_v20 }
  0x75   :  { %805 = vmatpush.bf16.msrb.mxu3 %v3663_v31 }
  0x78   :  { %726 = vmatpush.bf16.msrb.mxu1 %v3933_v24  ;;  %739 = vmatpush.bf16.msrb.mxu2 %v3837_v34 }
  0x79   :  { %806 = vmatpush.bf16.msrb.mxu3 %v3692_v42 }
  0x7c   :  { %727 = vmatpush.bf16.msrb.mxu1 %v3958_v37  ;;  %740 = vmatpush.bf16.msrb.mxu2 %v3867_v50 }
  0x7d   :  { %807 = vmatpush.bf16.msrb.mxu3 %v3722_v53 }
  0x80   :  { %728 = vmatpush.bf16.msrb.mxu1 %v3980_v51  ;;  %741 = vmatpush.bf16.msrb.mxu2 %v3897_v0 }
  0x81   :  { %808 = vmatpush.bf16.msrb.mxu3 %v3755_v1 }
  0xa0   :  { %v289_v3 = vpop.f32.mrf.mxu1 }
  0xa1   :  { %v290_v54 = vadd.f32 %v289_v3, %v4056_v19  ;;  %v4086_v3 = vperm.slane %v107_v2, 2 }
  0xa6   :  { %v299_v56 = vpop.f32.mrf.mxu2 }
  0xa7   :  { %v4060_v57 = vadd.f32 %v299_v56, %v4056_v19 }
  0xa8   :  { %v4062_v60 = vpop.f32.mrf.mxu1 }
  0xa9   :  { %v532_v58 = vpop.f32.mrf.mxu3 }
  0xaa   :  { %v562_v59 = vadd.f32 %v532_v58, %v290_v54 }
  0xab   :  { %v558_v12 = vpop.f32.mrf.mxu0 }
  0xac   :  { %v2904_v61 = vmul.f32 -1.442695, %v562_v59  ;;  %v602_v58 = vadd.f32 %v4084_v47, %v558_v12 }
  0xae   :  { %3321 = vpow2.f32 %v2904_v61  ;;  %v4064_v62 = vpop.f32.mrf.mxu2 }
  0xb0   :  { %v294_v6 = vpop.f32.mrf.mxu1 }
  0xb1   :  { %v534_v5 = vpop.f32.mrf.mxu3  ;;  %v4067_v8 = vadd.f32 %v294_v6, %v4056_v19 }
  0xb3   :  { %v560_v21 = vpop.f32.mrf.mxu0 }
  0xb4   :  { %v3322_v13 = vpop.eup %3321 }
  0xb5   :  { %v566_v14 = vadd.f32 1.0, %v3322_v13 }
  0xb6   :  { %v304_v15 = vpop.f32.mrf.mxu2 }
  0xb7   :  { %3323 = vrcp.f32 %v566_v14  ;;  %v4070_v16 = vadd.f32 %v304_v15, %v4056_v19  ;;  %v578_v46 = vand.u32 2147483648, %v566_v14  ;;  %vm572_vm1 = vweird.f32 %v566_v14 }
  0xb8   :  { %v4072_v18 = vpop.f32.mrf.mxu1  ;;  %v576_v49 = vand.u32 2147483647, %v566_v14 }
  0xb9   :  { %v579_v56 = vor.u32 1.1754944e-38, %v578_v46 }
  0xba   :  { %vm577_vm3 = vcmp.eq.f32.partialorder %v576_v49, 8.507059e+37 }
  0xbd   :  { %v3324_v22 = vpop.eup %3323 }
  0xbe   :  { %v568_v26 = vmul.f32 %v3324_v22, %v566_v14  ;;  %v4076_v28 = vpop.f32.mrf.mxu2  ;;  %vm573_vm0 = vweird.f32 %v3324_v22 }
  0xbf   :  { %5151 = vst [vmem:[#allocation4_spill] sm:$0xff] %v4076_v28  ;;  %vm574_vm2 = vmor %vm572_vm1, %vm573_vm0 }
  0xc0   :  { %v318_v29 = vpop.f32.mrf.mxu1  ;;  %v569_v30 = vsub.f32 1.0, %v568_v26 }
  0xc1   :  { %v319_v32 = vadd.f32 %v318_v29, %v4074_v27 }
  0xc2   :  { %v570_v33 = vmul.f32 %v3324_v22, %v569_v30 }
  0xc4   :  { %v571_v44 = vadd.f32 %v3324_v22, %v570_v33 }
  0xc6   :  { %v347_v41 = vpop.f32.mrf.mxu2  ;;  %v575_v52 = vsel %vm574_vm2, %v3324_v22, %v571_v44 }
  0xc7   :  { %v580_v5 = vsel %vm577_vm3, %v579_v56, %v575_v52  ;;  %v348_v13 = vadd.f32 %v347_v41, %v4086_v3 }
  0xc8   :  { %v4079_v45 = vpop.f32.mrf.mxu1  ;;  %v603_v14 = vmul.f32 %v602_v58, %v580_v5 }
  0xc9   :  { %v545_v36 = vpop.f32.mrf.mxu3 }
  0xca   :  { %v582_v38 = vadd.f32 %v545_v36, %v319_v32  ;;  %v604_v2 = vadd.f32 %v603_v14, %v348_v13 }
  0xcc   :  { %v2905_v43 = vmul.f32 -1.442695, %v582_v38 }
  0xce   :  { %3325 = vpow2.f32 %v2905_v43  ;;  %v4089_v59 = vpop.f32.mrf.mxu2 }
  0xd0   :  { %v323_v15 = vpop.f32.mrf.mxu1 }
  0xd1   :  { %v547_v54 = vpop.f32.mrf.mxu3  ;;  %v4093_v21 = vadd.f32 %v323_v15, %v4074_v27 }
  0xd4   :  { %v3326_v61 = vpop.eup %3325 }
  0xd5   :  { %v586_v6 = vadd.f32 1.0, %v3326_v61 }
  0xd6   :  { %v352_v22 = vpop.f32.mrf.mxu2 }
  0xd7   :  { %3327 = vrcp.f32 %v586_v6  ;;  %v4096_v26 = vadd.f32 %v352_v22, %v4086_v3  ;;  %v598_v33 = vand.u32 2147483648, %v586_v6  ;;  %v596_v38 = vand.u32 2147483647, %v586_v6 }
  0xd8   :  { %3329 = vtanh.f32 %v604_v2  ;;  %v4098_v12 = vpop.f32.mrf.mxu1  ;;  %vm592_vm5 = vweird.f32 %v586_v6 }
  0xd9   :  { %v599_v46 = vor.u32 1.1754944e-38, %v598_v33  ;;  %vm597_vm7 = vcmp.eq.f32.partialorder %v596_v38, 8.507059e+37 }
  0xdd   :  { %v3328_v29 = vpop.eup %3327 }
  0xde   :  { %v588_v30 = vmul.f32 %v3328_v29, %v586_v6  ;;  %vm593_vm4 = vweird.f32 %v3328_v29  ;;  %v3330_v41 = vpop.eup %3329  ;;  %v4100_v43 = vpop.f32.mrf.mxu2 }
  0xdf   :  { %vm594_vm6 = vmor %vm592_vm5, %vm593_vm4  ;;  %v606_v52 = vsub.f32 %v3770_v4, %v3330_v41 }
  0xe0   :  { %v589_v32 = vsub.f32 1.0, %v588_v30  ;;  %v328_v49 = vpop.f32.mrf.mxu1 }
  0xe1   :  { %v4104_v56 = vadd.f32 %v328_v49, %v4074_v27 }
  0xe2   :  { %v590_v36 = vmul.f32 %v3328_v29, %v589_v32 }
  0xe4   :  { %v591_v44 = vadd.f32 %v3328_v29, %v590_v36  ;;  %v292_v36 = vadd.f32 %v4062_v60, %v4056_v19 }
  0xe6   :  { %v595_v54 = vsel %vm594_vm6, %v3328_v29, %v591_v44  ;;  %v357_v13 = vpop.f32.mrf.mxu2 }
  0xe7   :  { %v600_v58 = vsel %vm597_vm7, %v599_v46, %v595_v54  ;;  %v4111_v6 = vadd.f32 %v357_v13, %v4086_v3  ;;  %v321_v46 = vadd.f32 %v4079_v45, %v4074_v27 }
  0xe8   :  { %v607_v61 = vmul.f32 %v606_v52, %v600_v58  ;;  %v4113_v14 = vpop.f32.mrf.mxu1 }
  0xea   :  { %v4106_v5 = vadd.f32 %v3330_v41, %v607_v61 }
  0xec   :  { %v609_v15 = vpack.c.bf16 %v4106_v5, %v4106_v5 }
  0xee   :  { %610 = vst [vmem:[#allocation2] sm:$0xf] %v609_v15  ;;  %623 = vmatmul.bf16.vlgmr.msra.gmra.mxu1 %v609_v15  ;;  %636 = vmatmul.bf16.vlgmr.msra.gmra.mxu2 %v609_v15  ;;  %v4118_v4 = vpop.f32.mrf.mxu2 }
  0xef   :  { %649 = vmatmul.bf16.vlgmr.msra.gmra.mxu3 %v609_v15  ;;  %827 = vmatpush.bf16.msra.mxu1 %v3674_v35 }
  0xf0   :  { %894 = vmatpush.bf16.msra.mxu2 %v3603_v7  ;;  %907 = vmatpush.bf16.msra.mxu3 %v3778_v9  ;;  %v333_v2 = vpop.f32.mrf.mxu1 }
  0xf1   :  { %v4124_v22 = vadd.f32 %v333_v2, %v4074_v27 }
  0xf3   :  { %828 = vmatpush.bf16.msra.mxu1 %v3686_v39  ;;  %5152 = vst [vmem:[#allocation5_spill] sm:$0xff] %v4124_v22 }
  0xf4   :  { %895 = vmatpush.bf16.msra.mxu2 %v3612_v11  ;;  %908 = vmatpush.bf16.msra.mxu3 %v3813_v25 }
  0xf6   :  { %v362_v29 = vpop.f32.mrf.mxu2 }
  0xf7   :  { %829 = vmatpush.bf16.msra.mxu1 %v3710_v48  ;;  %v4131_v30 = vadd.f32 %v362_v29, %v4086_v3 }
  0xf8   :  { %896 = vmatpush.bf16.msra.mxu2 %v3627_v17  ;;  %909 = vmatpush.bf16.msra.mxu3 %v3846_v40  ;;  %v4147_v32 = vpop.f32.mrf.mxu1 }
  0xf9   :  { %5153 = vst [vmem:[#allocation6_spill] sm:$0xff] %v4131_v30 }
  0xfa   :  { %5154 = vst [vmem:[#allocation7_spill] sm:$0xff] %v4147_v32 }
  0xfb   :  { %830 = vmatpush.bf16.msra.mxu1 %v3752_v63 }
  0xfc   :  { %897 = vmatpush.bf16.msra.mxu2 %v3642_v23  ;;  %910 = vmatpush.bf16.msra.mxu3 %v3876_v55 }
  0xfe   :  { %v4149_v33 = vpop.f32.mrf.mxu2 }
  0xff   :  { %831 = vmatpush.bf16.msra.mxu1 %v3803_v20  ;;  %5155 = vst [vmem:[#allocation8_spill] sm:$0xff] %v4149_v33 }
 0x100   :  { %898 = vmatpush.bf16.msra.mxu2 %v3663_v31  ;;  %911 = vmatpush.bf16.msra.mxu3 %v3910_v10 }
 0x103   :  { %832 = vmatpush.bf16.msra.mxu1 %v3837_v34 }
 0x104   :  { %899 = vmatpush.bf16.msra.mxu2 %v3692_v42  ;;  %912 = vmatpush.bf16.msra.mxu3 %v3933_v24 }
 0x107   :  { %833 = vmatpush.bf16.msra.mxu1 %v3867_v50 }
 0x108   :  { %900 = vmatpush.bf16.msra.mxu2 %v3722_v53  ;;  %913 = vmatpush.bf16.msra.mxu3 %v3958_v37 }
 0x10b   :  { %834 = vmatpush.bf16.msra.mxu1 %v3897_v0 }
 0x10c   :  { %901 = vmatpush.bf16.msra.mxu2 %v3755_v1  ;;  %914 = vmatpush.bf16.msra.mxu3 %v3980_v51 }
 0x16b   :  { %v624_v38 = vpop.f32.mrf.mxu1 }
 0x16c   :  { %v654_v41 = vadd.f32 %v624_v38, %v292_v36 }
 0x16e   :  { %v2906_v44 = vmul.f32 -1.442695, %v654_v41 }
 0x170   :  { %3331 = vpow2.f32 %v2906_v44 }
 0x171   :  { %v637_v49 = vpop.f32.mrf.mxu2 }
 0x172   :  { %v674_v52 = vadd.f32 %v637_v49, %v321_v46  ;;  %v650_v54 = vpop.f32.mrf.mxu3 }
 0x173   :  { %v626_v58 = vpop.f32.mrf.mxu1 }
 0x174   :  { %v2907_v61 = vmul.f32 -1.442695, %v674_v52 }
 0x176   :  { %v3332_v13 = vpop.eup %3331  ;;  %3333 = vpow2.f32 %v2907_v61 }
 0x177   :  { %v658_v15 = vadd.f32 1.0, %v3332_v13 }
 0x179   :  { %3335 = vrcp.f32 %v658_v15  ;;  %v639_v2 = vpop.f32.mrf.mxu2  ;;  %v670_v41 = vand.u32 2147483648, %v658_v15  ;;  %v668_v44 = vand.u32 2147483647, %v658_v15  ;;  %vm664_vm9 = vweird.f32 %v658_v15 }
 0x17a   :  { %v652_v29 = vpop.f32.mrf.mxu3  ;;  %v694_v2 = vadd.f32 %v4084_v47, %v650_v54 }
 0x17b   :  { %v671_v52 = vor.u32 1.1754944e-38, %v670_v41  ;;  %vm669_vm11 = vcmp.eq.f32.partialorder %v668_v44, 8.507059e+37  ;;  %v350_v29 = vadd.f32 %v4089_v59, %v4086_v3 }
 0x17c   :  { %v3334_v33 = vpop.eup %3333 }
 0x17d   :  { %v678_v60 = vadd.f32 1.0, %v3334_v33 }
 0x17f   :  { %v3336_v28 = vpop.eup %3335  ;;  %3337 = vrcp.f32 %v678_v60  ;;  %v690_v22 = vand.u32 2147483648, %v678_v60  ;;  %vm684_vm13 = vweird.f32 %v678_v60 }
 0x180   :  { %v660_v36 = vmul.f32 %v3336_v28, %v658_v15  ;;  %vm665_vm8 = vweird.f32 %v3336_v28  ;;  %v688_v15 = vand.u32 2147483647, %v678_v60 }
 0x181   :  { %vm666_vm10 = vmor %vm664_vm9, %vm665_vm8 }
 0x182   :  { %v661_v38 = vsub.f32 1.0, %v660_v36  ;;  %vm689_vm15 = vcmp.eq.f32.partialorder %v688_v15, 8.507059e+37 }
 0x184   :  { %v662_v45 = vmul.f32 %v3336_v28, %v661_v38 }
 0x185   :  { %v3338_v46 = vpop.eup %3337 }
 0x186   :  { %v680_v49 = vmul.f32 %v3338_v46, %v678_v60  ;;  %v663_v58 = vadd.f32 %v3336_v28, %v662_v45  ;;  %vm685_vm12 = vweird.f32 %v3338_v46 }
 0x187   :  { %vm686_vm14 = vmor %vm684_vm13, %vm685_vm12 }
 0x188   :  { %v681_v61 = vsub.f32 1.0, %v680_v49  ;;  %v667_v13 = vsel %vm666_vm10, %v3336_v28, %v663_v58  ;;  %v691_v28 = vor.u32 1.1754944e-38, %v690_v22 }
 0x189   :  { %v672_v33 = vsel %vm669_vm11, %v671_v52, %v667_v13 }
 0x18a   :  { %v695_v36 = vmul.f32 %v694_v2, %v672_v33  ;;  %v682_v32 = vmul.f32 %v3338_v46, %v681_v61 }
 0x18c   :  { %v696_v38 = vadd.f32 %v695_v36, %v350_v29  ;;  %v683_v30 = vadd.f32 %v3338_v46, %v682_v32 }
 0x18e   :  { %3339 = vtanh.f32 %v696_v38  ;;  %v687_v41 = vsel %vm686_vm14, %v3338_v46, %v683_v30 }
 0x18f   :  { %v692_v54 = vsel %vm689_vm15, %v691_v28, %v687_v41 }
 0x194   :  { %v3340_v45 = vpop.eup %3339 }
 0x195   :  { %v698_v44 = vsub.f32 %v4106_v5, %v3340_v45 }
 0x197   :  { %v699_v49 = vmul.f32 %v698_v44, %v692_v54 }
 0x199   :  { %v4159_v58 = vadd.f32 %v3340_v45, %v699_v49 }
 0x19b   :  { %v701_v59 = vpack.c.bf16 %v4159_v58, %v4159_v58 }
 0x19d   :  { %703 = vst [vmem:[#allocation2 + $0x4] sm:$0xf] %v701_v59  ;;  %716 = vmatmul.bf16.vlgmr.msrb.gmra.mxu0 %v701_v59  ;;  %729 = vmatmul.bf16.vlgmr.msrb.gmra.mxu1 %v701_v59 }
 0x19e   :  { %742 = vmatmul.bf16.vlgmr.msrb.gmra.mxu2 %v701_v59  ;;  %920 = vmatpush.bf16.msrb.mxu0 %v3674_v35 }
 0x19f   :  { %987 = vmatpush.bf16.msrb.mxu1 %v3603_v7  ;;  %1000 = vmatpush.bf16.msrb.mxu2 %v3778_v9 }
 0x1a2   :  { %921 = vmatpush.bf16.msrb.mxu0 %v3686_v39 }
 0x1a3   :  { %988 = vmatpush.bf16.msrb.mxu1 %v3612_v11  ;;  %1001 = vmatpush.bf16.msrb.mxu2 %v3813_v25 }
 0x1a6   :  { %922 = vmatpush.bf16.msrb.mxu0 %v3710_v48 }
 0x1a7   :  { %989 = vmatpush.bf16.msrb.mxu1 %v3627_v17  ;;  %1002 = vmatpush.bf16.msrb.mxu2 %v3846_v40 }
 0x1aa   :  { %923 = vmatpush.bf16.msrb.mxu0 %v3752_v63 }
 0x1ab   :  { %990 = vmatpush.bf16.msrb.mxu1 %v3642_v23  ;;  %1003 = vmatpush.bf16.msrb.mxu2 %v3876_v55 }
 0x1ae   :  { %924 = vmatpush.bf16.msrb.mxu0 %v3803_v20 }
 0x1af   :  { %991 = vmatpush.bf16.msrb.mxu1 %v3663_v31  ;;  %1004 = vmatpush.bf16.msrb.mxu2 %v3910_v10 }
 0x1b2   :  { %925 = vmatpush.bf16.msrb.mxu0 %v3837_v34 }
 0x1b3   :  { %992 = vmatpush.bf16.msrb.mxu1 %v3692_v42  ;;  %1005 = vmatpush.bf16.msrb.mxu2 %v3933_v24 }
 0x1b6   :  { %926 = vmatpush.bf16.msrb.mxu0 %v3867_v50 }
 0x1b7   :  { %993 = vmatpush.bf16.msrb.mxu1 %v3722_v53  ;;  %1006 = vmatpush.bf16.msrb.mxu2 %v3958_v37 }
 0x1ba   :  { %927 = vmatpush.bf16.msrb.mxu0 %v3897_v0 }
 0x1bb   :  { %994 = vmatpush.bf16.msrb.mxu1 %v3755_v1  ;;  %1007 = vmatpush.bf16.msrb.mxu2 %v3980_v51 }
 0x21a   :  { %v717_v5 = vpop.f32.mrf.mxu0  ;;  %v730_v22 = vpop.f32.mrf.mxu1 }
 0x21b   :  { %v747_v30 = vadd.f32 %v717_v5, %v4067_v8  ;;  %v767_v32 = vadd.f32 %v730_v22, %v4093_v21 }
 0x21d   :  { %v2908_v60 = vmul.f32 -1.442695, %v747_v30  ;;  %v2909_v46 = vmul.f32 -1.442695, %v767_v32 }
 0x21f   :  { %3341 = vpow2.f32 %v2908_v60 }
 0x220   :  { %3343 = vpow2.f32 %v2909_v46 }
 0x221   :  { %v743_v52 = vpop.f32.mrf.mxu2 }
 0x222   :  { %v719_v61 = vpop.f32.mrf.mxu0  ;;  %v732_v13 = vpop.f32.mrf.mxu1  ;;  %v787_v30 = vadd.f32 %v4084_v47, %v743_v52 }
 0x225   :  { %v3342_v2 = vpop.eup %3341 }
 0x226   :  { %v3344_v33 = vpop.eup %3343  ;;  %v751_v29 = vadd.f32 1.0, %v3342_v2 }
 0x227   :  { %v771_v36 = vadd.f32 1.0, %v3344_v33 }
 0x228   :  { %3345 = vrcp.f32 %v751_v29  ;;  %v763_v21 = vand.u32 2147483648, %v751_v29  ;;  %v761_v54 = vand.u32 2147483647, %v751_v29  ;;  %vm757_vm1 = vweird.f32 %v751_v29 }
 0x229   :  { %3347 = vrcp.f32 %v771_v36  ;;  %v745_v38 = vpop.f32.mrf.mxu2  ;;  %v783_v2 = vand.u32 2147483648, %v771_v36  ;;  %vm777_vm5 = vweird.f32 %v771_v36  ;;  %v781_v33 = vand.u32 2147483647, %v771_v36 }
 0x22a   :  { %v764_v5 = vor.u32 1.1754944e-38, %v763_v21  ;;  %vm762_vm3 = vcmp.eq.f32.partialorder %v761_v54, 8.507059e+37  ;;  %v297_v54 = vadd.f32 %v4072_v18, %v4056_v19 }
 0x22b   :  { %vm782_vm7 = vcmp.eq.f32.partialorder %v781_v33, 8.507059e+37 }
 0x22e   :  { %v3346_v15 = vpop.eup %3345 }
 0x22f   :  { %v3348_v41 = vpop.eup %3347  ;;  %v753_v45 = vmul.f32 %v3346_v15, %v751_v29  ;;  %vm758_vm0 = vweird.f32 %v3346_v15 }
 0x230   :  { %v773_v28 = vmul.f32 %v3348_v41, %v771_v36  ;;  %vm759_vm2 = vmor %vm757_vm1, %vm758_vm0  ;;  %vm778_vm4 = vweird.f32 %v3348_v41 }
 0x231   :  { %v754_v8 = vsub.f32 1.0, %v753_v45  ;;  %vm779_vm6 = vmor %vm777_vm5, %vm778_vm4  ;;  %v784_v45 = vor.u32 1.1754944e-38, %v783_v2 }
 0x232   :  { %v774_v59 = vsub.f32 1.0, %v773_v28 }
 0x233   :  { %v755_v44 = vmul.f32 %v3346_v15, %v754_v8 }
 0x234   :  { %v775_v46 = vmul.f32 %v3348_v41, %v774_v59 }
 0x235   :  { %v756_v49 = vadd.f32 %v3346_v15, %v755_v44 }
 0x236   :  { %v776_v13 = vadd.f32 %v3348_v41, %v775_v46 }
 0x237   :  { %v760_v22 = vsel %vm759_vm2, %v3346_v15, %v756_v49 }
 0x238   :  { %v765_v32 = vsel %vm762_vm3, %v764_v5, %v760_v22  ;;  %v780_v29 = vsel %vm779_vm6, %v3348_v41, %v776_v13 }
 0x239   :  { %v788_v60 = vmul.f32 %v787_v30, %v765_v32  ;;  %v785_v8 = vsel %vm782_vm7, %v784_v45, %v780_v29 }
 0x23b   :  { %v789_v61 = vadd.f32 %v788_v60, %v4096_v26 }
 0x23d   :  { %3349 = vtanh.f32 %v789_v61 }
 0x243   :  { %v3350_v38 = vpop.eup %3349 }
 0x244   :  { %v791_v15 = vsub.f32 %v4159_v58, %v3350_v38  ;;  %v326_v58 = vadd.f32 %v4098_v12, %v4074_v27 }
 0x246   :  { %v792_v52 = vmul.f32 %v791_v15, %v785_v8 }
 0x248   :  { %v4192_v28 = vadd.f32 %v3350_v38, %v792_v52 }
 0x24a   :  { %v794_v26 = vpack.c.bf16 %v4192_v28, %v4192_v28 }
 0x24c   :  { %796 = vst [vmem:[#allocation2 + $0x8] sm:$0xf] %v794_v26  ;;  %809 = vmatmul.bf16.vlgmr.msrb.gmra.mxu3 %v794_v26  ;;  %822 = vmatmul.bf16.vlgmr.msra.gmra.mxu0 %v794_v26 }
 0x24d   :  { %835 = vmatmul.bf16.vlgmr.msra.gmra.mxu1 %v794_v26  ;;  %1013 = vmatpush.bf16.msrb.mxu3 %v3674_v35 }
 0x24e   :  { %1080 = vmatpush.bf16.msra.mxu0 %v3603_v7  ;;  %1093 = vmatpush.bf16.msra.mxu1 %v3778_v9 }
 0x251   :  { %1014 = vmatpush.bf16.msrb.mxu3 %v3686_v39 }
 0x252   :  { %1081 = vmatpush.bf16.msra.mxu0 %v3612_v11  ;;  %1094 = vmatpush.bf16.msra.mxu1 %v3813_v25 }
 0x255   :  { %1015 = vmatpush.bf16.msrb.mxu3 %v3710_v48 }
 0x256   :  { %1082 = vmatpush.bf16.msra.mxu0 %v3627_v17  ;;  %1095 = vmatpush.bf16.msra.mxu1 %v3846_v40 }
 0x259   :  { %1016 = vmatpush.bf16.msrb.mxu3 %v3752_v63 }
 0x25a   :  { %1083 = vmatpush.bf16.msra.mxu0 %v3642_v23  ;;  %1096 = vmatpush.bf16.msra.mxu1 %v3876_v55 }
 0x25d   :  { %1017 = vmatpush.bf16.msrb.mxu3 %v3803_v20 }
 0x25e   :  { %1084 = vmatpush.bf16.msra.mxu0 %v3663_v31  ;;  %1097 = vmatpush.bf16.msra.mxu1 %v3910_v10 }
 0x261   :  { %1018 = vmatpush.bf16.msrb.mxu3 %v3837_v34 }
 0x262   :  { %1085 = vmatpush.bf16.msra.mxu0 %v3692_v42  ;;  %1098 = vmatpush.bf16.msra.mxu1 %v3933_v24 }
 0x265   :  { %1019 = vmatpush.bf16.msrb.mxu3 %v3867_v50 }
 0x266   :  { %1086 = vmatpush.bf16.msra.mxu0 %v3722_v53  ;;  %1099 = vmatpush.bf16.msra.mxu1 %v3958_v37 }
 0x269   :  { %1020 = vmatpush.bf16.msrb.mxu3 %v3897_v0 }
 0x26a   :  { %1087 = vmatpush.bf16.msra.mxu0 %v3755_v1  ;;  %1100 = vmatpush.bf16.msra.mxu1 %v3980_v51 }
 0x2c9   :  { %v823_v36 = vpop.f32.mrf.mxu0 }
 0x2ca   :  { %v860_v41 = vadd.f32 %v823_v36, %v326_v58  ;;  %v836_v21 = vpop.f32.mrf.mxu1 }
 0x2cb   :  { %v880_v58 = vadd.f32 %v4084_v47, %v836_v21 }
 0x2cc   :  { %v2911_v44 = vmul.f32 -1.442695, %v860_v41 }
 0x2ce   :  { %3351 = vpow2.f32 %v2911_v44  ;;  %v355_v44 = vadd.f32 %v4100_v43, %v4086_v3 }
 0x2cf   :  { %v810_v49 = vpop.f32.mrf.mxu3 }
 0x2d0   :  { %v840_v59 = vadd.f32 %v810_v49, %v297_v54 }
 0x2d1   :  { %v825_v5 = vpop.f32.mrf.mxu0 }
 0x2d2   :  { %v2910_v22 = vmul.f32 -1.442695, %v840_v59  ;;  %v838_v30 = vpop.f32.mrf.mxu1 }
 0x2d4   :  { %3353 = vpow2.f32 %v2910_v22  ;;  %v3352_v32 = vpop.eup %3351 }
 0x2d5   :  { %v864_v61 = vadd.f32 1.0, %v3352_v32 }
 0x2d7   :  { %v812_v60 = vpop.f32.mrf.mxu3  ;;  %v876_v22 = vand.u32 2147483648, %v864_v61  ;;  %vm870_vm13 = vweird.f32 %v864_v61  ;;  %v874_v30 = vand.u32 2147483647, %v864_v61 }
 0x2d9   :  { %vm875_vm15 = vcmp.eq.f32.partialorder %v874_v30, 8.507059e+37 }
 0x2da   :  { %v3354_v46 = vpop.eup %3353 }
 0x2db   :  { %v844_v13 = vadd.f32 1.0, %v3354_v46  ;;  %v877_v46 = vor.u32 1.1754944e-38, %v876_v22 }
 0x2dd   :  { %3355 = vrcp.f32 %v844_v13  ;;  %v856_v18 = vand.u32 2147483648, %v844_v13  ;;  %v854_v15 = vand.u32 2147483647, %v844_v13  ;;  %vm850_vm9 = vweird.f32 %v844_v13 }
 0x2de   :  { %3357 = vrcp.f32 %v864_v61 }
 0x2df   :  { %v857_v26 = vor.u32 1.1754944e-38, %v856_v18  ;;  %vm855_vm11 = vcmp.eq.f32.partialorder %v854_v15, 8.507059e+37 }
 0x2e3   :  { %v3356_v12 = vpop.eup %3355 }
 0x2e4   :  { %v3358_v2 = vpop.eup %3357  ;;  %v846_v33 = vmul.f32 %v3356_v12, %v844_v13  ;;  %vm851_vm8 = vweird.f32 %v3356_v12 }
 0x2e5   :  { %v866_v38 = vmul.f32 %v3358_v2, %v864_v61  ;;  %vm852_vm10 = vmor %vm850_vm9, %vm851_vm8  ;;  %vm871_vm12 = vweird.f32 %v3358_v2 }
 0x2e6   :  { %v847_v29 = vsub.f32 1.0, %v846_v33  ;;  %vm872_vm14 = vmor %vm870_vm13, %vm871_vm12 }
 0x2e7   :  { %v867_v52 = vsub.f32 1.0, %v866_v38 }
 0x2e8   :  { %v848_v45 = vmul.f32 %v3356_v12, %v847_v29 }
 0x2e9   :  { %v868_v49 = vmul.f32 %v3358_v2, %v867_v52 }
 0x2ea   :  { %v849_v8 = vadd.f32 %v3356_v12, %v848_v45 }
 0x2eb   :  { %v869_v5 = vadd.f32 %v3358_v2, %v868_v49 }
 0x2ec   :  { %v853_v36 = vsel %vm852_vm10, %v3356_v12, %v849_v8 }
 0x2ed   :  { %v858_v41 = vsel %vm855_vm11, %v857_v26, %v853_v36  ;;  %v873_v32 = vsel %vm872_vm14, %v3358_v2, %v869_v5 }
 0x2ee   :  { %v881_v54 = vmul.f32 %v880_v58, %v858_v41  ;;  %v878_v13 = vsel %vm875_vm15, %v877_v46, %v873_v32  ;;  %v302_v46 = vadd.f32 %v4064_v62, %v4056_v19 }
 0x2f0   :  { %v882_v59 = vadd.f32 %v881_v54, %v355_v44 }
 0x2f2   :  { %3359 = vtanh.f32 %v882_v59 }
 0x2f8   :  { %v3360_v60 = vpop.eup %3359 }
 0x2f9   :  { %v884_v21 = vsub.f32 %v4192_v28, %v3360_v60 }
 0x2fb   :  { %v885_v12 = vmul.f32 %v884_v21, %v878_v13 }
 0x2fd   :  { %v4228_v33 = vadd.f32 %v3360_v60, %v885_v12 }
 0x2ff   :  { %v887_v43 = vpack.c.bf16 %v4228_v33, %v4228_v33 }
 0x301   :  { %889 = vst [vmem:[#allocation2 + $0xc] sm:$0xf] %v887_v43  ;;  %902 = vmatmul.bf16.vlgmr.msra.gmra.mxu2 %v887_v43  ;;  %915 = vmatmul.bf16.vlgmr.msra.gmra.mxu3 %v887_v43 }
 0x302   :  { %928 = vmatmul.bf16.vlgmr.msrb.gmra.mxu0 %v887_v43  ;;  %1106 = vmatpush.bf16.msra.mxu2 %v3674_v35 }
 0x303   :  { %1173 = vmatpush.bf16.msra.mxu3 %v3603_v7  ;;  %1186 = vmatpush.bf16.msrb.mxu0 %v3778_v9 }
 0x306   :  { %1107 = vmatpush.bf16.msra.mxu2 %v3686_v39 }
 0x307   :  { %1174 = vmatpush.bf16.msra.mxu3 %v3612_v11  ;;  %1187 = vmatpush.bf16.msrb.mxu0 %v3813_v25 }
 0x30a   :  { %1108 = vmatpush.bf16.msra.mxu2 %v3710_v48 }
 0x30b   :  { %1175 = vmatpush.bf16.msra.mxu3 %v3627_v17  ;;  %1188 = vmatpush.bf16.msrb.mxu0 %v3846_v40 }
 0x30e   :  { %1109 = vmatpush.bf16.msra.mxu2 %v3752_v63 }
 0x30f   :  { %1176 = vmatpush.bf16.msra.mxu3 %v3642_v23  ;;  %1189 = vmatpush.bf16.msrb.mxu0 %v3876_v55 }
 0x312   :  { %1110 = vmatpush.bf16.msra.mxu2 %v3803_v20 }
 0x313   :  { %1177 = vmatpush.bf16.msra.mxu3 %v3663_v31  ;;  %1190 = vmatpush.bf16.msrb.mxu0 %v3910_v10 }
 0x316   :  { %1111 = vmatpush.bf16.msra.mxu2 %v3837_v34 }
 0x317   :  { %1178 = vmatpush.bf16.msra.mxu3 %v3692_v42  ;;  %1191 = vmatpush.bf16.msrb.mxu0 %v3933_v24 }
 0x31a   :  { %1112 = vmatpush.bf16.msra.mxu2 %v3867_v50 }
 0x31b   :  { %1179 = vmatpush.bf16.msra.mxu3 %v3722_v53  ;;  %1192 = vmatpush.bf16.msrb.mxu0 %v3958_v37 }
 0x31e   :  { %1113 = vmatpush.bf16.msra.mxu2 %v3897_v0 }
 0x31f   :  { %1180 = vmatpush.bf16.msra.mxu3 %v3755_v1  ;;  %1193 = vmatpush.bf16.msrb.mxu0 %v3980_v51 }
 0x37f   :  { %v929_v7 = vpop.f32.mrf.mxu0 }
 0x380   :  { %v973_v15 = vadd.f32 %v4084_v47, %v929_v7 }
 0x384   :  { %v903_v11 = vpop.f32.mrf.mxu2  ;;  %v916_v17 = vpop.f32.mrf.mxu3 }
 0x385   :  { %v933_v23 = vadd.f32 %v903_v11, %v4060_v57  ;;  %v953_v31 = vadd.f32 %v916_v17, %v4104_v56  ;;  %v3262_v11 = vld [vmem:[%s5143_s5 + $0x80] sm:$0xf0] }
 0x387   :  { %v2912_v42 = vmul.f32 -1.442695, %v933_v23  ;;  %v2913_v9 = vmul.f32 -1.442695, %v953_v31  ;;  %v931_v25 = vpop.f32.mrf.mxu0  ;;  %v2987_v23 = vld [vmem:[%s5143_s5 + $0x60] sm:$0xf] }
 0x388   :  { %v3259_v31 = vld [vmem:[%s5143_s5 + $0x68] sm:$0xf0] }
 0x389   :  { %3361 = vpow2.f32 %v2912_v42  ;;  %v2988_v25 = vor.u32 %v3259_v31, %v2987_v23  ;;  %v3286_v23 = vld [vmem:[%s5144_s6 + $0x80] sm:$0xf0] }
 0x38a   :  { %3363 = vpow2.f32 %v2913_v9 }
 0x38c   :  { %v905_v53 = vpop.f32.mrf.mxu2  ;;  %v918_v40 = vpop.f32.mrf.mxu3 }
 0x38f   :  { %v3362_v55 = vpop.eup %3361 }
 0x390   :  { %v3364_v10 = vpop.eup %3363  ;;  %v937_v24 = vadd.f32 1.0, %v3362_v55 }
 0x391   :  { %v957_v1 = vadd.f32 1.0, %v3364_v10  ;;  %v2975_v10 = vld [vmem:[%s5143_s5 + $0x48] sm:$0xf] }
 0x392   :  { %3365 = vrcp.f32 %v937_v24  ;;  %v949_v57 = vand.u32 2147483648, %v937_v24  ;;  %v947_v29 = vand.u32 2147483647, %v937_v24  ;;  %vm943_vm1 = vweird.f32 %v937_v24 }
 0x393   :  { %3367 = vrcp.f32 %v957_v1  ;;  %v969_v44 = vand.u32 2147483648, %v957_v1  ;;  %vm963_vm5 = vweird.f32 %v957_v1  ;;  %v967_v54 = vand.u32 2147483647, %v957_v1 }
 0x394   :  { %v950_v18 = vor.u32 1.1754944e-38, %v949_v57  ;;  %vm948_vm3 = vcmp.eq.f32.partialorder %v947_v29, 8.507059e+37  ;;  %v3250_v29 = vld [vmem:[%s5143_s5 + $0x20] sm:$0xf0] }
 0x395   :  { %v970_v5 = vor.u32 1.1754944e-38, %v969_v44  ;;  %vm968_vm7 = vcmp.eq.f32.partialorder %v967_v54, 8.507059e+37 }
 0x398   :  { %v3366_v37 = vpop.eup %3365 }
 0x399   :  { %v3368_v51 = vpop.eup %3367  ;;  %v939_v28 = vmul.f32 %v3366_v37, %v937_v24  ;;  %vm944_vm0 = vweird.f32 %v3366_v37  ;;  %v3256_v24 = vld [vmem:[%s5143_s5 + $0x50] sm:$0xf0] }
 0x39a   :  { %v959_v2 = vmul.f32 %v3368_v51, %v957_v1  ;;  %vm945_vm2 = vmor %vm943_vm1, %vm944_vm0  ;;  %vm964_vm4 = vweird.f32 %v3368_v51 }
 0x39b   :  { %v940_v61 = vsub.f32 1.0, %v939_v28  ;;  %vm965_vm6 = vmor %vm963_vm5, %vm964_vm4  ;;  %v3253_v28 = vld [vmem:[%s5143_s5 + $0x38] sm:$0xf0] }
 0x39c   :  { %v960_v45 = vsub.f32 1.0, %v959_v2 }
 0x39d   :  { %v941_v56 = vmul.f32 %v3366_v37, %v940_v61 }
 0x39e   :  { %v961_v58 = vmul.f32 %v3368_v51, %v960_v45 }
 0x39f   :  { %v942_v38 = vadd.f32 %v3366_v37, %v941_v56  ;;  %v2951_v56 = vld [vmem:[%s5143_s5 + $0x18] sm:$0xf] }
 0x3a0   :  { %v962_v41 = vadd.f32 %v3368_v51, %v961_v58  ;;  %v2952_v45 = vor.u32 %v3250_v29, %v2951_v56  ;;  %v3071_v56 = vld [vmem:[%s5144_s6 + $0x48] sm:$0xf]  ;;  %v3280_v29 = vld [vmem:[%s5144_s6 + $0x50] sm:$0xf0] }
 0x3a1   :  { %v946_v8 = vsel %vm945_vm2, %v3366_v37, %v942_v38  ;;  %v2976_v37 = vor.u32 %v3256_v24, %v2975_v10 }
 0x3a2   :  { %v951_v52 = vsel %vm948_vm3, %v950_v18, %v946_v8  ;;  %v966_v49 = vsel %vm965_vm6, %v3368_v51, %v962_v41  ;;  %v2963_v51 = vld [vmem:[%s5143_s5 + $0x30] sm:$0xf] }
 0x3a3   :  { %v974_v26 = vmul.f32 %v973_v15, %v951_v52  ;;  %v971_v30 = vsel %vm968_vm7, %v970_v5, %v966_v49  ;;  %v2964_v2 = vor.u32 %v3253_v28, %v2963_v51  ;;  %v2939_v52 = vld [vmem:[%s5143_s5] sm:$0xf]  ;;  %v3031_v51 = vld [vmem:[%s5143_s5 + $0xb0] sm:$0xf] }
 0x3a5   :  { %v975_v36 = vadd.f32 %v974_v26, %v4111_v6  ;;  %v3247_v26 = vld [vmem:[%s5143_s5 + $0x8] sm:$0xf0] }
 0x3a6   :  { %v2940_v54 = vor.u32 %v3247_v26, %v2939_v52  ;;  %v3266_v52 = vld [vmem:[%s5143_s5 + $0xa0] sm:$0xf0] }
 0x3a7   :  { %3369 = vtanh.f32 %v975_v36 }
 0x3ad   :  { %v3370_v59 = vpop.eup %3369 }
 0x3ae   :  { %v977_v22 = vsub.f32 %v4228_v33, %v3370_v59 }
 0x3b0   :  { %v978_v32 = vmul.f32 %v977_v22, %v971_v30  ;;  %v360_v30 = vadd.f32 %v4118_v4, %v4086_v3 }
 0x3b2   :  { %v4261_v60 = vadd.f32 %v3370_v59, %v978_v32 }
 0x3b4   :  { %v980_v6 = vpack.c.bf16 %v4261_v60, %v4261_v60 }
 0x3b6   :  { %982 = vst [vmem:[#allocation2 + $0x10] sm:$0xf] %v980_v6  ;;  %995 = vmatmul.bf16.vlgmr.msrb.gmra.mxu1 %v980_v6  ;;  %1008 = vmatmul.bf16.vlgmr.msrb.gmra.mxu2 %v980_v6 }
 0x3b7   :  { %1021 = vmatmul.bf16.vlgmr.msrb.gmra.mxu3 %v980_v6  ;;  %1199 = vmatpush.bf16.msrb.mxu1 %v3674_v35  ;;  %v3023_v35 = vld [vmem:[%s5143_s5 + $0xa8] sm:$0xf] }
 0x3bb   :  { %1200 = vmatpush.bf16.msrb.mxu1 %v3686_v39  ;;  %v3268_v39 = vld [vmem:[%s5143_s5 + $0xb0] sm:$0xf0] }
 0x3bf   :  { %1201 = vmatpush.bf16.msrb.mxu1 %v3710_v48  ;;  %v3024_v48 = vor.u32 %v3268_v39, %v3023_v35 }
 0x3c1   :  { %1501 = vmatpush.bf16.msrb.mxu2 %v3024_v48 }
 0x3c3   :  { %1202 = vmatpush.bf16.msrb.mxu1 %v3752_v63 }
 0x3c7   :  { %1203 = vmatpush.bf16.msrb.mxu1 %v3803_v20  ;;  %v331_v20 = vadd.f32 %v4113_v14, %v4074_v27  ;;  %v2999_v14 = vld [vmem:[%s5143_s5 + $0x78] sm:$0xf] }
 0x3c8   :  { %v3000_v17 = vor.u32 %v3262_v11, %v2999_v14  ;;  %v3289_v14 = vld [vmem:[%s5144_s6 + $0x98] sm:$0xf0] }
 0x3cb   :  { %1204 = vmatpush.bf16.msrb.mxu1 %v3837_v34  ;;  %v3011_v34 = vld [vmem:[%s5143_s5 + $0x90] sm:$0xf] }
 0x3cf   :  { %1205 = vmatpush.bf16.msrb.mxu1 %v3867_v50  ;;  %v3265_v50 = vld [vmem:[%s5143_s5 + $0x98] sm:$0xf0] }
 0x3d0   :  { %v3012_v62 = vor.u32 %v3265_v50, %v3011_v34 }
 0x3d2   :  { %1502 = vmatpush.bf16.msrb.mxu2 %v3012_v62  ;;  %v4336_v62 = vld [vmem:[#allocation2 + $0x8] sm:$0xff] }
 0x3d3   :  { %1206 = vmatpush.bf16.msrb.mxu1 %v3897_v0 }
 0x3d6   :  { %1503 = vmatpush.bf16.msrb.mxu2 %v3000_v17  ;;  %v3095_v17 = vld [vmem:[%s5144_s6 + $0x78] sm:$0xf] }
 0x3d7   :  { %v4366_v31 = vor.u32 %v3286_v23, %v3095_v17  ;;  %v3271_v17 = vld [vmem:[%s5144_s6 + $0x8] sm:$0xf0] }
 0x3da   :  { %1504 = vmatpush.bf16.msrb.mxu2 %v2988_v25  ;;  %v3083_v25 = vld [vmem:[%s5144_s6 + $0x60] sm:$0xf] }
 0x3de   :  { %1505 = vmatpush.bf16.msrb.mxu2 %v2976_v37  ;;  %v3025_v37 = vld [vmem:[%s5143_s5 + $0xb4] sm:$0xf0] }
 0x3e2   :  { %1506 = vmatpush.bf16.msrb.mxu2 %v2964_v2 }
 0x3e6   :  { %1507 = vmatpush.bf16.msrb.mxu2 %v2952_v45  ;;  %v3013_v45 = vld [vmem:[%s5143_s5 + $0x9c] sm:$0xf0] }
 0x3ea   :  { %1508 = vmatpush.bf16.msrb.mxu2 %v2940_v54  ;;  %v3277_v54 = vld [vmem:[%s5144_s6 + $0x38] sm:$0xf0] }
 0x433   :  { %v996_v21 = vpop.f32.mrf.mxu1 }
 0x434   :  { %v1026_v13 = vadd.f32 %v996_v21, %v302_v46 }
 0x436   :  { %v2914_v63 = vmul.f32 -1.442695, %v1026_v13 }
 0x438   :  { %3371 = vpow2.f32 %v2914_v63 }
 0x439   :  { %v1009_v0 = vpop.f32.mrf.mxu2 }
 0x43a   :  { %v1046_v12 = vadd.f32 %v1009_v0, %v331_v20  ;;  %v1022_v33 = vpop.f32.mrf.mxu3  ;;  %v4333_v0 = vld [vmem:[#allocation2] sm:$0xff] }
 0x43b   :  { %v998_v43 = vpop.f32.mrf.mxu1  ;;  %v1066_v5 = vadd.f32 %v4084_v47, %v1022_v33  ;;  %v3292_v33 = vld [vmem:[%s5144_s6 + $0xb0] sm:$0xf0] }
 0x43c   :  { %v2915_v7 = vmul.f32 -1.442695, %v1046_v12  ;;  %v3119_v12 = vld [vmem:[%s5144_s6 + $0xa8] sm:$0xf] }
 0x43d   :  { %v4348_v43 = vor.u32 %v3292_v33, %v3119_v12  ;;  %v3260_v33 = vld [vmem:[%s5143_s5 + $0x70] sm:$0xf0] }
 0x43e   :  { %v3372_v42 = vpop.eup %3371  ;;  %3373 = vpow2.f32 %v2915_v7  ;;  %v3107_v7 = vld [vmem:[%s5144_s6 + $0x90] sm:$0xf] }
 0x43f   :  { %v1030_v9 = vadd.f32 1.0, %v3372_v42  ;;  %v4357_v11 = vor.u32 %v3289_v14, %v3107_v7  ;;  %v3035_v14 = vld [vmem:[%s5144_s6] sm:$0xf] }
 0x440   :  { %v4466_v23 = vor.u32 %v3271_v17, %v3035_v14 }
 0x441   :  { %3375 = vrcp.f32 %v1030_v9  ;;  %v1011_v53 = vpop.f32.mrf.mxu2  ;;  %v1042_v18 = vand.u32 2147483648, %v1030_v9  ;;  %v1040_v8 = vand.u32 2147483647, %v1030_v9  ;;  %vm1036_vm9 = vweird.f32 %v1030_v9 }
 0x442   :  { %v1024_v40 = vpop.f32.mrf.mxu3  ;;  %v3283_v53 = vld [vmem:[%s5144_s6 + $0x68] sm:$0xf0] }
 0x443   :  { %v1043_v44 = vor.u32 1.1754944e-38, %v1042_v18  ;;  %vm1041_vm11 = vcmp.eq.f32.partialorder %v1040_v8, 8.507059e+37  ;;  %v4377_v24 = vor.u32 %v3283_v53, %v3083_v25  ;;  %v3264_v18 = vld [vmem:[%s5143_s5 + $0x94] sm:$0xf]  ;;  %v2983_v53 = vld [vmem:[%s5143_s5 + $0x50] sm:$0xf] }
 0x444   :  { %v3374_v55 = vpop.eup %3373  ;;  %v3016_v8 = vor.u32 %v3264_v18, %v3013_v45 }
 0x445   :  { %v1050_v1 = vadd.f32 1.0, %v3374_v55  ;;  %v5156_v55 = vld [vmem:[#allocation5_spill] sm:$0xff] }
 0x447   :  { %v3376_v61 = vpop.eup %3375  ;;  %3377 = vrcp.f32 %v1050_v1  ;;  %v1062_v13 = vand.u32 2147483648, %v1050_v1  ;;  %vm1056_vm13 = vweird.f32 %v1050_v1  ;;  %v1060_v35 = vand.u32 2147483647, %v1050_v1 }
 0x448   :  { %v1032_v57 = vmul.f32 %v3376_v61, %v1030_v9  ;;  %vm1037_vm8 = vweird.f32 %v3376_v61 }
 0x449   :  { %vm1038_vm10 = vmor %vm1036_vm9, %vm1037_vm8  ;;  %v1063_v63 = vor.u32 1.1754944e-38, %v1062_v13  ;;  %vm1061_vm15 = vcmp.eq.f32.partialorder %v1060_v35, 8.507059e+37  ;;  %v3047_v35 = vld [vmem:[%s5144_s6 + $0x18] sm:$0xf] }
 0x44a   :  { %v1033_v38 = vsub.f32 1.0, %v1032_v57 }
 0x44c   :  { %v1034_v15 = vmul.f32 %v3376_v61, %v1033_v38  ;;  %v4398_v38 = vor.u32 %v3280_v29, %v3071_v56 }
 0x44d   :  { %v3378_v58 = vpop.eup %3377 }
 0x44e   :  { %v1052_v36 = vmul.f32 %v3378_v58, %v1050_v1  ;;  %v1035_v41 = vadd.f32 %v3376_v61, %v1034_v15  ;;  %vm1057_vm12 = vweird.f32 %v3378_v58  ;;  %v3267_v1 = vld [vmem:[%s5143_s5 + $0xac] sm:$0xf]  ;;  %v3019_v15 = vld [vmem:[%s5143_s5 + $0x98] sm:$0xf] }
 0x44f   :  { %vm1058_vm14 = vmor %vm1056_vm13, %vm1057_vm12  ;;  %v3028_v28 = vor.u32 %v3267_v1, %v3025_v37 }
 0x450   :  { %v1053_v49 = vsub.f32 1.0, %v1052_v36  ;;  %v1039_v59 = vsel %vm1038_vm10, %v3376_v61, %v1035_v41 }
 0x451   :  { %v1044_v22 = vsel %vm1041_vm11, %v1043_v44, %v1039_v59  ;;  %1530 = vmatpush.bf16.msrb.mxu3 %v3028_v28  ;;  %v3059_v44 = vld [vmem:[%s5144_s6 + $0x30] sm:$0xf]  ;;  %v3261_v59 = vld [vmem:[%s5143_s5 + $0x7c] sm:$0xf]  ;;  %v2965_v28 = vld [vmem:[%s5143_s5 + $0x3c] sm:$0xf0] }
 0x452   :  { %v1067_v32 = vmul.f32 %v1066_v5, %v1044_v22  ;;  %v1054_v6 = vmul.f32 %v3378_v58, %v1053_v49  ;;  %v4421_v49 = vor.u32 %v3277_v54, %v3059_v44  ;;  %v3001_v5 = vld [vmem:[%s5143_s5 + $0x84] sm:$0xf0]  ;;  %v3007_v22 = vld [vmem:[%s5143_s5 + $0x80] sm:$0xf] }
 0x454   :  { %v1068_v46 = vadd.f32 %v1067_v32, %v360_v30  ;;  %v1055_v21 = vadd.f32 %v3378_v58, %v1054_v6  ;;  %v3004_v30 = vor.u32 %v3261_v59, %v3001_v5  ;;  %v3263_v32 = vld [vmem:[%s5143_s5 + $0x88] sm:$0xf0] }
 0x455   :  { %1531 = vmatpush.bf16.msrb.mxu3 %v3016_v8  ;;  %v3249_v8 = vld [vmem:[%s5143_s5 + $0x1c] sm:$0xf] }
 0x456   :  { %3379 = vtanh.f32 %v1068_v46  ;;  %v1059_v39 = vsel %vm1058_vm14, %v3378_v58, %v1055_v21  ;;  %v3020_v58 = vor.u32 %v3266_v52, %v3019_v15  ;;  %v3008_v46 = vor.u32 %v3263_v32, %v3007_v22  ;;  %v2953_v52 = vld [vmem:[%s5143_s5 + $0x24] sm:$0xf0] }
 0x457   :  { %v1064_v20 = vsel %vm1061_vm15, %v1063_v63, %v1059_v39  ;;  %v3274_v39 = vld [vmem:[%s5144_s6 + $0x20] sm:$0xf0] }
 0x458   :  { %v4444_v63 = vor.u32 %v3274_v39, %v3047_v35 }
 0x459   :  { %1532 = vmatpush.bf16.msrb.mxu3 %v3004_v30  ;;  %v4509_v30 = vld [vmem:[%s5141_s4] ss:$0 sm:$0xff] }
 0x45c   :  { %v3380_v48 = vpop.eup %3379 }
 0x45d   :  { %v1070_v47 = vsub.f32 %v4261_v60, %v3380_v48 }
 0x45f   :  { %v1071_v34 = vmul.f32 %v1070_v47, %v1064_v20  ;;  %v3258_v47 = vld [vmem:[%s5143_s5 + $0x64] sm:$0xf]  ;;  %v2989_v20 = vld [vmem:[%s5143_s5 + $0x6c] sm:$0xf0] }
 0x460   :  { %v2992_v12 = vor.u32 %v3258_v47, %v2989_v20 }
 0x461   :  { %v4329_v4 = vadd.f32 %v3380_v48, %v1071_v34  ;;  %v2995_v34 = vld [vmem:[%s5143_s5 + $0x68] sm:$0xf] }
 0x462   :  { %v2996_v7 = vor.u32 %v3260_v33, %v2995_v34  ;;  %1533 = vmatpush.bf16.msrb.mxu3 %v2992_v12  ;;  %v5157_v34 = vld [vmem:[#allocation6_spill] sm:$0xff] }
 0x463   :  { %v1073_v50 = vpack.c.bf16 %v4329_v4, %v4329_v4 }
 0x465   :  { %1075 = vst [vmem:[#allocation2 + $0x14] sm:$0xf] %v1073_v50  ;;  %1088 = vmatmul.bf16.vlgmr.msra.gmra.mxu0 %v1073_v50  ;;  %1101 = vmatmul.bf16.vlgmr.msra.gmra.mxu1 %v1073_v50 }
 0x466   :  { %1114 = vmatmul.bf16.vlgmr.msra.gmra.mxu2 %v1073_v50  ;;  %1744 = vmatpush.bf16.msra.mxu1 %v4348_v43 }
 0x46a   :  { %1745 = vmatpush.bf16.msra.mxu1 %v4357_v11 }
 0x46c   :  { %v4339_v60 = vld [vmem:[#allocation2 + $0x10] sm:$0xff] }
 0x46e   :  { %1746 = vmatpush.bf16.msra.mxu1 %v4366_v31 }
 0x472   :  { %1747 = vmatpush.bf16.msra.mxu1 %v4377_v24 }
 0x476   :  { %1509 = vmatmul.bf16.vlgmr.msrb.gmra.mxu2 %v4333_v0  ;;  %1748 = vmatpush.bf16.msra.mxu1 %v4398_v38 }
 0x47a   :  { %1749 = vmatpush.bf16.msra.mxu1 %v4421_v49 }
 0x47e   :  { %1750 = vmatpush.bf16.msra.mxu1 %v4444_v63 }
 0x482   :  { %1751 = vmatpush.bf16.msra.mxu1 %v4466_v23 }
 0x486   :  { %1514 = vmatmul.bf16.gmra.mxu2 %v4336_v62 }
 0x496   :  { %1519 = vmatmul.bf16.gmra.mxu2 %v4339_v60 }
 0x4e2   :  { %v1089_v42 = vpop.f32.mrf.mxu0  ;;  %v1102_v9 = vpop.f32.mrf.mxu1 }
 0x4e3   :  { %v1119_v40 = vadd.f32 %v1089_v42, %v4070_v16  ;;  %v1139_v10 = vadd.f32 %v1102_v9, %v5156_v55  ;;  %v3269_v16 = vld [vmem:[%s5143_s5 + $0xb8] sm:$0xf0]  ;;  %v3255_v42 = vld [vmem:[%s5143_s5 + $0x4c] sm:$0xf]  ;;  %v2977_v9 = vld [vmem:[%s5143_s5 + $0x54] sm:$0xf0] }
 0x4e4   :  { %v3032_v2 = vor.u32 %v3269_v16, %v3031_v51  ;;  %v2980_v25 = vor.u32 %v3255_v42, %v2977_v9  ;;  %v3252_v51 = vld [vmem:[%s5143_s5 + $0x34] sm:$0xf] }
 0x4e5   :  { %v2916_v61 = vmul.f32 -1.442695, %v1119_v40  ;;  %v2917_v57 = vmul.f32 -1.442695, %v1139_v10  ;;  %v3257_v40 = vld [vmem:[%s5143_s5 + $0x58] sm:$0xf0] }
 0x4e6   :  { %1559 = vmatpush.bf16.msra.mxu0 %v3032_v2  ;;  %v2984_v10 = vor.u32 %v3257_v40, %v2983_v53  ;;  %1534 = vmatpush.bf16.msrb.mxu3 %v2980_v25  ;;  %v3254_v2 = vld [vmem:[%s5143_s5 + $0x40] sm:$0xf0]  ;;  %v3291_v40 = vld [vmem:[%s5144_s6 + $0xac] sm:$0xf] }
 0x4e7   :  { %3381 = vpow2.f32 %v2916_v61  ;;  %v2968_v61 = vor.u32 %v3252_v51, %v2965_v28  ;;  %v3285_v28 = vld [vmem:[%s5144_s6 + $0x7c] sm:$0xf] }
 0x4e8   :  { %3383 = vpow2.f32 %v2917_v57  ;;  %v2971_v57 = vld [vmem:[%s5143_s5 + $0x38] sm:$0xf] }
 0x4e9   :  { %v4412_v26 = vpop.f32.mrf.mxu2  ;;  %v2972_v45 = vor.u32 %v3254_v2, %v2971_v57  ;;  %v3282_v57 = vld [vmem:[%s5144_s6 + $0x64] sm:$0xf]  ;;  %v3085_v2 = vld [vmem:[%s5144_s6 + $0x6c] sm:$0xf0] }
 0x4ea   :  { %v1091_v36 = vpop.f32.mrf.mxu0  ;;  %v1104_v41 = vpop.f32.mrf.mxu1  ;;  %1560 = vmatpush.bf16.msra.mxu0 %v3020_v58  ;;  %1535 = vmatpush.bf16.msrb.mxu3 %v2968_v61  ;;  %v2959_v58 = vld [vmem:[%s5143_s5 + $0x20] sm:$0xf]  ;;  %v1159_v32 = vadd.f32 %v4509_v30, %v4412_v26  ;;  %v3248_v26 = vld [vmem:[%s5143_s5 + $0x10] sm:$0xf0] }
 0x4eb   :  { %v2956_v36 = vor.u32 %v3249_v8, %v2953_v52  ;;  %v3251_v41 = vld [vmem:[%s5143_s5 + $0x28] sm:$0xf0]  ;;  %v3276_v52 = vld [vmem:[%s5144_s6 + $0x34] sm:$0xf] }
 0x4ec   :  { %v2960_v54 = vor.u32 %v3251_v41, %v2959_v58  ;;  %v3061_v58 = vld [vmem:[%s5144_s6 + $0x3c] sm:$0xf0]  ;;  %v3273_v41 = vld [vmem:[%s5144_s6 + $0x1c] sm:$0xf] }
 0x4ed   :  { %v3382_v6 = vpop.eup %3381 }
 0x4ee   :  { %v3384_v21 = vpop.eup %3383  ;;  %v1123_v13 = vadd.f32 1.0, %v3382_v6  ;;  %1561 = vmatpush.bf16.msra.mxu0 %v3008_v46  ;;  %1536 = vmatpush.bf16.msrb.mxu3 %v2956_v36  ;;  %v3246_v46 = vld [vmem:[%s5143_s5 + $0x4] sm:$0xf]  ;;  %v4606_v36 = vor.u32 %v3276_v52, %v3061_v58  ;;  %v3281_v52 = vld [vmem:[%s5144_s6 + $0x58] sm:$0xf0] }
 0x4ef   :  { %v4442_v48 = vadd.f32 1.0, %v3384_v21  ;;  %v2941_v21 = vld [vmem:[%s5143_s5 + $0xc] sm:$0xf0] }
 0x4f0   :  { %3385 = vrcp.f32 %v1123_v13  ;;  %v1133_v29 = vand.u32 2147483647, %v1123_v13  ;;  %v1135_v18 = vand.u32 2147483648, %v1123_v13  ;;  %vm1129_vm1 = vweird.f32 %v1123_v13 }
 0x4f1   :  { %3387 = vrcp.f32 %v4442_v48  ;;  %v1117_v50 = vpop.f32.mrf.mxu2  ;;  %v2944_v39 = vor.u32 %v3246_v46, %v2941_v21  ;;  %v1155_v33 = vand.u32 2147483648, %v4442_v48  ;;  %vm1149_vm5 = vweird.f32 %v4442_v48 }
 0x4f2   :  { %1562 = vmatpush.bf16.msra.mxu0 %v2996_v7  ;;  %v1136_v5 = vor.u32 1.1754944e-38, %v1135_v18  ;;  %vm1134_vm3 = vcmp.eq.f32.partialorder %v1133_v29, 8.507059e+37  ;;  %v1153_v7 = vand.u32 2147483647, %v4442_v48  ;;  %v4577_v29 = vor.u32 %v3282_v57, %v3085_v2  ;;  %v3279_v18 = vld [vmem:[%s5144_s6 + $0x4c] sm:$0xf] }
 0x4f3   :  { %1537 = vmatpush.bf16.msrb.mxu3 %v2944_v39  ;;  %v1156_v42 = vor.u32 1.1754944e-38, %v1155_v33 }
 0x4f4   :  { %vm1154_vm7 = vcmp.eq.f32.partialorder %v1153_v7, 8.507059e+37  ;;  %v3127_v7 = vld [vmem:[%s5144_s6 + $0xb0] sm:$0xf] }
 0x4f6   :  { %v3386_v55 = vpop.eup %3385  ;;  %1563 = vmatpush.bf16.msra.mxu0 %v2984_v10 }
 0x4f7   :  { %v3388_v1 = vpop.eup %3387  ;;  %v1125_v37 = vmul.f32 %v3386_v55, %v1123_v13  ;;  %vm1130_vm0 = vweird.f32 %v3386_v55  ;;  %v2947_v13 = vld [vmem:[%s5143_s5 + $0x8] sm:$0xf] }
 0x4f8   :  { %v1145_v56 = vmul.f32 %v3388_v1, %v4442_v48  ;;  %vm1131_vm2 = vmor %vm1129_vm1, %vm1130_vm0  ;;  %v2948_v20 = vor.u32 %v3248_v26, %v2947_v13  ;;  %vm1150_vm4 = vweird.f32 %v3388_v1  ;;  %v5159_v13 = vld [vmem:[#allocation4_spill] sm:$0xff] }
 0x4f9   :  { %v1126_v16 = vsub.f32 1.0, %v1125_v37  ;;  %vm1151_vm6 = vmor %vm1149_vm5, %vm1150_vm4  ;;  %v3109_v37 = vld [vmem:[%s5144_s6 + $0x9c] sm:$0xf0] }
 0x4fa   :  { %1564 = vmatpush.bf16.msra.mxu0 %v2972_v45  ;;  %v1146_v59 = vsub.f32 1.0, %v1145_v56  ;;  %v4574_v56 = vld [vmem:[%s5140_s9 + $0x8] sm:$0xff]  ;;  %v3073_v45 = vld [vmem:[%s5144_s6 + $0x54] sm:$0xf0] }
 0x4fb   :  { %v1127_v15 = vmul.f32 %v3386_v55, %v1126_v16  ;;  %v3097_v16 = vld [vmem:[%s5144_s6 + $0x84] sm:$0xf0]  ;;  %v4592_v8 = vor.u32 %v3279_v18, %v3073_v45  ;;  %v3079_v45 = vld [vmem:[%s5144_s6 + $0x50] sm:$0xf] }
 0x4fc   :  { %v1147_v47 = vmul.f32 %v3388_v1, %v1146_v59  ;;  %v4561_v61 = vor.u32 %v3285_v28, %v3097_v16  ;;  %v3037_v59 = vld [vmem:[%s5144_s6 + $0xc] sm:$0xf0]  ;;  %v3284_v28 = vld [vmem:[%s5144_s6 + $0x70] sm:$0xf0] }
 0x4fd   :  { %v1128_v44 = vadd.f32 %v3386_v55, %v1127_v15  ;;  %v4588_v15 = vpack.c.bf16 %v4574_v56, %v4574_v56 }
 0x4fe   :  { %1565 = vmatpush.bf16.msra.mxu0 %v2960_v54  ;;  %v1148_v12 = vadd.f32 %v3388_v1, %v1147_v47  ;;  %v3270_v54 = vld [vmem:[%s5144_s6 + $0x4] sm:$0xf] }
 0x4ff   :  { %v1132_v22 = vsel %vm1131_vm2, %v3386_v55, %v1128_v44  ;;  %v3121_v55 = vld [vmem:[%s5144_s6 + $0xb4] sm:$0xf0]  ;;  %v3049_v44 = vld [vmem:[%s5144_s6 + $0x24] sm:$0xf0] }
 0x500   :  { %v1137_v6 = vsel %vm1134_vm3, %v1136_v5, %v1132_v22  ;;  %v1152_v14 = vsel %vm1151_vm6, %v3388_v1, %v1148_v12  ;;  %v4540_v1 = vor.u32 %v3291_v40, %v3121_v55  ;;  %v4628_v5 = vor.u32 %v3270_v54, %v3037_v59  ;;  %v3103_v40 = vld [vmem:[%s5144_s6 + $0x80] sm:$0xf]  ;;  %v3287_v55 = vld [vmem:[%s5144_s6 + $0x88] sm:$0xf0] }
 0x501   :  { %v1160_v35 = vmul.f32 %v1159_v32, %v1137_v6  ;;  %v1157_v25 = vsel %vm1154_vm7, %v1156_v42, %v1152_v14  ;;  %v3115_v42 = vld [vmem:[%s5144_s6 + $0x98] sm:$0xf]  ;;  %v4710_v59 = vor.u32 %v3281_v52, %v3079_v45  ;;  %v1510_v45 = vpop.f32.mrf.mxu2 }
 0x502   :  { %1566 = vmatpush.bf16.msra.mxu0 %v2948_v20 }
 0x503   :  { %v1161_v50 = vadd.f32 %v1160_v35, %v5157_v34  ;;  %v307_v35 = vadd.f32 %v5159_v13, %v4056_v19  ;;  %v3293_v19 = vld [vmem:[%s5144_s6 + $0xb8] sm:$0xf0] }
 0x505   :  { %3389 = vtanh.f32 %v1161_v50 }
 0x509   :  { %v4792_v52 = vpop.f32.mrf.mxu2 }
 0x50b   :  { %v3390_v17 = vpop.eup %3389 }
 0x50c   :  { %v1163_v9 = vsub.f32 %v4329_v4, %v3390_v17  ;;  %v3288_v4 = vld [vmem:[%s5144_s6 + $0x94] sm:$0xf] }
 0x50d   :  { %v4550_v51 = vor.u32 %v3288_v4, %v3109_v37  ;;  %v4686_v4 = vor.u32 %v3287_v55, %v3103_v40  ;;  %v3091_v37 = vld [vmem:[%s5144_s6 + $0x68] sm:$0xf] }
 0x50e   :  { %v1164_v53 = vmul.f32 %v1163_v9, %v1157_v25  ;;  %v3290_v9 = vld [vmem:[%s5144_s6 + $0xa0] sm:$0xf0]  ;;  %v4697_v2 = vor.u32 %v3284_v28, %v3091_v37 }
 0x50f   :  { %v4675_v25 = vor.u32 %v3290_v9, %v3115_v42 }
 0x510   :  { %v4536_v10 = vadd.f32 %v3390_v17, %v1164_v53  ;;  %v4663_v17 = vor.u32 %v3293_v19, %v3127_v7  ;;  %v3272_v19 = vld [vmem:[%s5144_s6 + $0x10] sm:$0xf0] }
 0x512   :  { %v1166_v48 = vpack.c.bf16 %v4536_v10, %v4536_v10  ;;  %1770 = vmatpush.bf16.msra.mxu2 %v4663_v17 }
 0x514   :  { %1168 = vst [vmem:[#allocation2 + $0x18] sm:$0xf] %v1166_v48  ;;  %1181 = vmatmul.bf16.vlgmr.msra.gmra.mxu3 %v1166_v48  ;;  %1194 = vmatmul.bf16.vlgmr.msrb.gmra.mxu0 %v1166_v48 }
 0x515   :  { %1207 = vmatmul.bf16.vlgmr.msrb.gmra.mxu1 %v1166_v48  ;;  %1835 = vmatpush.bf16.msra.mxu3 %v4348_v43 }
 0x516   :  { %1757 = vmatpush.bf16.msrb.mxu1 %v4540_v1  ;;  %1848 = vmatpush.bf16.msrb.mxu0 %v4540_v1 }
 0x517   :  { %1771 = vmatpush.bf16.msra.mxu2 %v4675_v25 }
 0x519   :  { %1836 = vmatpush.bf16.msra.mxu3 %v4357_v11 }
 0x51a   :  { %1758 = vmatpush.bf16.msrb.mxu1 %v4550_v51  ;;  %1849 = vmatpush.bf16.msrb.mxu0 %v4550_v51 }
 0x51b   :  { %1772 = vmatpush.bf16.msra.mxu2 %v4686_v4 }
 0x51d   :  { %1837 = vmatpush.bf16.msra.mxu3 %v4366_v31 }
 0x51e   :  { %1759 = vmatpush.bf16.msrb.mxu1 %v4561_v61  ;;  %1850 = vmatpush.bf16.msrb.mxu0 %v4561_v61 }
 0x51f   :  { %1773 = vmatpush.bf16.msra.mxu2 %v4697_v2 }
 0x521   :  { %1838 = vmatpush.bf16.msra.mxu3 %v4377_v24 }
 0x522   :  { %1760 = vmatpush.bf16.msrb.mxu1 %v4577_v29  ;;  %1851 = vmatpush.bf16.msrb.mxu0 %v4577_v29 }
 0x523   :  { %1774 = vmatpush.bf16.msra.mxu2 %v4710_v59 }
 0x524   :  { %1538 = vmatmul.bf16.vlgmr.msrb.gmra.mxu3 %v4333_v0  ;;  %1567 = vmatmul.bf16.vlgmr.msra.gmra.mxu0 %v4333_v0  ;;  %v4617_v0 = vor.u32 %v3273_v41, %v3049_v44 }
 0x525   :  { %1752 = vmatmul.bf16.vlgmr.msra.gmra.mxu1 %v4588_v15  ;;  %1839 = vmatpush.bf16.msra.mxu3 %v4398_v38 }
 0x526   :  { %1761 = vmatpush.bf16.msrb.mxu1 %v4592_v8  ;;  %1852 = vmatpush.bf16.msrb.mxu0 %v4592_v8 }
 0x529   :  { %1840 = vmatpush.bf16.msra.mxu3 %v4421_v49 }
 0x52a   :  { %1762 = vmatpush.bf16.msrb.mxu1 %v4606_v36  ;;  %1853 = vmatpush.bf16.msrb.mxu0 %v4606_v36 }
 0x52d   :  { %1841 = vmatpush.bf16.msra.mxu3 %v4444_v63 }
 0x52e   :  { %1763 = vmatpush.bf16.msrb.mxu1 %v4617_v0  ;;  %1854 = vmatpush.bf16.msrb.mxu0 %v4617_v0 }
 0x531   :  { %1842 = vmatpush.bf16.msra.mxu3 %v4466_v23 }
 0x532   :  { %1764 = vmatpush.bf16.msrb.mxu1 %v4628_v5  ;;  %1855 = vmatpush.bf16.msrb.mxu0 %v4628_v5 }
 0x534   :  { %1543 = vmatmul.bf16.gmra.mxu3 %v4336_v62  ;;  %1572 = vmatmul.bf16.gmra.mxu0 %v4336_v62  ;;  %v5158_v62 = vld [vmem:[#allocation7_spill] sm:$0xff] }
 0x535   :  { %1939 = vmatpush.bf16.msrb.mxu3 %v4540_v1  ;;  %1765 = vmatmul.bf16.vlgmr.msrb.gmra.mxu1 %v4588_v15  ;;  %v336_v22 = vadd.f32 %v5158_v62, %v4074_v27 }
 0x536   :  { %1861 = vmatpush.bf16.msra.mxu1 %v4663_v17  ;;  %1952 = vmatpush.bf16.msra.mxu0 %v4663_v17 }
 0x539   :  { %1940 = vmatpush.bf16.msrb.mxu3 %v4550_v51 }
 0x53a   :  { %1862 = vmatpush.bf16.msra.mxu1 %v4675_v25  ;;  %1953 = vmatpush.bf16.msra.mxu0 %v4675_v25 }
 0x53d   :  { %1941 = vmatpush.bf16.msrb.mxu3 %v4561_v61 }
 0x53e   :  { %1863 = vmatpush.bf16.msra.mxu1 %v4686_v4  ;;  %1954 = vmatpush.bf16.msra.mxu0 %v4686_v4 }
 0x541   :  { %1942 = vmatpush.bf16.msrb.mxu3 %v4577_v29 }
 0x542   :  { %1864 = vmatpush.bf16.msra.mxu1 %v4697_v2  ;;  %1955 = vmatpush.bf16.msra.mxu0 %v4697_v2 }
 0x544   :  { %1548 = vmatmul.bf16.gmra.mxu3 %v4339_v60  ;;  %1577 = vmatmul.bf16.gmra.mxu0 %v4339_v60 }
 0x545   :  { %1943 = vmatpush.bf16.msrb.mxu3 %v4592_v8 }
 0x546   :  { %1865 = vmatpush.bf16.msra.mxu1 %v4710_v59  ;;  %1956 = vmatpush.bf16.msra.mxu0 %v4710_v59 }
 0x549   :  { %1944 = vmatpush.bf16.msrb.mxu3 %v4606_v36 }
 0x54d   :  { %1945 = vmatpush.bf16.msrb.mxu3 %v4617_v0 }
 0x551   :  { %1946 = vmatpush.bf16.msrb.mxu3 %v4628_v5 }
 0x591   :  { %v1195_v32 = vpop.f32.mrf.mxu0 }
 0x592   :  { %v1232_v6 = vadd.f32 %v1195_v32, %v336_v22  ;;  %v4649_v46 = vpop.f32.mrf.mxu1  ;;  %v3067_v32 = vld [vmem:[%s5144_s6 + $0x38] sm:$0xf] }
 0x594   :  { %v2919_v21 = vmul.f32 -1.442695, %v1232_v6  ;;  %v3278_v6 = vld [vmem:[%s5144_s6 + $0x40] sm:$0xf0] }
 0x596   :  { %3391 = vpow2.f32 %v2919_v21 }
 0x597   :  { %v1182_v39 = vpop.f32.mrf.mxu3 }
 0x598   :  { %v1212_v26 = vadd.f32 %v1182_v39, %v307_v35  ;;  %v1252_v35 = vadd.f32 %v4509_v30, %v4649_v46  ;;  %v3275_v30 = vld [vmem:[%s5144_s6 + $0x28] sm:$0xf0] }
 0x599   :  { %v1197_v60 = vpop.f32.mrf.mxu0 }
 0x59a   :  { %v2918_v47 = vmul.f32 -1.442695, %v1212_v26  ;;  %v1210_v20 = vpop.f32.mrf.mxu1  ;;  %v4725_v60 = vor.u32 %v3278_v6, %v3067_v32 }
 0x59c   :  { %3393 = vpow2.f32 %v2918_v47  ;;  %v3392_v34 = vpop.eup %3391  ;;  %v5160_v47 = vld [vmem:[#allocation8_spill] sm:$0xff]  ;;  %1775 = vmatpush.bf16.msra.mxu2 %v4725_v60  ;;  %1866 = vmatpush.bf16.msra.mxu1 %v4725_v60 }
 0x59d   :  { %v4653_v33 = vadd.f32 1.0, %v3392_v34  ;;  %v365_v20 = vadd.f32 %v5160_v47, %v4086_v3  ;;  %v3043_v3 = vld [vmem:[%s5144_s6 + $0x8] sm:$0xf]  ;;  %1957 = vmatpush.bf16.msra.mxu0 %v4725_v60 }
 0x59e   :  { %v4755_v40 = vor.u32 %v3272_v19, %v3043_v3 }
 0x59f   :  { %v1184_v50 = vpop.f32.mrf.mxu3  ;;  %v1248_v9 = vand.u32 2147483648, %v4653_v33  ;;  %vm1242_vm13 = vweird.f32 %v4653_v33 }
 0x5a0   :  { %v3055_v50 = vld [vmem:[%s5144_s6 + $0x20] sm:$0xf] }
 0x5a1   :  { %v4739_v7 = vor.u32 %v3275_v30, %v3055_v50  ;;  %v1249_v37 = vor.u32 1.1754944e-38, %v1248_v9 }
 0x5a2   :  { %v3394_v12 = vpop.eup %3393  ;;  %v4655_v27 = vpop.f32.mrf.mxu1 }
 0x5a3   :  { %v1216_v14 = vadd.f32 1.0, %v3394_v12  ;;  %1776 = vmatpush.bf16.msra.mxu2 %v4739_v7  ;;  %1867 = vmatpush.bf16.msra.mxu1 %v4739_v7 }
 0x5a4   :  { %1958 = vmatpush.bf16.msra.mxu0 %v4739_v7 }
 0x5a5   :  { %3395 = vrcp.f32 %v1216_v14  ;;  %v1228_v41 = vand.u32 2147483648, %v1216_v14  ;;  %v1226_v54 = vand.u32 2147483647, %v1216_v14  ;;  %vm1222_vm9 = vweird.f32 %v1216_v14 }
 0x5a6   :  { %3397 = vrcp.f32 %v4653_v33 }
 0x5a7   :  { %v1229_v13 = vor.u32 1.1754944e-38, %v1228_v41  ;;  %vm1227_vm11 = vcmp.eq.f32.partialorder %v1226_v54, 8.507059e+37  ;;  %1777 = vmatpush.bf16.msra.mxu2 %v4755_v40  ;;  %1868 = vmatpush.bf16.msra.mxu1 %v4755_v40  ;;  %v4799_v41 = vpop.f32.mrf.mxu2 }
 0x5a8   :  { %1959 = vmatpush.bf16.msra.mxu0 %v4755_v40 }
 0x5aa   :  { %v1755_v53 = vpop.f32.mrf.mxu1 }
 0x5ab   :  { %v3396_v48 = vpop.eup %3395  ;;  %v1246_v53 = vand.u32 2147483647, %v4653_v33  ;;  %1926 = vmatpush.bf16.msrb.mxu2 %v4348_v43  ;;  %2017 = vmatpush.bf16.msrb.mxu1 %v4348_v43 }
 0x5ac   :  { %v4694_v16 = vpop.eup %3397  ;;  %v1218_v57 = vmul.f32 %v3396_v48, %v1216_v14  ;;  %vm1223_vm8 = vweird.f32 %v3396_v48 }
 0x5ad   :  { %v1238_v58 = vmul.f32 %v4694_v16, %v4653_v33  ;;  %vm1224_vm10 = vmor %vm1222_vm9, %vm1223_vm8  ;;  %vm1243_vm12 = vweird.f32 %v4694_v16  ;;  %vm1247_vm15 = vcmp.eq.f32.partialorder %v1246_v53, 8.507059e+37 }
 0x5ae   :  { %v1219_v18 = vsub.f32 1.0, %v1218_v57  ;;  %vm1244_vm14 = vmor %vm1242_vm13, %vm1243_vm12 }
 0x5af   :  { %v1239_v21 = vsub.f32 1.0, %v1238_v58  ;;  %1927 = vmatpush.bf16.msrb.mxu2 %v4357_v11  ;;  %2018 = vmatpush.bf16.msrb.mxu1 %v4357_v11 }
 0x5b0   :  { %v1220_v44 = vmul.f32 %v3396_v48, %v1219_v18 }
 0x5b1   :  { %v1240_v46 = vmul.f32 %v4694_v16, %v1239_v21  ;;  %v1539_v21 = vpop.f32.mrf.mxu3 }
 0x5b2   :  { %v1221_v62 = vadd.f32 %v3396_v48, %v1220_v44  ;;  %v4713_v22 = vpop.f32.mrf.mxu1 }
 0x5b3   :  { %v1241_v42 = vadd.f32 %v4694_v16, %v1240_v46  ;;  %1928 = vmatpush.bf16.msrb.mxu2 %v4366_v31  ;;  %2019 = vmatpush.bf16.msrb.mxu1 %v4366_v31 }
 0x5b4   :  { %v1225_v39 = vsel %vm1224_vm10, %v3396_v48, %v1221_v62  ;;  %v4803_v62 = vpop.f32.mrf.mxu2 }
 0x5b5   :  { %v1230_v26 = vsel %vm1227_vm11, %v1229_v13, %v1225_v39  ;;  %v1245_v55 = vsel %vm1244_vm14, %v4694_v16, %v1241_v42 }
 0x5b6   :  { %v1253_v34 = vmul.f32 %v1252_v35, %v1230_v26  ;;  %v1250_v33 = vsel %vm1247_vm15, %v1249_v37, %v1245_v55  ;;  %v4820_v55 = vld [vmem:[%s5146_s8] ss:$0 sm:$0xff] }
 0x5b7   :  { %1929 = vmatpush.bf16.msrb.mxu2 %v4377_v24  ;;  %2020 = vmatpush.bf16.msrb.mxu1 %v4377_v24 }
 0x5b8   :  { %v1254_v12 = vadd.f32 %v1253_v34, %v365_v20 }
 0x5ba   :  { %3399 = vtanh.f32 %v1254_v12  ;;  %v1768_v14 = vpop.f32.mrf.mxu1 }
 0x5bb   :  { %1930 = vmatpush.bf16.msrb.mxu2 %v4398_v38  ;;  %2021 = vmatpush.bf16.msrb.mxu1 %v4398_v38 }
 0x5bc   :  { %v4808_v39 = vpop.f32.mrf.mxu2 }
 0x5bf   :  { %1931 = vmatpush.bf16.msrb.mxu2 %v4421_v49  ;;  %2022 = vmatpush.bf16.msrb.mxu1 %v4421_v49 }
 0x5c0   :  { %v3400_v48 = vpop.eup %3399 }
 0x5c1   :  { %v1256_v28 = vsub.f32 %v4536_v10, %v3400_v48 }
 0x5c3   :  { %v1257_v57 = vmul.f32 %v1256_v28, %v1250_v33  ;;  %1932 = vmatpush.bf16.msrb.mxu2 %v4444_v63  ;;  %2023 = vmatpush.bf16.msrb.mxu1 %v4444_v63  ;;  %v1568_v33 = vpop.f32.mrf.mxu0 }
 0x5c4   :  { %v4811_v34 = vpop.f32.mrf.mxu2 }
 0x5c5   :  { %v1258_v18 = vadd.f32 %v3400_v48, %v1257_v57 }
 0x5c7   :  { %v1259_v16 = vpack.c.bf16 %v1258_v18, %v1258_v18  ;;  %1262 = vst [vmem:[%s5145_s13] sm:$0xff] %v1258_v18  ;;  %1933 = vmatpush.bf16.msrb.mxu2 %v4466_v23  ;;  %2024 = vmatpush.bf16.msrb.mxu1 %v4466_v23 }
 0x5c9   :  { %1261 = vst [vmem:[#allocation2 + $0x1c] sm:$0xf] %v1259_v16 }
 0x5d0   :  { %v3297_v10 = vld [vmem:[#allocation2 + $0x18] sm:$0xff] }
 0x5d1   :  { %1524 = vmatmul.bf16.gmra.mxu2 %v3297_v10  ;;  %1553 = vmatmul.bf16.gmra.mxu3 %v3297_v10 }
 0x5d2   :  { %1582 = vmatmul.bf16.gmra.mxu0 %v3297_v10 }
 0x5e1   :  { %1778 = vmatmul.bf16.vlgmr.msra.gmra.mxu2 %v4588_v15  ;;  %v1327_v15 = vld [vmem:[%s5147_s7] sm:$0x7] }
 0x5e2   :  { %2030 = vmatpush.bf16.msra.mxu2 %v4540_v1  ;;  %v4797_v58 = vperm.slane %v1327_v15, 0  ;;  %v4805_v6 = vperm.slane %v1327_v15, 1  ;;  %v4822_v37 = vperm.slane %v1327_v15, 2 }
 0x5e4   :  { %v1511_v44 = vadd.f32 %v1510_v45, %v4797_v58  ;;  %v1540_v13 = vadd.f32 %v1539_v21, %v4805_v6 }
 0x5e6   :  { %2031 = vmatpush.bf16.msra.mxu2 %v4550_v51  ;;  %v1783_v54 = vadd.f32 %v4655_v27, %v1511_v44  ;;  %v1803_v26 = vadd.f32 %v4713_v22, %v1540_v13  ;;  %v1569_v44 = vadd.f32 %v1568_v33, %v4822_v37 }
 0x5e8   :  { %v3129_v32 = vmul.f32 -1.442695, %v1783_v54  ;;  %v3130_v20 = vmul.f32 -1.442695, %v1803_v26 }
 0x5ea   :  { %2032 = vmatpush.bf16.msra.mxu2 %v4561_v61  ;;  %3401 = vpow2.f32 %v3129_v32 }
 0x5ee   :  { %2033 = vmatpush.bf16.msra.mxu2 %v4577_v29 }
 0x5f0   :  { %v3402_v35 = vpop.eup %3401 }
 0x5f1   :  { %v1787_v47 = vadd.f32 1.0, %v3402_v35 }
 0x5f2   :  { %2034 = vmatpush.bf16.msra.mxu2 %v4592_v8 }
 0x5f3   :  { %3403 = vrcp.f32 %v1787_v47  ;;  %v1799_v53 = vand.u32 2147483648, %v1787_v47  ;;  %vm1793_vm1 = vweird.f32 %v1787_v47  ;;  %v1797_v48 = vand.u32 2147483647, %v1787_v47 }
 0x5f4   :  { %3405 = vpow2.f32 %v3130_v20 }
 0x5f5   :  { %v1800_v16 = vor.u32 1.1754944e-38, %v1799_v53  ;;  %vm1798_vm3 = vcmp.eq.f32.partialorder %v1797_v48, 8.507059e+37 }
 0x5f6   :  { %2035 = vmatpush.bf16.msra.mxu2 %v4606_v36 }
 0x5f9   :  { %v3404_v27 = vpop.eup %3403 }
 0x5fa   :  { %2036 = vmatpush.bf16.msra.mxu2 %v4617_v0  ;;  %v3406_v50 = vpop.eup %3405  ;;  %v1789_v46 = vmul.f32 %v3404_v27, %v1787_v47  ;;  %vm1794_vm0 = vweird.f32 %v3404_v27 }
 0x5fb   :  { %v1807_v30 = vadd.f32 1.0, %v3406_v50  ;;  %vm1795_vm2 = vmor %vm1793_vm1, %vm1794_vm0 }
 0x5fc   :  { %v1790_v3 = vsub.f32 1.0, %v1789_v46 }
 0x5fd   :  { %3407 = vrcp.f32 %v1807_v30  ;;  %v1819_v15 = vand.u32 2147483648, %v1807_v30  ;;  %vm1813_vm5 = vweird.f32 %v1807_v30  ;;  %v1817_v26 = vand.u32 2147483647, %v1807_v30 }
 0x5fe   :  { %2037 = vmatpush.bf16.msra.mxu2 %v4628_v5  ;;  %v1791_v19 = vmul.f32 %v3404_v27, %v1790_v3 }
 0x5ff   :  { %vm1818_vm7 = vcmp.eq.f32.partialorder %v1817_v26, 8.507059e+37 }
 0x600   :  { %v1792_v9 = vadd.f32 %v3404_v27, %v1791_v19 }
 0x602   :  { %v1796_v28 = vsel %vm1795_vm2, %v3404_v27, %v1792_v9  ;;  %v1820_v27 = vor.u32 1.1754944e-38, %v1819_v15  ;;  %v1513_v15 = vadd.f32 %v4792_v52, %v4797_v58 }
 0x603   :  { %v3408_v42 = vpop.eup %3407  ;;  %v1801_v45 = vsel %vm1798_vm3, %v1800_v16, %v1796_v28 }
 0x604   :  { %v1809_v22 = vmul.f32 %v3408_v42, %v1807_v30  ;;  %vm1814_vm4 = vweird.f32 %v3408_v42  ;;  %v1541_v30 = vpop.f32.mrf.mxu3 }
 0x605   :  { %vm1815_vm6 = vmor %vm1813_vm5, %vm1814_vm4 }
 0x606   :  { %v1810_v57 = vsub.f32 1.0, %v1809_v22 }
 0x608   :  { %v1811_v32 = vmul.f32 %v3408_v42, %v1810_v57 }
 0x60a   :  { %v1812_v35 = vadd.f32 %v3408_v42, %v1811_v32 }
 0x60c   :  { %v1816_v47 = vsel %vm1815_vm6, %v3408_v42, %v1812_v35  ;;  %v4857_v22 = vpop.f32.mrf.mxu3 }
 0x60d   :  { %v1821_v46 = vsel %vm1818_vm7, %v1820_v27, %v1816_v47 }
 0x614   :  { %v4861_v48 = vpop.f32.mrf.mxu3 }
 0x61c   :  { %v4865_v33 = vpop.f32.mrf.mxu3 }
 0x654   :  { %v4813_v12 = vpop.f32.mrf.mxu2 }
 0x65c   :  { %v4815_v14 = vpop.f32.mrf.mxu2 }
 0x65d   :  { %5161 = vst [vmem:[#allocation5_spill] sm:$0xff] %v4815_v14 }
 0x664   :  { %v1779_v18 = vpop.f32.mrf.mxu2 }
 0x665   :  { %v1823_v10 = vadd.f32 %v4820_v55, %v1779_v18  ;;  %v4869_v18 = vpop.f32.mrf.mxu3 }
 0x667   :  { %v1824_v54 = vmul.f32 %v1823_v10, %v1801_v45 }
 0x669   :  { %v1825_v21 = vadd.f32 %v1824_v54, %v1569_v44  ;;  %v1542_v54 = vadd.f32 %v1541_v30, %v4805_v6 }
 0x66b   :  { %3409 = vtanh.f32 %v1825_v21 }
 0x66c   :  { %v1781_v13 = vpop.f32.mrf.mxu2 }
 0x66d   :  { %v4873_v10 = vpop.f32.mrf.mxu3 }
 0x66e   :  { %5163 = vst [vmem:[#allocation7_spill] sm:$0xff] %v4873_v10 }
 0x671   :  { %v3410_v20 = vpop.eup %3409 }
 0x672   :  { %v1827_v50 = vsub.f32 %v4574_v56, %v3410_v20  ;;  %v1570_v56 = vpop.f32.mrf.mxu0 }
 0x674   :  { %v1828_v3 = vmul.f32 %v1827_v50, %v1821_v46 }
 0x675   :  { %v4877_v44 = vpop.f32.mrf.mxu3 }
 0x676   :  { %v4827_v19 = vadd.f32 %v3410_v20, %v1828_v3  ;;  %5165 = vst [vmem:[#allocation8_spill] sm:$0xff] %v4877_v44 }
 0x678   :  { %v1830_v9 = vpack.c.bf16 %v4827_v19, %v4827_v19 }
 0x67a   :  { %1831 = vst [vmem:[#allocation2] sm:$0xf] %v1830_v9  ;;  %1843 = vmatmul.bf16.vlgmr.msra.gmra.mxu3 %v1830_v9  ;;  %1856 = vmatmul.bf16.vlgmr.msrb.gmra.mxu0 %v1830_v9  ;;  %v4855_v42 = vpop.f32.mrf.mxu0 }
 0x67b   :  { %1869 = vmatmul.bf16.vlgmr.msra.gmra.mxu1 %v1830_v9  ;;  %2043 = vmatpush.bf16.msra.mxu3 %v4663_v17 }
 0x67c   :  { %2108 = vmatpush.bf16.msrb.mxu0 %v4348_v43  ;;  %2121 = vmatpush.bf16.msra.mxu1 %v4540_v1 }
 0x67f   :  { %2044 = vmatpush.bf16.msra.mxu3 %v4675_v25 }
 0x680   :  { %2109 = vmatpush.bf16.msrb.mxu0 %v4357_v11  ;;  %2122 = vmatpush.bf16.msra.mxu1 %v4550_v51 }
 0x682   :  { %v4859_v53 = vpop.f32.mrf.mxu0 }
 0x683   :  { %2045 = vmatpush.bf16.msra.mxu3 %v4686_v4 }
 0x684   :  { %2110 = vmatpush.bf16.msrb.mxu0 %v4366_v31  ;;  %2123 = vmatpush.bf16.msra.mxu1 %v4561_v61 }
 0x687   :  { %2046 = vmatpush.bf16.msra.mxu3 %v4697_v2 }
 0x688   :  { %2111 = vmatpush.bf16.msrb.mxu0 %v4377_v24  ;;  %2124 = vmatpush.bf16.msra.mxu1 %v4577_v29 }
 0x68a   :  { %v4863_v28 = vpop.f32.mrf.mxu0 }
 0x68b   :  { %2047 = vmatpush.bf16.msra.mxu3 %v4710_v59 }
 0x68c   :  { %2112 = vmatpush.bf16.msrb.mxu0 %v4398_v38  ;;  %2125 = vmatpush.bf16.msra.mxu1 %v4592_v8 }
 0x68f   :  { %2048 = vmatpush.bf16.msra.mxu3 %v4725_v60 }
 0x690   :  { %2113 = vmatpush.bf16.msrb.mxu0 %v4421_v49  ;;  %2126 = vmatpush.bf16.msra.mxu1 %v4606_v36 }
 0x692   :  { %v4867_v57 = vpop.f32.mrf.mxu0 }
 0x693   :  { %2049 = vmatpush.bf16.msra.mxu3 %v4739_v7 }
 0x694   :  { %2114 = vmatpush.bf16.msrb.mxu0 %v4444_v63  ;;  %2127 = vmatpush.bf16.msra.mxu1 %v4617_v0 }
 0x697   :  { %2050 = vmatpush.bf16.msra.mxu3 %v4755_v40 }
 0x698   :  { %2115 = vmatpush.bf16.msrb.mxu0 %v4466_v23  ;;  %2128 = vmatpush.bf16.msra.mxu1 %v4628_v5 }
 0x69a   :  { %v4871_v16 = vpop.f32.mrf.mxu0 }
 0x69b   :  { %5162 = vst [vmem:[#allocation6_spill] sm:$0xff] %v4871_v16 }
 0x6a2   :  { %v4875_v45 = vpop.f32.mrf.mxu0 }
 0x6a3   :  { %5164 = vst [vmem:[#allocation4_spill] sm:$0xff] %v4875_v45 }
 0x6f7   :  { %v1857_v32 = vpop.f32.mrf.mxu0 }
 0x6f8   :  { %v1894_v21 = vadd.f32 %v1857_v32, %v1542_v54  ;;  %v1870_v13 = vpop.f32.mrf.mxu1 }
 0x6fa   :  { %v3132_v35 = vmul.f32 -1.442695, %v1894_v21 }
 0x6fc   :  { %3411 = vpow2.f32 %v3132_v35 }
 0x6fd   :  { %v1844_v26 = vpop.f32.mrf.mxu3 }
 0x6fe   :  { %v1874_v47 = vadd.f32 %v1844_v26, %v1513_v15 }
 0x6ff   :  { %v1859_v20 = vpop.f32.mrf.mxu0 }
 0x700   :  { %v3131_v27 = vmul.f32 -1.442695, %v1874_v47  ;;  %v1872_v50 = vpop.f32.mrf.mxu1  ;;  %v1914_v20 = vadd.f32 %v4820_v55, %v1870_v13 }
 0x702   :  { %3413 = vpow2.f32 %v3131_v27  ;;  %v3412_v46 = vpop.eup %3411 }
 0x703   :  { %v1898_v45 = vadd.f32 1.0, %v3412_v46  ;;  %v1571_v46 = vadd.f32 %v1570_v56, %v4822_v37 }
 0x705   :  { %v1846_v3 = vpop.f32.mrf.mxu3  ;;  %vm1904_vm13 = vweird.f32 %v1898_v45 }
 0x708   :  { %v3414_v9 = vpop.eup %3413 }
 0x709   :  { %v1878_v44 = vadd.f32 1.0, %v3414_v9 }
 0x70b   :  { %3415 = vrcp.f32 %v1878_v44  ;;  %v1890_v52 = vand.u32 2147483648, %v1878_v44  ;;  %v1888_v35 = vand.u32 2147483647, %v1878_v44  ;;  %vm1884_vm9 = vweird.f32 %v1878_v44 }
 0x70c   :  { %3417 = vrcp.f32 %v1898_v45 }
 0x70d   :  { %v1891_v47 = vor.u32 1.1754944e-38, %v1890_v52  ;;  %vm1889_vm11 = vcmp.eq.f32.partialorder %v1888_v35, 8.507059e+37 }
 0x711   :  { %v3416_v30 = vpop.eup %3415 }
 0x712   :  { %v3418_v54 = vpop.eup %3417  ;;  %v1880_v32 = vmul.f32 %v3416_v30, %v1878_v44  ;;  %vm1885_vm8 = vweird.f32 %v3416_v30 }
 0x713   :  { %v1900_v14 = vmul.f32 %v3418_v54, %v1898_v45  ;;  %vm1886_vm10 = vmor %vm1884_vm9, %vm1885_vm8  ;;  %vm1905_vm12 = vweird.f32 %v3418_v54 }
 0x714   :  { %v1881_v21 = vsub.f32 1.0, %v1880_v32  ;;  %vm1906_vm14 = vmor %vm1904_vm13, %vm1905_vm12 }
 0x715   :  { %v1901_v26 = vsub.f32 1.0, %v1900_v14 }
 0x716   :  { %v1882_v16 = vmul.f32 %v3416_v30, %v1881_v21  ;;  %v1910_v21 = vand.u32 2147483648, %v1898_v45 }
 0x717   :  { %v1902_v9 = vmul.f32 %v3418_v54, %v1901_v26 }
 0x718   :  { %v1883_v15 = vadd.f32 %v3416_v30, %v1882_v16  ;;  %v1908_v16 = vand.u32 2147483647, %v1898_v45  ;;  %v1911_v52 = vor.u32 1.1754944e-38, %v1910_v21  ;;  %v1545_v45 = vadd.f32 %v4857_v22, %v4805_v6 }
 0x719   :  { %v1903_v10 = vadd.f32 %v3418_v54, %v1902_v9 }
 0x71a   :  { %v1887_v27 = vsel %vm1886_vm10, %v3416_v30, %v1883_v15  ;;  %vm1909_vm15 = vcmp.eq.f32.partialorder %v1908_v16, 8.507059e+37 }
 0x71b   :  { %v1892_v50 = vsel %vm1889_vm11, %v1891_v47, %v1887_v27  ;;  %v1907_v14 = vsel %vm1906_vm14, %v3418_v54, %v1903_v10  ;;  %v1516_v10 = vadd.f32 %v4799_v41, %v4797_v58 }
 0x71c   :  { %v1915_v3 = vmul.f32 %v1914_v20, %v1892_v50  ;;  %v1912_v30 = vsel %vm1909_vm15, %v1911_v52, %v1907_v14 }
 0x71e   :  { %v1916_v32 = vadd.f32 %v1915_v3, %v1571_v46 }
 0x720   :  { %3419 = vtanh.f32 %v1916_v32 }
 0x726   :  { %v3420_v44 = vpop.eup %3419 }
 0x727   :  { %v1918_v13 = vsub.f32 %v4827_v19, %v3420_v44 }
 0x729   :  { %v1919_v35 = vmul.f32 %v1918_v13, %v1912_v30 }
 0x72b   :  { %v4885_v15 = vadd.f32 %v3420_v44, %v1919_v35 }
 0x72d   :  { %v1921_v56 = vpack.c.bf16 %v4885_v15, %v4885_v15 }
 0x72f   :  { %1922 = vst [vmem:[#allocation2 + $0x4] sm:$0xf] %v1921_v56  ;;  %1934 = vmatmul.bf16.vlgmr.msrb.gmra.mxu2 %v1921_v56  ;;  %1947 = vmatmul.bf16.vlgmr.msrb.gmra.mxu3 %v1921_v56 }
 0x730   :  { %1960 = vmatmul.bf16.vlgmr.msra.gmra.mxu0 %v1921_v56  ;;  %2134 = vmatpush.bf16.msrb.mxu2 %v4663_v17 }
 0x731   :  { %2199 = vmatpush.bf16.msrb.mxu3 %v4348_v43  ;;  %2212 = vmatpush.bf16.msra.mxu0 %v4540_v1 }
 0x734   :  { %2135 = vmatpush.bf16.msrb.mxu2 %v4675_v25 }
 0x735   :  { %2200 = vmatpush.bf16.msrb.mxu3 %v4357_v11  ;;  %2213 = vmatpush.bf16.msra.mxu0 %v4550_v51 }
 0x738   :  { %2136 = vmatpush.bf16.msrb.mxu2 %v4686_v4 }
 0x739   :  { %2201 = vmatpush.bf16.msrb.mxu3 %v4366_v31  ;;  %2214 = vmatpush.bf16.msra.mxu0 %v4561_v61 }
 0x73c   :  { %2137 = vmatpush.bf16.msrb.mxu2 %v4697_v2 }
 0x73d   :  { %2202 = vmatpush.bf16.msrb.mxu3 %v4377_v24  ;;  %2215 = vmatpush.bf16.msra.mxu0 %v4577_v29 }
 0x740   :  { %2138 = vmatpush.bf16.msrb.mxu2 %v4710_v59 }
 0x741   :  { %2203 = vmatpush.bf16.msrb.mxu3 %v4398_v38  ;;  %2216 = vmatpush.bf16.msra.mxu0 %v4592_v8 }
 0x744   :  { %2139 = vmatpush.bf16.msrb.mxu2 %v4725_v60 }
 0x745   :  { %2204 = vmatpush.bf16.msrb.mxu3 %v4421_v49  ;;  %2217 = vmatpush.bf16.msra.mxu0 %v4606_v36 }
 0x748   :  { %2140 = vmatpush.bf16.msrb.mxu2 %v4739_v7 }
 0x749   :  { %2205 = vmatpush.bf16.msrb.mxu3 %v4444_v63  ;;  %2218 = vmatpush.bf16.msra.mxu0 %v4617_v0 }
 0x74c   :  { %2141 = vmatpush.bf16.msrb.mxu2 %v4755_v40 }
 0x74d   :  { %2206 = vmatpush.bf16.msrb.mxu3 %v4466_v23  ;;  %2219 = vmatpush.bf16.msra.mxu0 %v4628_v5 }
 0x7ad   :  { %v1961_v19 = vpop.f32.mrf.mxu0 }
 0x7b2   :  { %v1935_v54 = vpop.f32.mrf.mxu2  ;;  %v1948_v26 = vpop.f32.mrf.mxu3 }
 0x7b3   :  { %v1965_v47 = vadd.f32 %v1935_v54, %v1516_v10  ;;  %v1985_v20 = vadd.f32 %v1948_v26, %v1545_v45  ;;  %v2005_v26 = vadd.f32 %v4820_v55, %v1961_v19 }
 0x7b5   :  { %v3133_v27 = vmul.f32 -1.442695, %v1965_v47  ;;  %v3134_v50 = vmul.f32 -1.442695, %v1985_v20  ;;  %v1963_v46 = vpop.f32.mrf.mxu0 }
 0x7b7   :  { %3421 = vpow2.f32 %v3133_v27  ;;  %v1574_v27 = vadd.f32 %v4855_v42, %v4822_v37 }
 0x7b8   :  { %3423 = vpow2.f32 %v3134_v50 }
 0x7ba   :  { %v1937_v3 = vpop.f32.mrf.mxu2  ;;  %v1950_v9 = vpop.f32.mrf.mxu3 }
 0x7bd   :  { %v3422_v32 = vpop.eup %3421 }
 0x7be   :  { %v3424_v21 = vpop.eup %3423  ;;  %v1969_v16 = vadd.f32 1.0, %v3422_v32 }
 0x7bf   :  { %v1989_v14 = vadd.f32 1.0, %v3424_v21 }
 0x7c0   :  { %3425 = vrcp.f32 %v1969_v16  ;;  %v1981_v13 = vand.u32 2147483648, %v1969_v16  ;;  %v1979_v56 = vand.u32 2147483647, %v1969_v16  ;;  %vm1975_vm1 = vweird.f32 %v1969_v16 }
 0x7c1   :  { %3427 = vrcp.f32 %v1989_v14  ;;  %v2001_v32 = vand.u32 2147483648, %v1989_v14  ;;  %vm1995_vm5 = vweird.f32 %v1989_v14  ;;  %v1999_v21 = vand.u32 2147483647, %v1989_v14 }
 0x7c2   :  { %v1982_v45 = vor.u32 1.1754944e-38, %v1981_v13  ;;  %vm1980_vm3 = vcmp.eq.f32.partialorder %v1979_v56, 8.507059e+37  ;;  %v1547_v56 = vadd.f32 %v4861_v48, %v4805_v6 }
 0x7c3   :  { %vm2000_vm7 = vcmp.eq.f32.partialorder %v1999_v21, 8.507059e+37 }
 0x7c6   :  { %v3426_v41 = vpop.eup %3425 }
 0x7c7   :  { %v3428_v44 = vpop.eup %3427  ;;  %v1971_v22 = vmul.f32 %v3426_v41, %v1969_v16  ;;  %vm1976_vm0 = vweird.f32 %v3426_v41 }
 0x7c8   :  { %v1991_v30 = vmul.f32 %v3428_v44, %v1989_v14  ;;  %vm1977_vm2 = vmor %vm1975_vm1, %vm1976_vm0  ;;  %vm1996_vm4 = vweird.f32 %v3428_v44 }
 0x7c9   :  { %v1972_v52 = vsub.f32 1.0, %v1971_v22  ;;  %vm1997_vm6 = vmor %vm1995_vm5, %vm1996_vm4 }
 0x7ca   :  { %v1992_v54 = vsub.f32 1.0, %v1991_v30 }
 0x7cb   :  { %v1973_v35 = vmul.f32 %v3426_v41, %v1972_v52  ;;  %v2002_v52 = vor.u32 1.1754944e-38, %v2001_v32 }
 0x7cc   :  { %v1993_v46 = vmul.f32 %v3428_v44, %v1992_v54 }
 0x7cd   :  { %v1974_v10 = vadd.f32 %v3426_v41, %v1973_v35 }
 0x7ce   :  { %v1994_v9 = vadd.f32 %v3428_v44, %v1993_v46 }
 0x7cf   :  { %v1978_v47 = vsel %vm1977_vm2, %v3426_v41, %v1974_v10 }
 0x7d0   :  { %v1983_v20 = vsel %vm1980_vm3, %v1982_v45, %v1978_v47  ;;  %v1998_v16 = vsel %vm1997_vm6, %v3428_v44, %v1994_v9 }
 0x7d1   :  { %v2006_v50 = vmul.f32 %v2005_v26, %v1983_v20  ;;  %v2003_v41 = vsel %vm2000_vm7, %v2002_v52, %v1998_v16 }
 0x7d3   :  { %v2007_v3 = vadd.f32 %v2006_v50, %v1574_v27 }
 0x7d5   :  { %3429 = vtanh.f32 %v2007_v3 }
 0x7db   :  { %v3430_v22 = vpop.eup %3429 }
 0x7dc   :  { %v2009_v19 = vsub.f32 %v4885_v15, %v3430_v22  ;;  %v1518_v15 = vadd.f32 %v4803_v62, %v4797_v58 }
 0x7de   :  { %v2010_v13 = vmul.f32 %v2009_v19, %v2003_v41 }
 0x7e0   :  { %v4921_v30 = vadd.f32 %v3430_v22, %v2010_v13 }
 0x7e2   :  { %v2012_v42 = vpack.c.bf16 %v4921_v30, %v4921_v30 }
 0x7e4   :  { %2013 = vst [vmem:[#allocation2 + $0x8] sm:$0xf] %v2012_v42  ;;  %2025 = vmatmul.bf16.vlgmr.msrb.gmra.mxu1 %v2012_v42  ;;  %2038 = vmatmul.bf16.vlgmr.msra.gmra.mxu2 %v2012_v42 }
 0x7e5   :  { %2051 = vmatmul.bf16.vlgmr.msra.gmra.mxu3 %v2012_v42  ;;  %2225 = vmatpush.bf16.msrb.mxu1 %v4663_v17 }
 0x7e6   :  { %2290 = vmatpush.bf16.msra.mxu2 %v4348_v43  ;;  %2303 = vmatpush.bf16.msra.mxu3 %v4540_v1 }
 0x7e9   :  { %2226 = vmatpush.bf16.msrb.mxu1 %v4675_v25 }
 0x7ea   :  { %2291 = vmatpush.bf16.msra.mxu2 %v4357_v11  ;;  %2304 = vmatpush.bf16.msra.mxu3 %v4550_v51 }
 0x7ed   :  { %2227 = vmatpush.bf16.msrb.mxu1 %v4686_v4 }
 0x7ee   :  { %2292 = vmatpush.bf16.msra.mxu2 %v4366_v31  ;;  %2305 = vmatpush.bf16.msra.mxu3 %v4561_v61 }
 0x7f1   :  { %2228 = vmatpush.bf16.msrb.mxu1 %v4697_v2 }
 0x7f2   :  { %2293 = vmatpush.bf16.msra.mxu2 %v4377_v24  ;;  %2306 = vmatpush.bf16.msra.mxu3 %v4577_v29 }
 0x7f5   :  { %2229 = vmatpush.bf16.msrb.mxu1 %v4710_v59 }
 0x7f6   :  { %2294 = vmatpush.bf16.msra.mxu2 %v4398_v38  ;;  %2307 = vmatpush.bf16.msra.mxu3 %v4592_v8 }
 0x7f9   :  { %2230 = vmatpush.bf16.msrb.mxu1 %v4725_v60 }
 0x7fa   :  { %2295 = vmatpush.bf16.msra.mxu2 %v4421_v49  ;;  %2308 = vmatpush.bf16.msra.mxu3 %v4606_v36 }
 0x7fd   :  { %2231 = vmatpush.bf16.msrb.mxu1 %v4739_v7 }
 0x7fe   :  { %2296 = vmatpush.bf16.msra.mxu2 %v4444_v63  ;;  %2309 = vmatpush.bf16.msra.mxu3 %v4617_v0 }
 0x801   :  { %2232 = vmatpush.bf16.msrb.mxu1 %v4755_v40 }
 0x802   :  { %2297 = vmatpush.bf16.msra.mxu2 %v4466_v23  ;;  %2310 = vmatpush.bf16.msra.mxu3 %v4628_v5 }
 0x861   :  { %v2026_v14 = vpop.f32.mrf.mxu1 }
 0x862   :  { %v2056_v44 = vadd.f32 %v2026_v14, %v1518_v15 }
 0x864   :  { %v3135_v35 = vmul.f32 -1.442695, %v2056_v44 }
 0x866   :  { %3431 = vpow2.f32 %v3135_v35  ;;  %v1576_v35 = vadd.f32 %v4859_v53, %v4822_v37 }
 0x867   :  { %v2039_v10 = vpop.f32.mrf.mxu2 }
 0x868   :  { %v2076_v45 = vadd.f32 %v2039_v10, %v1547_v56  ;;  %v2052_v54 = vpop.f32.mrf.mxu3 }
 0x869   :  { %v2028_v26 = vpop.f32.mrf.mxu1  ;;  %v2096_v14 = vadd.f32 %v4820_v55, %v2052_v54 }
 0x86a   :  { %v3136_v47 = vmul.f32 -1.442695, %v2076_v45 }
 0x86c   :  { %v3432_v20 = vpop.eup %3431  ;;  %3433 = vpow2.f32 %v3136_v47 }
 0x86d   :  { %v2060_v27 = vadd.f32 1.0, %v3432_v20 }
 0x86f   :  { %3435 = vrcp.f32 %v2060_v27  ;;  %v2041_v50 = vpop.f32.mrf.mxu2  ;;  %v2072_v16 = vand.u32 2147483648, %v2060_v27  ;;  %v2070_v22 = vand.u32 2147483647, %v2060_v27  ;;  %vm2066_vm9 = vweird.f32 %v2060_v27 }
 0x870   :  { %v2054_v46 = vpop.f32.mrf.mxu3 }
 0x871   :  { %v2073_v13 = vor.u32 1.1754944e-38, %v2072_v16  ;;  %vm2071_vm11 = vcmp.eq.f32.partialorder %v2070_v22, 8.507059e+37 }
 0x872   :  { %v3434_v3 = vpop.eup %3433 }
 0x873   :  { %v2080_v62 = vadd.f32 1.0, %v3434_v3 }
 0x875   :  { %v3436_v9 = vpop.eup %3435  ;;  %3437 = vrcp.f32 %v2080_v62  ;;  %v2092_v47 = vand.u32 2147483648, %v2080_v62  ;;  %vm2086_vm13 = vweird.f32 %v2080_v62  ;;  %v2090_v20 = vand.u32 2147483647, %v2080_v62 }
 0x876   :  { %v2062_v32 = vmul.f32 %v3436_v9, %v2060_v27  ;;  %vm2067_vm8 = vweird.f32 %v3436_v9 }
 0x877   :  { %vm2068_vm10 = vmor %vm2066_vm9, %vm2067_vm8  ;;  %v2093_v46 = vor.u32 1.1754944e-38, %v2092_v47  ;;  %vm2091_vm15 = vcmp.eq.f32.partialorder %v2090_v20, 8.507059e+37 }
 0x878   :  { %v2063_v21 = vsub.f32 1.0, %v2062_v32 }
 0x87a   :  { %v2064_v48 = vmul.f32 %v3436_v9, %v2063_v21 }
 0x87b   :  { %v3438_v52 = vpop.eup %3437 }
 0x87c   :  { %v2082_v19 = vmul.f32 %v3438_v52, %v2080_v62  ;;  %v2065_v41 = vadd.f32 %v3436_v9, %v2064_v48  ;;  %vm2087_vm12 = vweird.f32 %v3438_v52 }
 0x87d   :  { %vm2088_vm14 = vmor %vm2086_vm13, %vm2087_vm12 }
 0x87e   :  { %v2083_v42 = vsub.f32 1.0, %v2082_v19  ;;  %v2069_v15 = vsel %vm2068_vm10, %v3436_v9, %v2065_v41 }
 0x87f   :  { %v2074_v44 = vsel %vm2071_vm11, %v2073_v13, %v2069_v15 }
 0x880   :  { %v2097_v56 = vmul.f32 %v2096_v14, %v2074_v44  ;;  %v2084_v10 = vmul.f32 %v3438_v52, %v2083_v42  ;;  %v1579_v14 = vadd.f32 %v4863_v28, %v4822_v37 }
 0x882   :  { %v2098_v45 = vadd.f32 %v2097_v56, %v1576_v35  ;;  %v2085_v26 = vadd.f32 %v3438_v52, %v2084_v10 }
 0x884   :  { %3439 = vtanh.f32 %v2098_v45  ;;  %v2089_v27 = vsel %vm2088_vm14, %v3438_v52, %v2085_v26 }
 0x885   :  { %v2094_v3 = vsel %vm2091_vm15, %v2093_v46, %v2089_v27 }
 0x88a   :  { %v3440_v50 = vpop.eup %3439 }
 0x88b   :  { %v2100_v54 = vsub.f32 %v4921_v30, %v3440_v50 }
 0x88d   :  { %v2101_v9 = vmul.f32 %v2100_v54, %v2094_v3 }
 0x88f   :  { %v4957_v32 = vadd.f32 %v3440_v50, %v2101_v9  ;;  %v1552_v9 = vadd.f32 %v4869_v18, %v4805_v6 }
 0x891   :  { %v2103_v53 = vpack.c.bf16 %v4957_v32, %v4957_v32 }
 0x893   :  { %2104 = vst [vmem:[#allocation2 + $0xc] sm:$0xf] %v2103_v53  ;;  %2116 = vmatmul.bf16.vlgmr.msrb.gmra.mxu0 %v2103_v53  ;;  %2129 = vmatmul.bf16.vlgmr.msra.gmra.mxu1 %v2103_v53 }
 0x894   :  { %2142 = vmatmul.bf16.vlgmr.msrb.gmra.mxu2 %v2103_v53  ;;  %2316 = vmatpush.bf16.msrb.mxu0 %v4663_v17 }
 0x895   :  { %2381 = vmatpush.bf16.msra.mxu1 %v4348_v43  ;;  %2394 = vmatpush.bf16.msrb.mxu2 %v4540_v1  ;;  %v1521_v43 = vadd.f32 %v4808_v39, %v4797_v58 }
 0x898   :  { %2317 = vmatpush.bf16.msrb.mxu0 %v4675_v25 }
 0x899   :  { %2382 = vmatpush.bf16.msra.mxu1 %v4357_v11  ;;  %2395 = vmatpush.bf16.msrb.mxu2 %v4550_v51  ;;  %v1550_v11 = vadd.f32 %v4865_v33, %v4805_v6 }
 0x89c   :  { %2318 = vmatpush.bf16.msrb.mxu0 %v4686_v4 }
 0x89d   :  { %2383 = vmatpush.bf16.msra.mxu1 %v4366_v31  ;;  %2396 = vmatpush.bf16.msrb.mxu2 %v4561_v61 }
 0x8a0   :  { %2319 = vmatpush.bf16.msrb.mxu0 %v4697_v2 }
 0x8a1   :  { %2384 = vmatpush.bf16.msra.mxu1 %v4377_v24  ;;  %2397 = vmatpush.bf16.msrb.mxu2 %v4577_v29 }
 0x8a4   :  { %2320 = vmatpush.bf16.msrb.mxu0 %v4710_v59 }
 0x8a5   :  { %2385 = vmatpush.bf16.msra.mxu1 %v4398_v38  ;;  %2398 = vmatpush.bf16.msrb.mxu2 %v4592_v8 }
 0x8a8   :  { %2321 = vmatpush.bf16.msrb.mxu0 %v4725_v60 }
 0x8a9   :  { %2386 = vmatpush.bf16.msra.mxu1 %v4421_v49  ;;  %2399 = vmatpush.bf16.msrb.mxu2 %v4606_v36 }
 0x8ac   :  { %2322 = vmatpush.bf16.msrb.mxu0 %v4739_v7 }
 0x8ad   :  { %2387 = vmatpush.bf16.msra.mxu1 %v4444_v63  ;;  %2400 = vmatpush.bf16.msrb.mxu2 %v4617_v0 }
 0x8b0   :  { %2323 = vmatpush.bf16.msrb.mxu0 %v4755_v40 }
 0x8b1   :  { %2388 = vmatpush.bf16.msra.mxu1 %v4466_v23  ;;  %2401 = vmatpush.bf16.msrb.mxu2 %v4628_v5 }
 0x910   :  { %v2117_v31 = vpop.f32.mrf.mxu0  ;;  %v2130_v24 = vpop.f32.mrf.mxu1 }
 0x911   :  { %v2147_v38 = vadd.f32 %v2117_v31, %v1521_v43  ;;  %v2167_v49 = vadd.f32 %v2130_v24, %v1550_v11  ;;  %v3306_v24 = vld [vmem:[%s5148_s10 + $0x20] sm:$0xff] }
 0x913   :  { %v3137_v1 = vmul.f32 -1.442695, %v2147_v38  ;;  %v3138_v63 = vmul.f32 -1.442695, %v2167_v49 }
 0x915   :  { %3441 = vpow2.f32 %v3137_v1 }
 0x916   :  { %3443 = vpow2.f32 %v3138_v63  ;;  %v3305_v63 = vld [vmem:[%s5148_s10 + $0x18] sm:$0xff] }
 0x917   :  { %v2143_v51 = vpop.f32.mrf.mxu2 }
 0x918   :  { %v2119_v61 = vpop.f32.mrf.mxu0  ;;  %v2132_v29 = vpop.f32.mrf.mxu1  ;;  %v2187_v42 = vadd.f32 %v4820_v55, %v2143_v51 }
 0x91b   :  { %v3442_v23 = vpop.eup %3441 }
 0x91c   :  { %v3444_v8 = vpop.eup %3443  ;;  %v2151_v36 = vadd.f32 1.0, %v3442_v23  ;;  %v3304_v23 = vld [vmem:[%s5148_s10 + $0x10] sm:$0xff] }
 0x91d   :  { %v2171_v0 = vadd.f32 1.0, %v3444_v8 }
 0x91e   :  { %3445 = vrcp.f32 %v2151_v36  ;;  %v2163_v16 = vand.u32 2147483648, %v2151_v36  ;;  %v2161_v22 = vand.u32 2147483647, %v2151_v36  ;;  %vm2157_vm1 = vweird.f32 %v2151_v36 }
 0x91f   :  { %3447 = vrcp.f32 %v2171_v0  ;;  %v2145_v5 = vpop.f32.mrf.mxu2  ;;  %v2183_v45 = vand.u32 2147483648, %v2171_v0  ;;  %vm2177_vm5 = vweird.f32 %v2171_v0  ;;  %v2181_v26 = vand.u32 2147483647, %v2171_v0 }
 0x920   :  { %v2164_v41 = vor.u32 1.1754944e-38, %v2163_v16  ;;  %vm2162_vm3 = vcmp.eq.f32.partialorder %v2161_v22, 8.507059e+37  ;;  %v3302_v22 = vld [vmem:[%s5148_s10] sm:$0xff] }
 0x921   :  { %v2184_v27 = vor.u32 1.1754944e-38, %v2183_v45  ;;  %vm2182_vm7 = vcmp.eq.f32.partialorder %v2181_v26, 8.507059e+37 }
 0x924   :  { %v3446_v39 = vpop.eup %3445 }
 0x925   :  { %v3448_v33 = vpop.eup %3447  ;;  %v2153_v30 = vmul.f32 %v3446_v39, %v2151_v36  ;;  %vm2158_vm0 = vweird.f32 %v3446_v39 }
 0x926   :  { %v2173_v21 = vmul.f32 %v3448_v33, %v2171_v0  ;;  %vm2159_vm2 = vmor %vm2157_vm1, %vm2158_vm0  ;;  %vm2178_vm4 = vweird.f32 %v3448_v33 }
 0x927   :  { %v2154_v62 = vsub.f32 1.0, %v2153_v30  ;;  %vm2179_vm6 = vmor %vm2177_vm5, %vm2178_vm4 }
 0x928   :  { %v2174_v19 = vsub.f32 1.0, %v2173_v21 }
 0x929   :  { %v2155_v48 = vmul.f32 %v3446_v39, %v2154_v62 }
 0x92a   :  { %v2175_v35 = vmul.f32 %v3448_v33, %v2174_v19  ;;  %v1581_v19 = vadd.f32 %v4867_v57, %v4822_v37 }
 0x92b   :  { %v2156_v52 = vadd.f32 %v3446_v39, %v2155_v48 }
 0x92c   :  { %v2176_v10 = vadd.f32 %v3448_v33, %v2175_v35 }
 0x92d   :  { %v2160_v13 = vsel %vm2159_vm2, %v3446_v39, %v2156_v52 }
 0x92e   :  { %v2165_v15 = vsel %vm2162_vm3, %v2164_v41, %v2160_v13  ;;  %v2180_v47 = vsel %vm2179_vm6, %v3448_v33, %v2176_v10  ;;  %v3303_v33 = vld [vmem:[%s5148_s10 + $0x8] sm:$0xff] }
 0x92f   :  { %v2188_v44 = vmul.f32 %v2187_v42, %v2165_v15  ;;  %v2185_v46 = vsel %vm2182_vm7, %v2184_v27, %v2180_v47  ;;  %v3299_v27 = vld [vmem:[#allocation2 + $0x8] sm:$0xff] }
 0x931   :  { %v2189_v56 = vadd.f32 %v2188_v44, %v1579_v14 }
 0x933   :  { %3449 = vtanh.f32 %v2189_v56 }
 0x939   :  { %v3450_v20 = vpop.eup %3449 }
 0x93a   :  { %v2191_v50 = vsub.f32 %v4957_v32, %v3450_v20 }
 0x93c   :  { %v2192_v54 = vmul.f32 %v2191_v50, %v2185_v46 }
 0x93e   :  { %v4993_v3 = vadd.f32 %v3450_v20, %v2192_v54  ;;  %v3298_v20 = vld [vmem:[#allocation2] sm:$0xff]  ;;  %v1526_v54 = vadd.f32 %v4813_v12, %v4797_v58 }
 0x940   :  { %v2194_v28 = vpack.c.bf16 %v4993_v3, %v4993_v3 }
 0x942   :  { %2195 = vst [vmem:[#allocation2 + $0x10] sm:$0xf] %v2194_v28  ;;  %2207 = vmatmul.bf16.vlgmr.msrb.gmra.mxu3 %v2194_v28  ;;  %2220 = vmatmul.bf16.vlgmr.msra.gmra.mxu0 %v2194_v28 }
 0x943   :  { %2233 = vmatmul.bf16.vlgmr.msrb.gmra.mxu1 %v2194_v28  ;;  %2407 = vmatpush.bf16.msrb.mxu3 %v4663_v17 }
 0x947   :  { %2408 = vmatpush.bf16.msrb.mxu3 %v4675_v25  ;;  %v1523_v25 = vadd.f32 %v4811_v34, %v4797_v58  ;;  %v3307_v34 = vld [vmem:[%s5148_s10 + $0x28] sm:$0xff] }
 0x94b   :  { %2409 = vmatpush.bf16.msrb.mxu3 %v4686_v4  ;;  %v3309_v4 = vld [vmem:[%s5148_s10 + $0x38] sm:$0xff] }
 0x94c   :  { %2571 = vmatpush.bf16.msra.mxu0 %v3309_v4 }
 0x94f   :  { %2410 = vmatpush.bf16.msrb.mxu3 %v4697_v2 }
 0x953   :  { %2411 = vmatpush.bf16.msrb.mxu3 %v4710_v59 }
 0x957   :  { %2412 = vmatpush.bf16.msrb.mxu3 %v4725_v60  ;;  %v3308_v60 = vld [vmem:[%s5148_s10 + $0x30] sm:$0xff] }
 0x958   :  { %2572 = vmatpush.bf16.msra.mxu0 %v3308_v60  ;;  %v5048_v60 = vld [vmem:[%s5149_s11] ss:$0 sm:$0xff] }
 0x95b   :  { %2413 = vmatpush.bf16.msrb.mxu3 %v4739_v7 }
 0x95c   :  { %2573 = vmatpush.bf16.msra.mxu0 %v3307_v34 }
 0x95f   :  { %2414 = vmatpush.bf16.msrb.mxu3 %v4755_v40 }
 0x960   :  { %2574 = vmatpush.bf16.msra.mxu0 %v3306_v24 }
 0x964   :  { %2575 = vmatpush.bf16.msra.mxu0 %v3305_v63 }
 0x968   :  { %2576 = vmatpush.bf16.msra.mxu0 %v3304_v23 }
 0x96c   :  { %2577 = vmatpush.bf16.msra.mxu0 %v3303_v33  ;;  %v5064_v33 = vld [vmem:[%s5146_s8] ss:$0 sm:$0xff] }
 0x970   :  { %2578 = vmatpush.bf16.msra.mxu0 %v3302_v22 }
 0x9bf   :  { %v2221_v32 = vpop.f32.mrf.mxu0 }
 0x9c0   :  { %v2258_v53 = vadd.f32 %v2221_v32, %v1552_v9  ;;  %v2234_v17 = vpop.f32.mrf.mxu1 }
 0x9c1   :  { %v2278_v16 = vadd.f32 %v4820_v55, %v2234_v17 }
 0x9c2   :  { %v3140_v43 = vmul.f32 -1.442695, %v2258_v53 }
 0x9c4   :  { %3451 = vpow2.f32 %v3140_v43 }
 0x9c5   :  { %v2208_v2 = vpop.f32.mrf.mxu3 }
 0x9c6   :  { %v2238_v59 = vadd.f32 %v2208_v2, %v1523_v25 }
 0x9c7   :  { %v2223_v7 = vpop.f32.mrf.mxu0 }
 0x9c8   :  { %v3139_v40 = vmul.f32 -1.442695, %v2238_v59  ;;  %v2236_v18 = vpop.f32.mrf.mxu1 }
 0x9ca   :  { %3453 = vpow2.f32 %v3139_v40  ;;  %v3452_v11 = vpop.eup %3451 }
 0x9cb   :  { %v2262_v49 = vadd.f32 1.0, %v3452_v11 }
 0x9cd   :  { %v2210_v31 = vpop.f32.mrf.mxu3  ;;  %v2274_v14 = vand.u32 2147483648, %v2262_v49  ;;  %vm2268_vm13 = vweird.f32 %v2262_v49  ;;  %v2272_v55 = vand.u32 2147483647, %v2262_v49 }
 0x9cf   :  { %v2275_v56 = vor.u32 1.1754944e-38, %v2274_v14  ;;  %vm2273_vm15 = vcmp.eq.f32.partialorder %v2272_v55, 8.507059e+37 }
 0x9d0   :  { %v3454_v38 = vpop.eup %3453 }
 0x9d1   :  { %v2242_v1 = vadd.f32 1.0, %v3454_v38 }
 0x9d3   :  { %3455 = vrcp.f32 %v2242_v1  ;;  %v2254_v0 = vand.u32 2147483648, %v2242_v1  ;;  %v2252_v39 = vand.u32 2147483647, %v2242_v1  ;;  %vm2248_vm9 = vweird.f32 %v2242_v1 }
 0x9d4   :  { %3457 = vrcp.f32 %v2262_v49 }
 0x9d5   :  { %v2255_v21 = vor.u32 1.1754944e-38, %v2254_v0  ;;  %vm2253_vm11 = vcmp.eq.f32.partialorder %v2252_v39, 8.507059e+37 }
 0x9d9   :  { %v3456_v51 = vpop.eup %3455 }
 0x9da   :  { %v3458_v61 = vpop.eup %3457  ;;  %v2244_v29 = vmul.f32 %v3456_v51, %v2242_v1  ;;  %vm2249_vm8 = vweird.f32 %v3456_v51 }
 0x9db   :  { %v2264_v36 = vmul.f32 %v3458_v61, %v2262_v49  ;;  %vm2250_vm10 = vmor %vm2248_vm9, %vm2249_vm8  ;;  %vm2269_vm12 = vweird.f32 %v3458_v61 }
 0x9dc   :  { %v2245_v8 = vsub.f32 1.0, %v2244_v29  ;;  %vm2270_vm14 = vmor %vm2268_vm13, %vm2269_vm12 }
 0x9dd   :  { %v2265_v62 = vsub.f32 1.0, %v2264_v36 }
 0x9de   :  { %v2246_v5 = vmul.f32 %v3456_v51, %v2245_v8 }
 0x9df   :  { %v2266_v13 = vmul.f32 %v3458_v61, %v2265_v62 }
 0x9e0   :  { %v2247_v30 = vadd.f32 %v3456_v51, %v2246_v5 }
 0x9e1   :  { %v2267_v15 = vadd.f32 %v3458_v61, %v2266_v13 }
 0x9e2   :  { %v2251_v48 = vsel %vm2250_vm10, %v3456_v51, %v2247_v30 }
 0x9e3   :  { %v2256_v52 = vsel %vm2253_vm11, %v2255_v21, %v2251_v48  ;;  %v2271_v44 = vsel %vm2270_vm14, %v3458_v61, %v2267_v15 }
 0x9e4   :  { %v2279_v41 = vmul.f32 %v2278_v16, %v2256_v52  ;;  %v2276_v45 = vsel %vm2273_vm15, %v2275_v56, %v2271_v44  ;;  %v5167_v16 = vld [vmem:[#allocation6_spill] sm:$0xff] }
 0x9e5   :  { %v1584_v48 = vadd.f32 %v5167_v16, %v4822_v37 }
 0x9e6   :  { %v2280_v42 = vadd.f32 %v2279_v41, %v1581_v19 }
 0x9e8   :  { %3459 = vtanh.f32 %v2280_v42 }
 0x9ee   :  { %v3460_v35 = vpop.eup %3459 }
 0x9ef   :  { %v2282_v10 = vsub.f32 %v4993_v3, %v3460_v35  ;;  %v5166_v3 = vld [vmem:[#allocation7_spill] sm:$0xff] }
 0x9f0   :  { %v1555_v28 = vadd.f32 %v5166_v3, %v4805_v6 }
 0x9f1   :  { %v2283_v26 = vmul.f32 %v2282_v10, %v2276_v45 }
 0x9f3   :  { %v5037_v57 = vadd.f32 %v3460_v35, %v2283_v26 }
 0x9f5   :  { %v2285_v47 = vpack.c.bf16 %v5037_v57, %v5037_v57 }
 0x9f7   :  { %2286 = vst [vmem:[#allocation2 + $0x14] sm:$0xf] %v2285_v47  ;;  %2298 = vmatmul.bf16.vlgmr.msra.gmra.mxu2 %v2285_v47  ;;  %2311 = vmatmul.bf16.vlgmr.msra.gmra.mxu3 %v2285_v47 }
 0x9f8   :  { %2324 = vmatmul.bf16.vlgmr.msrb.gmra.mxu0 %v2285_v47 }
 0x9fe   :  { %v3300_v50 = vld [vmem:[#allocation2 + $0x10] sm:$0xff] }
 0xa08   :  { %2579 = vmatmul.bf16.vlgmr.msra.gmra.mxu0 %v3298_v20 }
 0xa18   :  { %2584 = vmatmul.bf16.gmra.mxu0 %v3299_v27 }
 0xa28   :  { %2589 = vmatmul.bf16.gmra.mxu0 %v3300_v50 }
 0xa75   :  { %v2325_v46 = vpop.f32.mrf.mxu0 }
 0xa76   :  { %v2369_v30 = vadd.f32 %v5064_v33, %v2325_v46 }
 0xa7a   :  { %v2299_v9 = vpop.f32.mrf.mxu2  ;;  %v2312_v32 = vpop.f32.mrf.mxu3 }
 0xa7b   :  { %v2329_v53 = vadd.f32 %v2299_v9, %v1526_v54  ;;  %v2349_v17 = vadd.f32 %v2312_v32, %v1555_v28 }
 0xa7d   :  { %v3141_v43 = vmul.f32 -1.442695, %v2329_v53  ;;  %v3142_v25 = vmul.f32 -1.442695, %v2349_v17  ;;  %v2327_v4 = vpop.f32.mrf.mxu0 }
 0xa7f   :  { %3461 = vpow2.f32 %v3141_v43 }
 0xa80   :  { %3463 = vpow2.f32 %v3142_v25  ;;  %v5168_v25 = vld [vmem:[#allocation5_spill] sm:$0xff] }
 0xa81   :  { %v1528_v4 = vadd.f32 %v5168_v25, %v4797_v58 }
 0xa82   :  { %v2301_v2 = vpop.f32.mrf.mxu2  ;;  %v2314_v59 = vpop.f32.mrf.mxu3 }
 0xa85   :  { %v3462_v12 = vpop.eup %3461  ;;  %v2580_v7 = vpop.f32.mrf.mxu0 }
 0xa86   :  { %v3464_v40 = vpop.eup %3463  ;;  %v2333_v18 = vadd.f32 1.0, %v3462_v12  ;;  %v5051_v34 = vadd.f32 %v5048_v60, %v2580_v7  ;;  %v5169_v7 = vld [vmem:[#allocation8_spill] sm:$0xff] }
 0xa87   :  { %v2353_v11 = vadd.f32 1.0, %v3464_v40  ;;  %v1557_v40 = vadd.f32 %v5169_v7, %v4805_v6 }
 0xa88   :  { %3465 = vrcp.f32 %v2333_v18  ;;  %2600 = vmax.xlane.f32.xlu0 %v5051_v34  ;;  %v2345_v51 = vand.u32 2147483648, %v2333_v18  ;;  %v2343_v23 = vand.u32 2147483647, %v2333_v18  ;;  %vm2339_vm1 = vweird.f32 %v2333_v18 }
 0xa89   :  { %3467 = vrcp.f32 %v2353_v11  ;;  %v2365_v15 = vand.u32 2147483648, %v2353_v11  ;;  %vm2359_vm5 = vweird.f32 %v2353_v11  ;;  %v2363_v14 = vand.u32 2147483647, %v2353_v11 }
 0xa8a   :  { %v2346_v0 = vor.u32 1.1754944e-38, %v2345_v51  ;;  %vm2344_vm3 = vcmp.eq.f32.partialorder %v2343_v23, 8.507059e+37 }
 0xa8b   :  { %v2366_v35 = vor.u32 1.1754944e-38, %v2365_v15  ;;  %vm2364_vm7 = vcmp.eq.f32.partialorder %v2363_v14, 8.507059e+37 }
 0xa8d   :  { %v2582_v31 = vpop.f32.mrf.mxu0 }
 0xa8e   :  { %v3466_v24 = vpop.eup %3465  ;;  %v5055_v38 = vadd.f32 %v5048_v60, %v2582_v31 }
 0xa8f   :  { %v3468_v49 = vpop.eup %3467  ;;  %v2335_v1 = vmul.f32 %v3466_v24, %v2333_v18  ;;  %vm2340_vm0 = vweird.f32 %v3466_v24 }
 0xa90   :  { %2602 = vmax.xlane.f32.xlu0 %v5055_v38  ;;  %v2355_v61 = vmul.f32 %v3468_v49, %v2353_v11  ;;  %vm2341_vm2 = vmor %vm2339_vm1, %vm2340_vm0  ;;  %vm2360_vm4 = vweird.f32 %v3468_v49 }
 0xa91   :  { %v2336_v63 = vsub.f32 1.0, %v2335_v1  ;;  %vm2361_vm6 = vmor %vm2359_vm5, %vm2360_vm4 }
 0xa92   :  { %v2356_v5 = vsub.f32 1.0, %v2355_v61 }
 0xa93   :  { %v2337_v29 = vmul.f32 %v3466_v24, %v2336_v63 }
 0xa94   :  { %v2357_v52 = vmul.f32 %v3468_v49, %v2356_v5 }
 0xa95   :  { %v2338_v8 = vadd.f32 %v3466_v24, %v2337_v29  ;;  %v2585_v36 = vpop.f32.mrf.mxu0 }
 0xa96   :  { %v5059_v39 = vadd.f32 %v5048_v60, %v2585_v36  ;;  %v2358_v13 = vadd.f32 %v3468_v49, %v2357_v52 }
 0xa97   :  { %v2342_v62 = vsel %vm2341_vm2, %v3466_v24, %v2338_v8 }
 0xa98   :  { %v2347_v21 = vsel %vm2344_vm3, %v2346_v0, %v2342_v62  ;;  %2604 = vmax.xlane.f32.xlu1 %v5059_v39  ;;  %v2362_v55 = vsel %vm2361_vm6, %v3468_v49, %v2358_v13 }
 0xa99   :  { %v2370_v22 = vmul.f32 %v2369_v30, %v2347_v21  ;;  %v2367_v45 = vsel %vm2364_vm7, %v2366_v35, %v2362_v55 }
 0xa9b   :  { %v2371_v19 = vadd.f32 %v2370_v22, %v1584_v48 }
 0xa9d   :  { %v2587_v41 = vpop.f32.mrf.mxu0  ;;  %3469 = vtanh.f32 %v2371_v19  ;;  %v5170_v19 = vld [vmem:[#allocation4_spill] sm:$0xff] }
 0xa9e   :  { %v2588_v42 = vadd.f32 %v5048_v60, %v2587_v41  ;;  %v1586_v41 = vadd.f32 %v5170_v19, %v4822_v37 }
 0xaa0   :  { %2606 = vmax.xlane.f32.xlu1 %v2588_v42 }
 0xaa3   :  { %v3470_v44 = vpop.eup %3469 }
 0xaa4   :  { %v2373_v56 = vsub.f32 %v5037_v57, %v3470_v44 }
 0xaa5   :  { %v2590_v10 = vpop.f32.mrf.mxu0 }
 0xaa6   :  { %v5073_v26 = vadd.f32 %v5048_v60, %v2590_v10  ;;  %v2374_v47 = vmul.f32 %v2373_v56, %v2367_v45 }
 0xaa8   :  { %2608 = vmax.xlane.f32.xlu2 %v5073_v26  ;;  %v5076_v20 = vadd.f32 %v3470_v44, %v2374_v47 }
 0xaaa   :  { %v2376_v27 = vpack.c.bf16 %v5076_v20, %v5076_v20 }
 0xaac   :  { %2377 = vst [vmem:[#allocation2 + $0x18] sm:$0xf] %v2376_v27  ;;  %2389 = vmatmul.bf16.vlgmr.msra.gmra.mxu1 %v2376_v27  ;;  %2402 = vmatmul.bf16.vlgmr.msrb.gmra.mxu2 %v2376_v27 }
 0xaad   :  { %2415 = vmatmul.bf16.vlgmr.msrb.gmra.mxu3 %v2376_v27  ;;  %v2592_v50 = vpop.f32.mrf.mxu0 }
 0xaae   :  { %v5081_v57 = vadd.f32 %v5048_v60, %v2592_v50 }
 0xab0   :  { %2610 = vmax.xlane.f32.xlu2 %v5081_v57 }
 0xafb   :  { %v2601_v46 = vpop.xlane.xlu0 %2600 }
 0xafc   :  { %v5085_v54 = vsub.f32 %v5051_v34, %v2601_v46 }
 0xafe   :  { %v2624_v3 = vmul.f32 1.442695, %v5085_v54 }
 0xb00   :  { %3471 = vpow2.f32 %v2624_v3 }
 0xb06   :  { %v3472_v28 = vpop.eup %3471 }
 0xb07   :  { %2640 = vadd.xlane.f32.xlu2 %v3472_v28 }
 0xb0b   :  { %v5088_v9 = vpop.xlane.xlu1 %2604 }
 0xb13   :  { %v2607_v32 = vpop.xlane.xlu1 %2606 }
 0xb14   :  { %v5090_v53 = vsub.f32 %v2588_v42, %v2607_v32 }
 0xb16   :  { %v2630_v17 = vmul.f32 1.442695, %v5090_v53 }
 0xb18   :  { %3473 = vpow2.f32 %v2630_v17 }
 0xb1b   :  { %v2609_v46 = vpop.xlane.xlu2 %2608 }
 0xb1e   :  { %v3474_v43 = vpop.eup %3473 }
 0xb1f   :  { %2646 = vadd.xlane.f32.xlu2 %v3474_v43 }
 0xb23   :  { %v2611_v3 = vpop.xlane.xlu2 %2610 }
 0xb29   :  { %v2390_v2 = vpop.f32.mrf.mxu1 }
 0xb2a   :  { %v2420_v59 = vadd.f32 %v2390_v2, %v1528_v4 }
 0xb2c   :  { %v3143_v12 = vmul.f32 -1.442695, %v2420_v59  ;;  %v2603_v59 = vpop.xlane.xlu0 %2602 }
 0xb2e   :  { %3475 = vpow2.f32 %v3143_v12  ;;  %v2617_v12 = vsub.f32 %v5055_v38, %v2603_v59  ;;  %v2621_v38 = vsub.f32 %v5081_v57, %v2611_v3 }
 0xb2f   :  { %v2403_v18 = vpop.f32.mrf.mxu2 }
 0xb30   :  { %v2440_v34 = vadd.f32 %v2403_v18, %v1557_v40  ;;  %v2416_v11 = vpop.f32.mrf.mxu3  ;;  %v2626_v7 = vmul.f32 1.442695, %v2617_v12  ;;  %v2618_v18 = vsub.f32 %v5059_v39, %v5088_v9 }
 0xb31   :  { %v2392_v31 = vpop.f32.mrf.mxu1  ;;  %v2460_v22 = vadd.f32 %v5064_v33, %v2416_v11 }
 0xb32   :  { %v3144_v24 = vmul.f32 -1.442695, %v2440_v34  ;;  %v2620_v34 = vsub.f32 %v5073_v26, %v2609_v46  ;;  %v2628_v11 = vmul.f32 1.442695, %v2618_v18 }
 0xb34   :  { %v3476_v49 = vpop.eup %3475  ;;  %3477 = vpow2.f32 %v3144_v24 }
 0xb35   :  { %v2424_v1 = vadd.f32 1.0, %v3476_v49 }
 0xb37   :  { %3479 = vrcp.f32 %v2424_v1  ;;  %v2405_v63 = vpop.f32.mrf.mxu2  ;;  %v2436_v36 = vand.u32 2147483648, %v2424_v1  ;;  %v2434_v0 = vand.u32 2147483647, %v2424_v1  ;;  %vm2430_vm9 = vweird.f32 %v2424_v1 }
 0xb38   :  { %v2418_v51 = vpop.f32.mrf.mxu3 }
 0xb39   :  { %v2437_v21 = vor.u32 1.1754944e-38, %v2436_v36  ;;  %vm2435_vm11 = vcmp.eq.f32.partialorder %v2434_v0, 8.507059e+37 }
 0xb3a   :  { %v3478_v61 = vpop.eup %3477 }
 0xb3b   :  { %v2444_v58 = vadd.f32 1.0, %v3478_v61 }
 0xb3d   :  { %v3480_v29 = vpop.eup %3479  ;;  %3481 = vrcp.f32 %v2444_v58  ;;  %v2456_v55 = vand.u32 2147483648, %v2444_v58  ;;  %vm2450_vm13 = vweird.f32 %v2444_v58  ;;  %v2454_v44 = vand.u32 2147483647, %v2444_v58 }
 0xb3e   :  { %v2426_v23 = vmul.f32 %v3480_v29, %v2424_v1  ;;  %vm2431_vm8 = vweird.f32 %v3480_v29  ;;  %v2634_v1 = vmul.f32 1.442695, %v2621_v38 }
 0xb3f   :  { %vm2432_vm10 = vmor %vm2430_vm9, %vm2431_vm8  ;;  %v2457_v10 = vor.u32 1.1754944e-38, %v2456_v55  ;;  %vm2455_vm15 = vcmp.eq.f32.partialorder %v2454_v44, 8.507059e+37 }
 0xb40   :  { %v2427_v8 = vsub.f32 1.0, %v2426_v23 }
 0xb42   :  { %v2428_v6 = vmul.f32 %v3480_v29, %v2427_v8 }
 0xb43   :  { %v3482_v5 = vpop.eup %3481 }
 0xb44   :  { %v2446_v30 = vmul.f32 %v3482_v5, %v2444_v58  ;;  %v2429_v62 = vadd.f32 %v3480_v29, %v2428_v6  ;;  %vm2451_vm12 = vweird.f32 %v3482_v5 }
 0xb45   :  { %vm2452_vm14 = vmor %vm2450_vm13, %vm2451_vm12 }
 0xb46   :  { %v2447_v16 = vsub.f32 1.0, %v2446_v30  ;;  %v2433_v48 = vsel %vm2432_vm10, %v3480_v29, %v2429_v62 }
 0xb47   :  { %v2438_v52 = vsel %vm2435_vm11, %v2437_v21, %v2433_v48 }
 0xb48   :  { %v2461_v13 = vmul.f32 %v2460_v22, %v2438_v52  ;;  %v2448_v42 = vmul.f32 %v3482_v5, %v2447_v16 }
 0xb4a   :  { %v2462_v15 = vadd.f32 %v2461_v13, %v1586_v41  ;;  %v2449_v14 = vadd.f32 %v3482_v5, %v2448_v42 }
 0xb4c   :  { %3483 = vtanh.f32 %v2462_v15  ;;  %v2453_v35 = vsel %vm2452_vm14, %v3482_v5, %v2449_v14 }
 0xb4d   :  { %v2458_v45 = vsel %vm2455_vm15, %v2457_v10, %v2453_v35 }
 0xb52   :  { %v3484_v56 = vpop.eup %3483 }
 0xb53   :  { %v2464_v33 = vsub.f32 %v5076_v20, %v3484_v56 }
 0xb55   :  { %v2465_v47 = vmul.f32 %v2464_v33, %v2458_v45 }
 0xb57   :  { %v2466_v27 = vadd.f32 %v3484_v56, %v2465_v47 }
 0xb59   :  { %v2467_v37 = vpack.c.bf16 %v2466_v27, %v2466_v27  ;;  %3145 = vst [vmem:[%s5145_s13 + $0x8] sm:$0xff] %v2466_v27 }
 0xb5b   :  { %2468 = vst [vmem:[#allocation2 + $0x1c] sm:$0xf] %v2467_v37 }
 0xb62   :  { %v3301_v50 = vld [vmem:[#allocation2 + $0x18] sm:$0xff] }
 0xb63   :  { %2594 = vmatmul.bf16.gmra.mxu0 %v3301_v50 }
 0xb7a   :  { %v2641_v28 = vpop.xlane.xlu2 %2640 }
 0xb7b   :  { %3485 = vlog2.f32 %v2641_v28 }
 0xb81   :  { %v3486_v32 = vpop.eup %3485 }
 0xb82   :  { %v2657_v17 = vmul.f32 0.6931472, %v3486_v32 }
 0xb84   :  { %v2672_v43 = vsub.f32 %v5085_v54, %v2657_v17 }
 0xb86   :  { %2680 = vst [vmem:[%s5150_s12] sm:$0xff] %v2672_v43 }
 0xb92   :  { %v2647_v20 = vpop.xlane.xlu2 %2646 }
 0xb93   :  { %3487 = vlog2.f32 %v2647_v20 }
 0xb94   :  { %3489 = vpow2.f32 %v2626_v7 }
 0xb95   :  { %3491 = vpow2.f32 %v2628_v11 }
 0xb99   :  { %v3488_v25 = vpop.eup %3487 }
 0xb9a   :  { %v2663_v4 = vmul.f32 0.6931472, %v3488_v25  ;;  %v3490_v49 = vpop.eup %3489 }
 0xb9b   :  { %v3492_v63 = vpop.eup %3491 }
 0xb9c   :  { %v2675_v2 = vsub.f32 %v5090_v53, %v2663_v4  ;;  %v2632_v53 = vmul.f32 1.442695, %v2620_v34 }
 0xb9e   :  { %2683 = vst [vmem:[%s5150_s12 + $0x18] sm:$0xff] %v2675_v2  ;;  %3493 = vpow2.f32 %v2632_v53 }
 0xb9f   :  { %3495 = vpow2.f32 %v2634_v1 }
 0xba4   :  { %v3494_v51 = vpop.eup %3493 }
 0xba5   :  { %v3496_v39 = vpop.eup %3495 }
 0xbe0   :  { %v2595_v40 = vpop.f32.mrf.mxu0 }
 0xbe1   :  { %v2596_v54 = vadd.f32 %v5048_v60, %v2595_v40 }
 0xbe3   :  { %2612 = vmax.xlane.f32.xlu0 %v2596_v54 }
 0xbe8   :  { %v2597_v31 = vpop.f32.mrf.mxu0 }
 0xbe9   :  { %v2598_v24 = vadd.f32 %v5048_v60, %v2597_v31 }
 0xbeb   :  { %2614 = vmax.xlane.f32.xlu1 %v2598_v24  ;;  %2642 = vadd.xlane.f32.xlu0 %v3490_v49 }
 0xbf3   :  { %2644 = vadd.xlane.f32.xlu1 %v3492_v63  ;;  %2648 = vadd.xlane.f32.xlu0 %v3494_v51 }
 0xbfb   :  { %2650 = vadd.xlane.f32.xlu1 %v3496_v39 }
 0xc56   :  { %v2613_v26 = vpop.xlane.xlu0 %2612 }
 0xc57   :  { %v2622_v9 = vsub.f32 %v2596_v54, %v2613_v26 }
 0xc59   :  { %v2636_v61 = vmul.f32 1.442695, %v2622_v9 }
 0xc5b   :  { %3497 = vpow2.f32 %v2636_v61 }
 0xc5e   :  { %v2615_v60 = vpop.xlane.xlu1 %2614  ;;  %v2643_v58 = vpop.xlane.xlu0 %2642 }
 0xc5f   :  { %v2623_v29 = vsub.f32 %v2598_v24, %v2615_v60  ;;  %3499 = vlog2.f32 %v2643_v58 }
 0xc61   :  { %v3498_v23 = vpop.eup %3497  ;;  %v2638_v8 = vmul.f32 1.442695, %v2623_v29 }
 0xc62   :  { %2652 = vadd.xlane.f32.xlu2 %v3498_v23 }
 0xc63   :  { %3501 = vpow2.f32 %v2638_v8 }
 0xc65   :  { %v3500_v57 = vpop.eup %3499 }
 0xc66   :  { %v2659_v36 = vmul.f32 0.6931472, %v3500_v57  ;;  %v2645_v6 = vpop.xlane.xlu1 %2644  ;;  %v2649_v0 = vpop.xlane.xlu0 %2648 }
 0xc67   :  { %3503 = vlog2.f32 %v2645_v6 }
 0xc68   :  { %v2673_v5 = vsub.f32 %v2617_v12, %v2659_v36  ;;  %3505 = vlog2.f32 %v2649_v0 }
 0xc69   :  { %v3502_v30 = vpop.eup %3501 }
 0xc6a   :  { %2681 = vst [vmem:[%s5150_s12 + $0x8] sm:$0xff] %v2673_v5  ;;  %2654 = vadd.xlane.f32.xlu0 %v3502_v30 }
 0xc6d   :  { %v3504_v62 = vpop.eup %3503 }
 0xc6e   :  { %v3506_v21 = vpop.eup %3505  ;;  %v2661_v16 = vmul.f32 0.6931472, %v3504_v62  ;;  %v2651_v48 = vpop.xlane.xlu1 %2650 }
 0xc6f   :  { %v2665_v22 = vmul.f32 0.6931472, %v3506_v21  ;;  %3507 = vlog2.f32 %v2651_v48 }
 0xc70   :  { %v2674_v52 = vsub.f32 %v2618_v18, %v2661_v16 }
 0xc71   :  { %v2676_v19 = vsub.f32 %v2620_v34, %v2665_v22 }
 0xc72   :  { %2682 = vst [vmem:[%s5150_s12 + $0x10] sm:$0xff] %v2674_v52 }
 0xc73   :  { %2684 = vst [vmem:[%s5150_s12 + $0x20] sm:$0xff] %v2676_v19 }
 0xc75   :  { %v3508_v41 = vpop.eup %3507 }
 0xc76   :  { %v2667_v13 = vmul.f32 0.6931472, %v3508_v41 }
 0xc78   :  { %v2677_v42 = vsub.f32 %v2621_v38, %v2667_v13 }
 0xc7a   :  { %2685 = vst [vmem:[%s5150_s12 + $0x28] sm:$0xff] %v2677_v42 }
 0xcd5   :  { %v2653_v15 = vpop.xlane.xlu2 %2652 }
 0xcd6   :  { %3509 = vlog2.f32 %v2653_v15 }
 0xcdc   :  { %v3510_v14 = vpop.eup %3509 }
 0xcdd   :  { %v2669_v55 = vmul.f32 0.6931472, %v3510_v14  ;;  %v2655_v44 = vpop.xlane.xlu0 %2654 }
 0xcde   :  { %3511 = vlog2.f32 %v2655_v44 }
 0xcdf   :  { %v2678_v35 = vsub.f32 %v2622_v9, %v2669_v55 }
 0xce1   :  { %2686 = vst [vmem:[%s5150_s12 + $0x30] sm:$0xff] %v2678_v35 }
 0xce4   :  { %v3512_v56 = vpop.eup %3511 }
 0xce5   :  { %v2671_v10 = vmul.f32 0.6931472, %v3512_v56 }
 0xce7   :  { %v2679_v33 = vsub.f32 %v2623_v29, %v2671_v10 }
 0xce9   :  { %2687 = vst [vmem:[%s5150_s12 + $0x38] sm:$0xff] %v2679_v33 }

</bundles_post_ra>
